<compile_context>
chip_gen: v7x
topology: tpu7x:2x2x1
jax: 0.10.0
libtpu: 0.0.40
codegen_flags: <defaults>
</compile_context>

<pallas_src>
import math
import jax
import jax.numpy as jnp
from jax import lax
from jax.experimental import pallas as pl
from jax.experimental.pallas import tpu as pltpu

LEAKY_SLOPE = 0.2
VMEM = pltpu.MemorySpace.VMEM
SMEM = pltpu.MemorySpace.SMEM
D_P, D_Q = 3, 4
D_PAD = 8  # per-metapath head width padded to a lane-aligned block


# --------------------------------------------------------------------------
# small in-kernel helpers
# --------------------------------------------------------------------------

def _leaky(h):
    return jnp.where(h > 0, h, LEAKY_SLOPE * h)


def _dot(a, b):
    # a @ b with f32 accumulation
    return jnp.dot(a, b, preferred_element_type=jnp.float32)


def _dot_bt(a, b):
    # a @ b.T (contract last dims of both) — no transpose materialization
    return lax.dot_general(a, b, (((a.ndim - 1,), (b.ndim - 1,)), ((), ())),
                           preferred_element_type=jnp.float32)


# --------------------------------------------------------------------------
# per-side attention body (traced twice inside the single fused kernel)
# --------------------------------------------------------------------------

def _side_attention(is_user, adj, sa0, sa1, oa0, oa1, pa2,
                    self_e, neigh, view1, wcat, bcat, vcat, x_ref, q_ref, vw_ref):
    """Views 2/3/4 for one side (user or product) + 4-view fusion epilogue."""
    bf = jnp.bfloat16
    N, E = self_e.shape
    M, S = oa0.shape
    DP = x_ref.shape[-1]                                   # 8

    adj_bf = adj.astype(bf)
    neigh_bf = neigh.astype(bf)
    cs_adj = jnp.sum(adj, axis=0, keepdims=True)           # (1, M): ones-chain prefix, rank-1

    # ---- rank-1 ("row") metapath chains (no diagonal removal in the source) ----
    cs_sa0 = jnp.sum(sa0, axis=0, keepdims=True)           # (1, S)
    cs_sa1 = jnp.sum(sa1, axis=0, keepdims=True)           # (1, S)
    r_uv0 = _dot(cs_adj, oa0)                              # (1, S)
    r_uv1 = _dot(cs_adj, oa1)                              # (1, S)
    if is_user:
        r_uv2 = _dot(cs_adj, pa2)                          # (1, S)
        row_lhs = jnp.concatenate(
            [jnp.broadcast_to(r, (N, S))
             for r in (cs_sa0, r_uv0, cs_sa1, r_uv1, r_uv2)], axis=0)     # (5N, S)
        oth = jnp.concatenate([oa0, oa1, pa2], axis=0)     # (3M, S)
        rowch = _dot_bt(row_lhs, oth)                      # (5N, 3M) — one batched contraction
        chain_blk = {
            0: rowch[0 * N:1 * N, 0:M],                    # usv   -> pa0.T
            1: rowch[1 * N:2 * N, 0:M],                    # uvsv  -> pa0.T
            3: rowch[2 * N:3 * N, M:2 * M],                # udv   -> pa1.T
            4: rowch[3 * N:4 * N, 0:M],                    # uvdv  -> pa0.T (as in the source)
            6: rowch[4 * N:5 * N, 2 * M:3 * M],            # uvpv  -> pa2.T
        }
        full_attrs, full_paths = (sa0, sa1), (2, 5)
    else:
        row_lhs = jnp.concatenate(
            [jnp.broadcast_to(r, (N, S))
             for r in (cs_sa0, r_uv0, cs_sa1, r_uv1)], axis=0)            # (4N, S)
        oth = jnp.concatenate([oa0, oa1], axis=0)          # (2M, S)
        rowch = _dot_bt(row_lhs, oth)                      # (4N, 2M)
        chain_blk = {
            0: rowch[0 * N:1 * N, 0:M],                    # vsu   -> ua0.T
            1: rowch[1 * N:2 * N, 0:M],                    # vusu  -> ua0.T
            3: rowch[2 * N:3 * N, M:2 * M],                # vdu   -> ua1.T
            4: rowch[3 * N:4 * N, M:2 * M],                # vudu  -> ua1.T
        }
        full_attrs, full_paths = (sa0, sa1, pa2), (2, 5, 6)

    # ---- diagonal-removed chains: diag mask hoisted, bf16 operands, batched @adj ----
    eye = (lax.broadcasted_iota(jnp.int32, (N, N), 0)
           == lax.broadcasted_iota(jnp.int32, (N, N), 1))

    def aa_nodiag(attr):
        a_bf = attr.astype(bf)                             # attrs are exactly {0,1}
        aa = _dot_bt(a_bf, a_bf)                           # (N, N), f32 accumulation (exact)
        return jnp.where(eye, 0.0, aa).astype(bf)

    full_lhs = jnp.concatenate([aa_nodiag(a) for a in full_attrs], axis=0)   # (F*N, N) bf16
    full_chain = _dot(full_lhs, adj_bf)                                      # (F*N, M) f32
    for i, p in enumerate(full_paths):
        chain_blk[p] = full_chain[i * N:(i + 1) * N, :]

    # ---- batched neighbor aggregation + batched projections for all 7 metapaths ----
    all_chain = jnp.concatenate([chain_blk[p] for p in range(7)], axis=0)    # (7N, M)
    nz = all_chain > 0
    mask = nz.astype(bf)                                                     # exact {0,1}
    deg = jnp.maximum(jnp.sum(nz, axis=-1, keepdims=True).astype(jnp.float32), 1.0)
    agg = _dot(mask, neigh_bf) * (1.0 / deg)                                 # (7N, E) mean aggr
    proj = jnp.tanh(_dot(agg, wcat) + bcat)                                  # (7N, 7*DP)
    s_all = jnp.tanh(_dot(self_e, vcat))                                     # (N, 7*DP)

    # ---- per-view metapath softmax fusion + 4-view fusion (one view's z live) ----
    out = view1 * vw_ref[0, 0]
    for g, group in enumerate(((0, 1, 2), (3, 4, 5), (6,))):
        zs, scores = [], []
        for p in group:
            agg_p = agg[p * N:(p + 1) * N, :]                                # (N, E)
            proj_p = proj[p * N:(p + 1) * N, p * DP:(p + 1) * DP]            # (N, DP)
            s_p = s_all[:, p * DP:(p + 1) * DP]                              # (N, DP)
            e_p = jnp.sum((proj_p + s_p) * x_ref[p], axis=-1, keepdims=True)  # (N, 1)
            zs.append(jax.nn.sigmoid(e_p) * agg_p)                           # (N, E)
            scores.append(jnp.mean(jnp.sum(proj_p * q_ref[p], axis=-1, keepdims=True),
                                   axis=0, keepdims=True))                   # (1, 1)
        if len(group) == 1:
            fused = zs[0]
        else:
            m = scores[0]
            for sc in scores[1:]:
                m = jnp.maximum(m, sc)
            exps = [jnp.exp(sc - m) for sc in scores]
            denom = exps[0]
            for ex in exps[1:]:
                denom = denom + ex
            inv = 1.0 / denom                                # exact division (parity)
            fused = zs[0] * (exps[0] * inv)
            for z_, ex in zip(zs[1:], exps[1:]):
                fused = fused + z_ * (ex * inv)
        out = out + fused * vw_ref[0, g + 1]
    return out


# --------------------------------------------------------------------------
# the single fused kernel
# --------------------------------------------------------------------------

def _fused_mvgat_kernel(up_ref, upT_ref, users_ref, products_ref,
                        w_ref, bu_ref, bv_ref,
                        ua0_ref, ua1_ref, pa0_ref, pa1_ref, pa2_ref,
                        u_wcat_ref, u_bcat_ref, u_vcat_ref, u_x_ref, u_q_ref,
                        p_wcat_ref, p_bcat_ref, p_vcat_ref, p_x_ref, p_q_ref,
                        u_vw_ref, p_vw_ref,
                        out_u_ref, out_p_ref):
    up = up_ref[...]
    upT = upT_ref[...]            # single transposed orientation, hoisted to the wrapper
    users = users_ref[...]
    products = products_ref[...]
    W = w_ref[...]
    bu = bu_ref[...]
    bv = bv_ref[...]

    # ---------------- view 1: fused 2-layer FreeEmbeddingNetwork ----------------
    def v1_layer(u_emb, v_emb):
        u_out = _leaky(_dot(_dot(up, v_emb), W) + bu)
        v_out = _leaky(_dot(_dot(upT, u_emb), W) + bv)
        return u_out, v_out

    u1, p1 = v1_layer(users, products)
    view1_u, view1_p = v1_layer(u1, p1)

    ua0 = ua0_ref[...]
    ua1 = ua1_ref[...]
    pa0 = pa0_ref[...]
    pa1 = pa1_ref[...]
    pa2 = pa2_ref[...]

    # ---------------- views 2/3/4 + fusion, user side then product side ----------------
    out_u_ref[...] = _side_attention(
        True, up, ua0, ua1, pa0, pa1, pa2, users, products, view1_u,
        u_wcat_ref[...], u_bcat_ref[...], u_vcat_ref[...], u_x_ref, u_q_ref, u_vw_ref)
    out_p_ref[...] = _side_attention(
        False, upT, pa0, pa1, ua0, ua1, pa2, products, users, view1_p,
        p_wcat_ref[...], p_bcat_ref[...], p_vcat_ref[...], p_x_ref, p_q_ref, p_vw_ref)


# --------------------------------------------------------------------------
# Parameter handling
# --------------------------------------------------------------------------

def xavier_normal(key, shape):
    if len(shape) == 2:
        fan_out, fan_in = shape
    else:
        receptive = int(math.prod(shape[2:]))
        fan_in = shape[1] * receptive
        fan_out = shape[0] * receptive
    std = math.sqrt(2.0 / (fan_in + fan_out))
    return std * jax.random.normal(key, shape, jnp.float32)


def init_params(key, embedding_size, d_p=D_P, d_q=D_Q):
    specs = {
        "weight": (embedding_size, embedding_size),
        "user_bias": (1, embedding_size),
        "product_bias": (1, embedding_size),
        "user_view_weight": (1, 4),
        "product_view_weight": (1, 4),
    }
    for view, P in (("view2", 3), ("view3", 3), ("view4", 1)):
        for side in ("user", "product"):
            pre = f"{view}_{side}"
            specs[pre + "_X"] = (P, 1, d_p)
            specs[pre + "_V"] = (P, embedding_size, d_p)
            specs[pre + "_W_p"] = (P, embedding_size, d_p)
            specs[pre + "_B_p"] = (P, 1, d_p)
            specs[pre + "_W_q"] = (P, embedding_size, d_q)
            specs[pre + "_B_q"] = (P, 1, d_q)
            specs[pre + "_Q"] = (P, 1, d_q)
    names = sorted(specs)
    keys = jax.random.split(key, len(names))
    return {n: xavier_normal(k, specs[n]) for n, k in zip(names, keys)}


def stack_side_params(params, side, d_p=D_P, d_q=D_Q):
    """Pack one side's per-metapath attention params for the fused kernel.

    Every metapath's [W_p | W_q] block is zero-padded to D_PAD columns and all 7
    metapaths are laid out side by side, so the kernel runs ONE agg @ Wcat and ONE
    self @ Vcat matmul instead of 7 + 7.  X / Q / V / B are zero-padded so the
    other head's columns (and the pad column) contribute exactly zero.
    """
    D = d_p + d_q
    Wb, Bb, Vb, Xb, Qb = [], [], [], [], []
    for view in ("view2", "view3", "view4"):
        pre = f"{view}_{side}_"
        Wp, Wq = params[pre + "W_p"], params[pre + "W_q"]
        Bp, Bq = params[pre + "B_p"], params[pre + "B_q"]
        Vv, Xv, Qv = params[pre + "V"], params[pre + "X"], params[pre + "Q"]
        P, E = Wp.shape[0], Wp.shape[1]
        padw = jnp.zeros((P, E, D_PAD - D), jnp.float32)
        pad1 = jnp.zeros((P, 1, D_PAD - D), jnp.float32)
        Wb.append(jnp.concatenate([Wp, Wq, padw], axis=-1))
        Bb.append(jnp.concatenate([Bp, Bq, pad1], axis=-1))
        Vb.append(jnp.concatenate([Vv, jnp.zeros((P, E, d_q), jnp.float32), padw], axis=-1))
        Xb.append(jnp.concatenate([Xv, jnp.zeros((P, 1, d_q), jnp.float32), pad1], axis=-1))
        Qb.append(jnp.concatenate([jnp.zeros((P, 1, d_p), jnp.float32), Qv, pad1], axis=-1))
    W7 = jnp.concatenate(Wb, axis=0)      # (7, E, 8)
    B7 = jnp.concatenate(Bb, axis=0)      # (7, 1, 8)
    V7 = jnp.concatenate(Vb, axis=0)      # (7, E, 8)
    X7 = jnp.concatenate(Xb, axis=0)      # (7, 1, 8)
    Q7 = jnp.concatenate(Qb, axis=0)      # (7, 1, 8)
    E = W7.shape[1]
    Wcat = jnp.transpose(W7, (1, 0, 2)).reshape(E, 7 * D_PAD).astype(jnp.float32)
    Bcat = jnp.transpose(B7, (1, 0, 2)).reshape(1, 7 * D_PAD).astype(jnp.float32)
    Vcat = jnp.transpose(V7, (1, 0, 2)).reshape(E, 7 * D_PAD).astype(jnp.float32)
    return Wcat, Bcat, Vcat, X7.astype(jnp.float32), Q7.astype(jnp.float32)


def _vmem_limit_bytes():
    # generation-aware scoped-VMEM limit (v5e/v6e: 128 MiB physical, v7x: 64 MiB)
    try:
        cap = int(pltpu.get_tpu_info().vmem_capacity_bytes)
    except Exception:
        cap = 64 * 1024 * 1024
    return int(min(cap * 3 // 4, 100 * 1024 * 1024))


# --------------------------------------------------------------------------
# Model forward
# --------------------------------------------------------------------------

def forward(params, items, user_product, user_attr, product_attr):
    users = items[0].astype(jnp.float32)
    products = items[1].astype(jnp.float32)
    up = user_product.astype(jnp.float32)
    upT = jnp.transpose(up)                       # hoisted once, reused everywhere
    ua0, ua1 = (a.astype(jnp.float32) for a in user_attr)
    pa0, pa1, pa2 = (a.astype(jnp.float32) for a in product_attr)

    u_stack = stack_side_params(params, "user")
    p_stack = stack_side_params(params, "product")
    user_vw = jax.nn.softmax(params["user_view_weight"].astype(jnp.float32), axis=-1)
    prod_vw = jax.nn.softmax(params["product_view_weight"].astype(jnp.float32), axis=-1)

    U, E = users.shape
    V = products.shape[0]
    S = ua0.shape[1]
    DTOT = u_stack[0].shape[1]                    # 7 * D_PAD

    # rough but representative cost hint for XLA scheduling
    flops = 4 * (U * V * E + U * E * E + V * U * E + V * E * E)           # view1, 2 layers
    for N, M, F, R in ((U, V, 2, 5), (V, U, 3, 4)):
        flops += 2 * (F * N * N * S + F * N * N * M                       # diag-removed chains
                      + R * N * S * 3 * M                                  # batched row chains
                      + 7 * N * M * E                                      # mask @ neigh
                      + 7 * N * E * DTOT + N * E * DTOT)                   # projections
    trans = 2 * (8 * max(U, V) * DTOT + 8 * max(U, V) + 16)
    nbytes = 4 * (2 * up.size + 2 * users.size + 2 * products.size
                  + ua0.size + ua1.size + pa0.size + pa1.size + pa2.size
                  + params["weight"].size + 2 * E + 8
                  + sum(int(a.size) for a in u_stack)
                  + sum(int(a.size) for a in p_stack))
    cost = pl.CostEstimate(flops=int(flops), transcendentals=int(trans),
                           bytes_accessed=int(nbytes))

    out_u, out_p = pl.pallas_call(
        _fused_mvgat_kernel,
        out_shape=(jax.ShapeDtypeStruct((U, E), jnp.float32),
                   jax.ShapeDtypeStruct((V, E), jnp.float32)),
        in_specs=[pl.BlockSpec(memory_space=VMEM)] * 22
                 + [pl.BlockSpec(memory_space=SMEM)] * 2,
        out_specs=(pl.BlockSpec(memory_space=VMEM),
                   pl.BlockSpec(memory_space=VMEM)),
        compiler_params=pltpu.CompilerParams(vmem_limit_bytes=_vmem_limit_bytes()),
        cost_estimate=cost,
    )(up, upT, users, products,
      params["weight"].astype(jnp.float32),
      params["user_bias"].astype(jnp.float32),
      params["product_bias"].astype(jnp.float32),
      ua0, ua1, pa0, pa1, pa2,
      *u_stack, *p_stack, user_vw, prod_vw)
    return out_u, out_p


# --------------------------------------------------------------------------
# Main
# --------------------------------------------------------------------------

if __name__ == "__main__":
    E, U, V, S = 32, 16, 16, 8   # embedding_size, #users, #products, #attributes

    key = jax.random.PRNGKey(0)
    keys = jax.random.split(key, 16)

    users = jax.random.normal(keys[0], (U, E), jnp.float32)
    products = jax.random.normal(keys[1], (V, E), jnp.float32)
    user_product = (jax.random.uniform(keys[2], (U, V)) > 0.5).astype(jnp.float32)
    user_attr = [
        (jax.random.uniform(keys[3], (U, S)) > 0.5).astype(jnp.float32),
        (jax.random.uniform(keys[4], (U, S)) > 0.5).astype(jnp.float32),
    ]
    product_attr = [
        (jax.random.uniform(keys[5], (V, S)) > 0.5).astype(jnp.float32),
        (jax.random.uniform(keys[6], (V, S)) > 0.5).astype(jnp.float32),
        (jax.random.uniform(keys[7], (V, S)) > 0.5).astype(jnp.float32),
    ]

    params = init_params(keys[8], E)

    fwd = jax.jit(forward)
    out_users, out_products = fwd(
        params, (users, products), user_product, user_attr, product_attr)
    jax.block_until_ready((out_users, out_products))

    assert out_users.shape == (U, E) and out_products.shape == (V, E)
    assert bool(jnp.all(jnp.isfinite(out_users))) and bool(jnp.all(jnp.isfinite(out_products)))
    print("KERNEL_OK")
</pallas_src>

<mosaic_0001>
module attributes {stable_mosaic.version = 11 : i64} {
  func.func @_fused_mvgat_kernel(%arg0: memref<16x16xf32, #tpu.memory_space<vmem>>, %arg1: memref<16x16xf32, #tpu.memory_space<vmem>>, %arg2: memref<16x32xf32, #tpu.memory_space<vmem>>, %arg3: memref<16x32xf32, #tpu.memory_space<vmem>>, %arg4: memref<32x32xf32, #tpu.memory_space<vmem>>, %arg5: memref<1x32xf32, #tpu.memory_space<vmem>>, %arg6: memref<1x32xf32, #tpu.memory_space<vmem>>, %arg7: memref<16x8xf32, #tpu.memory_space<vmem>>, %arg8: memref<16x8xf32, #tpu.memory_space<vmem>>, %arg9: memref<16x8xf32, #tpu.memory_space<vmem>>, %arg10: memref<16x8xf32, #tpu.memory_space<vmem>>, %arg11: memref<16x8xf32, #tpu.memory_space<vmem>>, %arg12: memref<32x56xf32, #tpu.memory_space<vmem>>, %arg13: memref<1x56xf32, #tpu.memory_space<vmem>>, %arg14: memref<32x56xf32, #tpu.memory_space<vmem>>, %arg15: memref<7x1x8xf32, #tpu.memory_space<vmem>>, %arg16: memref<7x1x8xf32, #tpu.memory_space<vmem>>, %arg17: memref<32x56xf32, #tpu.memory_space<vmem>>, %arg18: memref<1x56xf32, #tpu.memory_space<vmem>>, %arg19: memref<32x56xf32, #tpu.memory_space<vmem>>, %arg20: memref<7x1x8xf32, #tpu.memory_space<vmem>>, %arg21: memref<7x1x8xf32, #tpu.memory_space<vmem>>, %arg22: memref<1x4xf32, #tpu.memory_space<smem>>, %arg23: memref<1x4xf32, #tpu.memory_space<smem>>, %arg24: memref<16x32xf32, #tpu.memory_space<vmem>>, %arg25: memref<16x32xf32, #tpu.memory_space<vmem>>) attributes {dimension_semantics = [], scalar_prefetch = 0 : i64, scratch_operands = 0 : i64, tpu.core_type = #tpu.core_type<tc>} {
    %c0 = arith.constant 0 : index
    %c0_0 = arith.constant 0 : index
    %0 = vector.load %arg0[%c0, %c0_0] : memref<16x16xf32, #tpu.memory_space<vmem>>, vector<16x16xf32>
    %c0_1 = arith.constant 0 : index
    %c0_2 = arith.constant 0 : index
    %1 = vector.load %arg1[%c0_1, %c0_2] : memref<16x16xf32, #tpu.memory_space<vmem>>, vector<16x16xf32>
    %c0_3 = arith.constant 0 : index
    %c0_4 = arith.constant 0 : index
    %2 = vector.load %arg2[%c0_3, %c0_4] : memref<16x32xf32, #tpu.memory_space<vmem>>, vector<16x32xf32>
    %c0_5 = arith.constant 0 : index
    %c0_6 = arith.constant 0 : index
    %3 = vector.load %arg3[%c0_5, %c0_6] : memref<16x32xf32, #tpu.memory_space<vmem>>, vector<16x32xf32>
    %c0_7 = arith.constant 0 : index
    %c0_8 = arith.constant 0 : index
    %4 = vector.load %arg4[%c0_7, %c0_8] : memref<32x32xf32, #tpu.memory_space<vmem>>, vector<32x32xf32>
    %c0_9 = arith.constant 0 : index
    %c0_10 = arith.constant 0 : index
    %5 = vector.load %arg5[%c0_9, %c0_10] : memref<1x32xf32, #tpu.memory_space<vmem>>, vector<1x32xf32>
    %c0_11 = arith.constant 0 : index
    %c0_12 = arith.constant 0 : index
    %6 = vector.load %arg6[%c0_11, %c0_12] : memref<1x32xf32, #tpu.memory_space<vmem>>, vector<1x32xf32>
    %cst = arith.constant dense<0.000000e+00> : vector<16x32xf32>
    %7 = tpu.matmul %0, %3, %cst {dimension_numbers = #tpu.dot_dimension_numbers<[1], [0], [0], [1], [0, 0, 1, 1], [], []>} : vector<16x16xf32>, vector<16x32xf32>, vector<16x32xf32> -> vector<16x32xf32>
    %cst_13 = arith.constant dense<0.000000e+00> : vector<16x32xf32>
    %8 = tpu.matmul %7, %4, %cst_13 {dimension_numbers = #tpu.dot_dimension_numbers<[1], [0], [0], [1], [0, 0, 1, 1], [], []>} : vector<16x32xf32>, vector<32x32xf32>, vector<16x32xf32> -> vector<16x32xf32>
    %9 = vector.broadcast %5 : vector<1x32xf32> to vector<16x32xf32>
    %10 = arith.addf %8, %9 : vector<16x32xf32>
    %cst_14 = arith.constant 0.000000e+00 : f32
    %11 = vector.broadcast %cst_14 : f32 to vector<16x32xf32>
    %12 = arith.cmpf ogt, %10, %11 : vector<16x32xf32>
    %cst_15 = arith.constant 2.000000e-01 : f32
    %13 = vector.broadcast %cst_15 : f32 to vector<16x32xf32>
    %14 = arith.mulf %13, %10 : vector<16x32xf32>
    %15 = arith.select %12, %10, %14 : vector<16x32xi1>, vector<16x32xf32>
    %cst_16 = arith.constant dense<0.000000e+00> : vector<16x32xf32>
    %16 = tpu.matmul %1, %2, %cst_16 {dimension_numbers = #tpu.dot_dimension_numbers<[1], [0], [0], [1], [0, 0, 1, 1], [], []>} : vector<16x16xf32>, vector<16x32xf32>, vector<16x32xf32> -> vector<16x32xf32>
    %cst_17 = arith.constant dense<0.000000e+00> : vector<16x32xf32>
    %17 = tpu.matmul %16, %4, %cst_17 {dimension_numbers = #tpu.dot_dimension_numbers<[1], [0], [0], [1], [0, 0, 1, 1], [], []>} : vector<16x32xf32>, vector<32x32xf32>, vector<16x32xf32> -> vector<16x32xf32>
    %18 = vector.broadcast %6 : vector<1x32xf32> to vector<16x32xf32>
    %19 = arith.addf %17, %18 : vector<16x32xf32>
    %cst_18 = arith.constant 0.000000e+00 : f32
    %20 = vector.broadcast %cst_18 : f32 to vector<16x32xf32>
    %21 = arith.cmpf ogt, %19, %20 : vector<16x32xf32>
    %cst_19 = arith.constant 2.000000e-01 : f32
    %22 = vector.broadcast %cst_19 : f32 to vector<16x32xf32>
    %23 = arith.mulf %22, %19 : vector<16x32xf32>
    %24 = arith.select %21, %19, %23 : vector<16x32xi1>, vector<16x32xf32>
    %cst_20 = arith.constant dense<0.000000e+00> : vector<16x32xf32>
    %25 = tpu.matmul %0, %24, %cst_20 {dimension_numbers = #tpu.dot_dimension_numbers<[1], [0], [0], [1], [0, 0, 1, 1], [], []>} : vector<16x16xf32>, vector<16x32xf32>, vector<16x32xf32> -> vector<16x32xf32>
    %cst_21 = arith.constant dense<0.000000e+00> : vector<16x32xf32>
    %26 = tpu.matmul %25, %4, %cst_21 {dimension_numbers = #tpu.dot_dimension_numbers<[1], [0], [0], [1], [0, 0, 1, 1], [], []>} : vector<16x32xf32>, vector<32x32xf32>, vector<16x32xf32> -> vector<16x32xf32>
    %27 = vector.broadcast %5 : vector<1x32xf32> to vector<16x32xf32>
    %28 = arith.addf %26, %27 : vector<16x32xf32>
    %cst_22 = arith.constant 0.000000e+00 : f32
    %29 = vector.broadcast %cst_22 : f32 to vector<16x32xf32>
    %30 = arith.cmpf ogt, %28, %29 : vector<16x32xf32>
    %cst_23 = arith.constant 2.000000e-01 : f32
    %31 = vector.broadcast %cst_23 : f32 to vector<16x32xf32>
    %32 = arith.mulf %31, %28 : vector<16x32xf32>
    %33 = arith.select %30, %28, %32 : vector<16x32xi1>, vector<16x32xf32>
    %cst_24 = arith.constant dense<0.000000e+00> : vector<16x32xf32>
    %34 = tpu.matmul %1, %15, %cst_24 {dimension_numbers = #tpu.dot_dimension_numbers<[1], [0], [0], [1], [0, 0, 1, 1], [], []>} : vector<16x16xf32>, vector<16x32xf32>, vector<16x32xf32> -> vector<16x32xf32>
    %cst_25 = arith.constant dense<0.000000e+00> : vector<16x32xf32>
    %35 = tpu.matmul %34, %4, %cst_25 {dimension_numbers = #tpu.dot_dimension_numbers<[1], [0], [0], [1], [0, 0, 1, 1], [], []>} : vector<16x32xf32>, vector<32x32xf32>, vector<16x32xf32> -> vector<16x32xf32>
    %36 = vector.broadcast %6 : vector<1x32xf32> to vector<16x32xf32>
    %37 = arith.addf %35, %36 : vector<16x32xf32>
    %cst_26 = arith.constant 0.000000e+00 : f32
    %38 = vector.broadcast %cst_26 : f32 to vector<16x32xf32>
    %39 = arith.cmpf ogt, %37, %38 : vector<16x32xf32>
    %cst_27 = arith.constant 2.000000e-01 : f32
    %40 = vector.broadcast %cst_27 : f32 to vector<16x32xf32>
    %41 = arith.mulf %40, %37 : vector<16x32xf32>
    %42 = arith.select %39, %37, %41 : vector<16x32xi1>, vector<16x32xf32>
    %c0_28 = arith.constant 0 : index
    %c0_29 = arith.constant 0 : index
    %43 = vector.load %arg7[%c0_28, %c0_29] : memref<16x8xf32, #tpu.memory_space<vmem>>, vector<16x8xf32>
    %c0_30 = arith.constant 0 : index
    %c0_31 = arith.constant 0 : index
    %44 = vector.load %arg8[%c0_30, %c0_31] : memref<16x8xf32, #tpu.memory_space<vmem>>, vector<16x8xf32>
    %c0_32 = arith.constant 0 : index
    %c0_33 = arith.constant 0 : index
    %45 = vector.load %arg9[%c0_32, %c0_33] : memref<16x8xf32, #tpu.memory_space<vmem>>, vector<16x8xf32>
    %c0_34 = arith.constant 0 : index
    %c0_35 = arith.constant 0 : index
    %46 = vector.load %arg10[%c0_34, %c0_35] : memref<16x8xf32, #tpu.memory_space<vmem>>, vector<16x8xf32>
    %c0_36 = arith.constant 0 : index
    %c0_37 = arith.constant 0 : index
    %47 = vector.load %arg11[%c0_36, %c0_37] : memref<16x8xf32, #tpu.memory_space<vmem>>, vector<16x8xf32>
    %c0_38 = arith.constant 0 : index
    %c0_39 = arith.constant 0 : index
    %48 = vector.load %arg12[%c0_38, %c0_39] : memref<32x56xf32, #tpu.memory_space<vmem>>, vector<32x56xf32>
    %c0_40 = arith.constant 0 : index
    %c0_41 = arith.constant 0 : index
    %49 = vector.load %arg13[%c0_40, %c0_41] : memref<1x56xf32, #tpu.memory_space<vmem>>, vector<1x56xf32>
    %c0_42 = arith.constant 0 : index
    %c0_43 = arith.constant 0 : index
    %50 = vector.load %arg14[%c0_42, %c0_43] : memref<32x56xf32, #tpu.memory_space<vmem>>, vector<32x56xf32>
    %51 = arith.truncf %0 : vector<16x16xf32> to vector<16x16xbf16>
    %52 = arith.truncf %3 : vector<16x32xf32> to vector<16x32xbf16>
    %cst_44 = arith.constant dense<0.000000e+00> : vector<16xf32>
    %53 = vector.multi_reduction <add>, %0, %cst_44 [0] : vector<16x16xf32> to vector<16xf32>
    %54 = vector.shape_cast %53 : vector<16xf32> to vector<1x16xf32>
    %cst_45 = arith.constant dense<0.000000e+00> : vector<8xf32>
    %55 = vector.multi_reduction <add>, %43, %cst_45 [0] : vector<16x8xf32> to vector<8xf32>
    %56 = vector.shape_cast %55 : vector<8xf32> to vector<1x8xf32>
    %cst_46 = arith.constant dense<0.000000e+00> : vector<8xf32>
    %57 = vector.multi_reduction <add>, %44, %cst_46 [0] : vector<16x8xf32> to vector<8xf32>
    %58 = vector.shape_cast %57 : vector<8xf32> to vector<1x8xf32>
    %cst_47 = arith.constant dense<0.000000e+00> : vector<1x8xf32>
    %59 = tpu.matmul %54, %45, %cst_47 {dimension_numbers = #tpu.dot_dimension_numbers<[1], [0], [0], [1], [0, 0, 1, 1], [], []>} : vector<1x16xf32>, vector<16x8xf32>, vector<1x8xf32> -> vector<1x8xf32>
    %cst_48 = arith.constant dense<0.000000e+00> : vector<1x8xf32>
    %60 = tpu.matmul %54, %46, %cst_48 {dimension_numbers = #tpu.dot_dimension_numbers<[1], [0], [0], [1], [0, 0, 1, 1], [], []>} : vector<1x16xf32>, vector<16x8xf32>, vector<1x8xf32> -> vector<1x8xf32>
    %cst_49 = arith.constant dense<0.000000e+00> : vector<1x8xf32>
    %61 = tpu.matmul %54, %47, %cst_49 {dimension_numbers = #tpu.dot_dimension_numbers<[1], [0], [0], [1], [0, 0, 1, 1], [], []>} : vector<1x16xf32>, vector<16x8xf32>, vector<1x8xf32> -> vector<1x8xf32>
    %62 = vector.shape_cast %56 : vector<1x8xf32> to vector<1x8xf32>
    %63 = vector.broadcast %62 : vector<1x8xf32> to vector<16x8xf32>
    %64 = vector.shape_cast %59 : vector<1x8xf32> to vector<1x8xf32>
    %65 = vector.broadcast %64 : vector<1x8xf32> to vector<16x8xf32>
    %66 = vector.shape_cast %58 : vector<1x8xf32> to vector<1x8xf32>
    %67 = vector.broadcast %66 : vector<1x8xf32> to vector<16x8xf32>
    %68 = vector.shape_cast %60 : vector<1x8xf32> to vector<1x8xf32>
    %69 = vector.broadcast %68 : vector<1x8xf32> to vector<16x8xf32>
    %70 = vector.shape_cast %61 : vector<1x8xf32> to vector<1x8xf32>
    %71 = vector.broadcast %70 : vector<1x8xf32> to vector<16x8xf32>
    %72 = tpu.concatenate %63, %65, %67, %69, %71 in 0 : vector<16x8xf32>, vector<16x8xf32>, vector<16x8xf32>, vector<16x8xf32>, vector<16x8xf32> -> vector<80x8xf32>
    %73 = tpu.concatenate %45, %46, %47 in 0 : vector<16x8xf32>, vector<16x8xf32>, vector<16x8xf32> -> vector<48x8xf32>
    %cst_50 = arith.constant dense<0.000000e+00> : vector<80x48xf32>
    %74 = tpu.matmul %72, %73, %cst_50 {dimension_numbers = #tpu.dot_dimension_numbers<[1], [1], [0], [0], [0, 0, 1, 0], [], []>} : vector<80x8xf32>, vector<48x8xf32>, vector<80x48xf32> -> vector<80x48xf32>
    %75 = vector.extract_strided_slice %74 {offsets = [0, 0], sizes = [16, 16], strides = [1, 1]} : vector<80x48xf32> to vector<16x16xf32>
    %76 = vector.extract_strided_slice %74 {offsets = [16, 0], sizes = [16, 16], strides = [1, 1]} : vector<80x48xf32> to vector<16x16xf32>
    %77 = vector.extract_strided_slice %74 {offsets = [32, 16], sizes = [16, 16], strides = [1, 1]} : vector<80x48xf32> to vector<16x16xf32>
    %78 = vector.extract_strided_slice %74 {offsets = [48, 0], sizes = [16, 16], strides = [1, 1]} : vector<80x48xf32> to vector<16x16xf32>
    %79 = vector.extract_strided_slice %74 {offsets = [64, 32], sizes = [16, 16], strides = [1, 1]} : vector<80x48xf32> to vector<16x16xf32>
    %80 = tpu.iota {dimensions = array<i32: 0>} : vector<16x16xi32>
    %81 = tpu.iota {dimensions = array<i32: 1>} : vector<16x16xi32>
    %82 = arith.cmpi eq, %80, %81 : vector<16x16xi32>
    %83 = arith.truncf %43 : vector<16x8xf32> to vector<16x8xbf16>
    %cst_51 = arith.constant dense<0.000000e+00> : vector<16x16xf32>
    %84 = tpu.matmul %83, %83, %cst_51 {dimension_numbers = #tpu.dot_dimension_numbers<[1], [1], [0], [0], [0, 0, 1, 0], [], []>} : vector<16x8xbf16>, vector<16x8xbf16>, vector<16x16xf32> -> vector<16x16xf32>
    %cst_52 = arith.constant 0.000000e+00 : f32
    %85 = vector.broadcast %cst_52 : f32 to vector<16x16xf32>
    %86 = arith.select %82, %85, %84 : vector<16x16xi1>, vector<16x16xf32>
    %87 = arith.truncf %86 : vector<16x16xf32> to vector<16x16xbf16>
    %88 = arith.truncf %44 : vector<16x8xf32> to vector<16x8xbf16>
    %cst_53 = arith.constant dense<0.000000e+00> : vector<16x16xf32>
    %89 = tpu.matmul %88, %88, %cst_53 {dimension_numbers = #tpu.dot_dimension_numbers<[1], [1], [0], [0], [0, 0, 1, 0], [], []>} : vector<16x8xbf16>, vector<16x8xbf16>, vector<16x16xf32> -> vector<16x16xf32>
    %cst_54 = arith.constant 0.000000e+00 : f32
    %90 = vector.broadcast %cst_54 : f32 to vector<16x16xf32>
    %91 = arith.select %82, %90, %89 : vector<16x16xi1>, vector<16x16xf32>
    %92 = arith.truncf %91 : vector<16x16xf32> to vector<16x16xbf16>
    %93 = tpu.concatenate %87, %92 in 0 : vector<16x16xbf16>, vector<16x16xbf16> -> vector<32x16xbf16>
    %cst_55 = arith.constant dense<0.000000e+00> : vector<32x16xf32>
    %94 = tpu.matmul %93, %51, %cst_55 {dimension_numbers = #tpu.dot_dimension_numbers<[1], [0], [0], [1], [0, 0, 1, 1], [], []>} : vector<32x16xbf16>, vector<16x16xbf16>, vector<32x16xf32> -> vector<32x16xf32>
    %95 = vector.extract_strided_slice %94 {offsets = [0, 0], sizes = [16, 16], strides = [1, 1]} : vector<32x16xf32> to vector<16x16xf32>
    %96 = vector.extract_strided_slice %94 {offsets = [16, 0], sizes = [16, 16], strides = [1, 1]} : vector<32x16xf32> to vector<16x16xf32>
    %97 = tpu.concatenate %75, %76, %95, %77, %78, %96, %79 in 0 : vector<16x16xf32>, vector<16x16xf32>, vector<16x16xf32>, vector<16x16xf32>, vector<16x16xf32>, vector<16x16xf32>, vector<16x16xf32> -> vector<112x16xf32>
    %cst_56 = arith.constant 0.000000e+00 : f32
    %98 = vector.broadcast %cst_56 : f32 to vector<112x16xf32>
    %99 = arith.cmpf ogt, %97, %98 : vector<112x16xf32>
    %100 = arith.extui %99 : vector<112x16xi1> to vector<112x16xi32>
    %101 = arith.sitofp %100 : vector<112x16xi32> to vector<112x16xf32>
    %102 = arith.truncf %101 : vector<112x16xf32> to vector<112x16xbf16>
    %103 = arith.extui %99 : vector<112x16xi1> to vector<112x16xi32>
    %cst_57 = arith.constant dense<0> : vector<112xi32>
    %104 = vector.multi_reduction <add>, %103, %cst_57 [1] : vector<112x16xi32> to vector<112xi32>
    %105 = vector.shape_cast %104 : vector<112xi32> to vector<112x1xi32>
    %106 = arith.sitofp %105 : vector<112x1xi32> to vector<112x1xf32>
    %cst_58 = arith.constant 1.000000e+00 : f32
    %107 = vector.broadcast %cst_58 : f32 to vector<112x1xf32>
    %108 = arith.maximumf %106, %107 : vector<112x1xf32>
    %cst_59 = arith.constant dense<0.000000e+00> : vector<112x32xf32>
    %109 = tpu.matmul %102, %52, %cst_59 {dimension_numbers = #tpu.dot_dimension_numbers<[1], [0], [0], [1], [0, 0, 1, 1], [], []>} : vector<112x16xbf16>, vector<16x32xbf16>, vector<112x32xf32> -> vector<112x32xf32>
    %cst_60 = arith.constant 1.000000e+00 : f32
    %110 = vector.broadcast %cst_60 : f32 to vector<112x1xf32>
    %111 = arith.divf %110, %108 : vector<112x1xf32>
    %112 = vector.broadcast %111 : vector<112x1xf32> to vector<112x32xf32>
    %113 = arith.mulf %109, %112 : vector<112x32xf32>
    %cst_61 = arith.constant dense<0.000000e+00> : vector<112x56xf32>
    %114 = tpu.matmul %113, %48, %cst_61 {dimension_numbers = #tpu.dot_dimension_numbers<[1], [0], [0], [1], [0, 0, 1, 1], [], []>} : vector<112x32xf32>, vector<32x56xf32>, vector<112x56xf32> -> vector<112x56xf32>
    %115 = vector.broadcast %49 : vector<1x56xf32> to vector<112x56xf32>
    %116 = arith.addf %114, %115 : vector<112x56xf32>
    %117 = math.tanh %116 : vector<112x56xf32>
    %cst_62 = arith.constant dense<0.000000e+00> : vector<16x56xf32>
    %118 = tpu.matmul %2, %50, %cst_62 {dimension_numbers = #tpu.dot_dimension_numbers<[1], [0], [0], [1], [0, 0, 1, 1], [], []>} : vector<16x32xf32>, vector<32x56xf32>, vector<16x56xf32> -> vector<16x56xf32>
    %119 = math.tanh %118 : vector<16x56xf32>
    %c0_63 = arith.constant 0 : index
    %c0_64 = arith.constant 0 : index
    %120 = memref.load %arg22[%c0_63, %c0_64] : memref<1x4xf32, #tpu.memory_space<smem>>
    %121 = vector.broadcast %120 : f32 to vector<16x32xf32>
    %122 = arith.mulf %33, %121 : vector<16x32xf32>
    %123 = vector.extract_strided_slice %113 {offsets = [0, 0], sizes = [16, 32], strides = [1, 1]} : vector<112x32xf32> to vector<16x32xf32>
    %124 = vector.extract_strided_slice %117 {offsets = [0, 0], sizes = [16, 8], strides = [1, 1]} : vector<112x56xf32> to vector<16x8xf32>
    %125 = vector.extract_strided_slice %119 {offsets = [0, 0], sizes = [16, 8], strides = [1, 1]} : vector<16x56xf32> to vector<16x8xf32>
    %126 = arith.addf %124, %125 : vector<16x8xf32>
    %c0_65 = arith.constant 0 : index
    %c0_66 = arith.constant 0 : index
    %c0_67 = arith.constant 0 : index
    %127 = vector.load %arg15[%c0_65, %c0_66, %c0_67] : memref<7x1x8xf32, #tpu.memory_space<vmem>>, vector<1x1x8xf32>
    %128 = vector.shape_cast %127 : vector<1x1x8xf32> to vector<1x8xf32>
    %129 = vector.broadcast %128 : vector<1x8xf32> to vector<16x8xf32>
    %130 = arith.mulf %126, %129 : vector<16x8xf32>
    %cst_68 = arith.constant dense<0.000000e+00> : vector<16xf32>
    %131 = vector.multi_reduction <add>, %130, %cst_68 [1] : vector<16x8xf32> to vector<16xf32>
    %132 = vector.shape_cast %131 : vector<16xf32> to vector<16x1xf32>
    %133 = arith.negf %132 : vector<16x1xf32>
    %134 = math.exp %133 : vector<16x1xf32>
    %cst_69 = arith.constant 1.000000e+00 : f32
    %135 = vector.broadcast %cst_69 : f32 to vector<16x1xf32>
    %136 = arith.addf %135, %134 : vector<16x1xf32>
    %137 = arith.divf %135, %136 : vector<16x1xf32>
    %138 = vector.broadcast %137 : vector<16x1xf32> to vector<16x32xf32>
    %139 = arith.mulf %138, %123 : vector<16x32xf32>
    %c0_70 = arith.constant 0 : index
    %c0_71 = arith.constant 0 : index
    %c0_72 = arith.constant 0 : index
    %140 = vector.load %arg16[%c0_70, %c0_71, %c0_72] : memref<7x1x8xf32, #tpu.memory_space<vmem>>, vector<1x1x8xf32>
    %141 = vector.shape_cast %140 : vector<1x1x8xf32> to vector<1x8xf32>
    %142 = vector.broadcast %141 : vector<1x8xf32> to vector<16x8xf32>
    %143 = arith.mulf %124, %142 : vector<16x8xf32>
    %cst_73 = arith.constant dense<0.000000e+00> : vector<16xf32>
    %144 = vector.multi_reduction <add>, %143, %cst_73 [1] : vector<16x8xf32> to vector<16xf32>
    %145 = vector.shape_cast %144 : vector<16xf32> to vector<16x1xf32>
    %cst_74 = arith.constant dense<0.000000e+00> : vector<1xf32>
    %146 = vector.multi_reduction <add>, %145, %cst_74 [0] : vector<16x1xf32> to vector<1xf32>
    %147 = vector.shape_cast %146 : vector<1xf32> to vector<1x1xf32>
    %cst_75 = arith.constant 1.600000e+01 : f32
    %148 = vector.broadcast %cst_75 : f32 to vector<1x1xf32>
    %149 = arith.divf %147, %148 : vector<1x1xf32>
    %150 = vector.extract_strided_slice %113 {offsets = [16, 0], sizes = [16, 32], strides = [1, 1]} : vector<112x32xf32> to vector<16x32xf32>
    %151 = vector.extract_strided_slice %117 {offsets = [16, 8], sizes = [16, 8], strides = [1, 1]} : vector<112x56xf32> to vector<16x8xf32>
    %152 = vector.extract_strided_slice %119 {offsets = [0, 8], sizes = [16, 8], strides = [1, 1]} : vector<16x56xf32> to vector<16x8xf32>
    %153 = arith.addf %151, %152 : vector<16x8xf32>
    %c1 = arith.constant 1 : index
    %c0_76 = arith.constant 0 : index
    %c0_77 = arith.constant 0 : index
    %154 = vector.load %arg15[%c1, %c0_76, %c0_77] : memref<7x1x8xf32, #tpu.memory_space<vmem>>, vector<1x1x8xf32>
    %155 = vector.shape_cast %154 : vector<1x1x8xf32> to vector<1x8xf32>
    %156 = vector.broadcast %155 : vector<1x8xf32> to vector<16x8xf32>
    %157 = arith.mulf %153, %156 : vector<16x8xf32>
    %cst_78 = arith.constant dense<0.000000e+00> : vector<16xf32>
    %158 = vector.multi_reduction <add>, %157, %cst_78 [1] : vector<16x8xf32> to vector<16xf32>
    %159 = vector.shape_cast %158 : vector<16xf32> to vector<16x1xf32>
    %160 = arith.negf %159 : vector<16x1xf32>
    %161 = math.exp %160 : vector<16x1xf32>
    %cst_79 = arith.constant 1.000000e+00 : f32
    %162 = vector.broadcast %cst_79 : f32 to vector<16x1xf32>
    %163 = arith.addf %162, %161 : vector<16x1xf32>
    %164 = arith.divf %162, %163 : vector<16x1xf32>
    %165 = vector.broadcast %164 : vector<16x1xf32> to vector<16x32xf32>
    %166 = arith.mulf %165, %150 : vector<16x32xf32>
    %c1_80 = arith.constant 1 : index
    %c0_81 = arith.constant 0 : index
    %c0_82 = arith.constant 0 : index
    %167 = vector.load %arg16[%c1_80, %c0_81, %c0_82] : memref<7x1x8xf32, #tpu.memory_space<vmem>>, vector<1x1x8xf32>
    %168 = vector.shape_cast %167 : vector<1x1x8xf32> to vector<1x8xf32>
    %169 = vector.broadcast %168 : vector<1x8xf32> to vector<16x8xf32>
    %170 = arith.mulf %151, %169 : vector<16x8xf32>
    %cst_83 = arith.constant dense<0.000000e+00> : vector<16xf32>
    %171 = vector.multi_reduction <add>, %170, %cst_83 [1] : vector<16x8xf32> to vector<16xf32>
    %172 = vector.shape_cast %171 : vector<16xf32> to vector<16x1xf32>
    %cst_84 = arith.constant dense<0.000000e+00> : vector<1xf32>
    %173 = vector.multi_reduction <add>, %172, %cst_84 [0] : vector<16x1xf32> to vector<1xf32>
    %174 = vector.shape_cast %173 : vector<1xf32> to vector<1x1xf32>
    %cst_85 = arith.constant 1.600000e+01 : f32
    %175 = vector.broadcast %cst_85 : f32 to vector<1x1xf32>
    %176 = arith.divf %174, %175 : vector<1x1xf32>
    %177 = vector.extract_strided_slice %113 {offsets = [32, 0], sizes = [16, 32], strides = [1, 1]} : vector<112x32xf32> to vector<16x32xf32>
    %178 = vector.extract_strided_slice %117 {offsets = [32, 16], sizes = [16, 8], strides = [1, 1]} : vector<112x56xf32> to vector<16x8xf32>
    %179 = vector.extract_strided_slice %119 {offsets = [0, 16], sizes = [16, 8], strides = [1, 1]} : vector<16x56xf32> to vector<16x8xf32>
    %180 = arith.addf %178, %179 : vector<16x8xf32>
    %c2 = arith.constant 2 : index
    %c0_86 = arith.constant 0 : index
    %c0_87 = arith.constant 0 : index
    %181 = vector.load %arg15[%c2, %c0_86, %c0_87] : memref<7x1x8xf32, #tpu.memory_space<vmem>>, vector<1x1x8xf32>
    %182 = vector.shape_cast %181 : vector<1x1x8xf32> to vector<1x8xf32>
    %183 = vector.broadcast %182 : vector<1x8xf32> to vector<16x8xf32>
    %184 = arith.mulf %180, %183 : vector<16x8xf32>
    %cst_88 = arith.constant dense<0.000000e+00> : vector<16xf32>
    %185 = vector.multi_reduction <add>, %184, %cst_88 [1] : vector<16x8xf32> to vector<16xf32>
    %186 = vector.shape_cast %185 : vector<16xf32> to vector<16x1xf32>
    %187 = arith.negf %186 : vector<16x1xf32>
    %188 = math.exp %187 : vector<16x1xf32>
    %cst_89 = arith.constant 1.000000e+00 : f32
    %189 = vector.broadcast %cst_89 : f32 to vector<16x1xf32>
    %190 = arith.addf %189, %188 : vector<16x1xf32>
    %191 = arith.divf %189, %190 : vector<16x1xf32>
    %192 = vector.broadcast %191 : vector<16x1xf32> to vector<16x32xf32>
    %193 = arith.mulf %192, %177 : vector<16x32xf32>
    %c2_90 = arith.constant 2 : index
    %c0_91 = arith.constant 0 : index
    %c0_92 = arith.constant 0 : index
    %194 = vector.load %arg16[%c2_90, %c0_91, %c0_92] : memref<7x1x8xf32, #tpu.memory_space<vmem>>, vector<1x1x8xf32>
    %195 = vector.shape_cast %194 : vector<1x1x8xf32> to vector<1x8xf32>
    %196 = vector.broadcast %195 : vector<1x8xf32> to vector<16x8xf32>
    %197 = arith.mulf %178, %196 : vector<16x8xf32>
    %cst_93 = arith.constant dense<0.000000e+00> : vector<16xf32>
    %198 = vector.multi_reduction <add>, %197, %cst_93 [1] : vector<16x8xf32> to vector<16xf32>
    %199 = vector.shape_cast %198 : vector<16xf32> to vector<16x1xf32>
    %cst_94 = arith.constant dense<0.000000e+00> : vector<1xf32>
    %200 = vector.multi_reduction <add>, %199, %cst_94 [0] : vector<16x1xf32> to vector<1xf32>
    %201 = vector.shape_cast %200 : vector<1xf32> to vector<1x1xf32>
    %cst_95 = arith.constant 1.600000e+01 : f32
    %202 = vector.broadcast %cst_95 : f32 to vector<1x1xf32>
    %203 = arith.divf %201, %202 : vector<1x1xf32>
    %204 = arith.maximumf %149, %176 : vector<1x1xf32>
    %205 = arith.maximumf %204, %203 : vector<1x1xf32>
    %206 = arith.subf %149, %205 : vector<1x1xf32>
    %207 = math.exp %206 : vector<1x1xf32>
    %208 = arith.subf %176, %205 : vector<1x1xf32>
    %209 = math.exp %208 : vector<1x1xf32>
    %210 = arith.subf %203, %205 : vector<1x1xf32>
    %211 = math.exp %210 : vector<1x1xf32>
    %212 = arith.addf %207, %209 : vector<1x1xf32>
    %213 = arith.addf %212, %211 : vector<1x1xf32>
    %cst_96 = arith.constant 1.000000e+00 : f32
    %214 = vector.broadcast %cst_96 : f32 to vector<1x1xf32>
    %215 = arith.divf %214, %213 : vector<1x1xf32>
    %216 = arith.mulf %207, %215 : vector<1x1xf32>
    %217 = vector.broadcast %216 : vector<1x1xf32> to vector<16x32xf32>
    %218 = arith.mulf %139, %217 : vector<16x32xf32>
    %219 = arith.mulf %209, %215 : vector<1x1xf32>
    %220 = vector.broadcast %219 : vector<1x1xf32> to vector<16x32xf32>
    %221 = arith.mulf %166, %220 : vector<16x32xf32>
    %222 = arith.addf %218, %221 : vector<16x32xf32>
    %223 = arith.mulf %211, %215 : vector<1x1xf32>
    %224 = vector.broadcast %223 : vector<1x1xf32> to vector<16x32xf32>
    %225 = arith.mulf %193, %224 : vector<16x32xf32>
    %226 = arith.addf %222, %225 : vector<16x32xf32>
    %c0_97 = arith.constant 0 : index
    %c1_98 = arith.constant 1 : index
    %227 = memref.load %arg22[%c0_97, %c1_98] : memref<1x4xf32, #tpu.memory_space<smem>>
    %228 = vector.broadcast %227 : f32 to vector<16x32xf32>
    %229 = arith.mulf %226, %228 : vector<16x32xf32>
    %230 = arith.addf %122, %229 : vector<16x32xf32>
    %231 = vector.extract_strided_slice %113 {offsets = [48, 0], sizes = [16, 32], strides = [1, 1]} : vector<112x32xf32> to vector<16x32xf32>
    %232 = vector.extract_strided_slice %117 {offsets = [48, 24], sizes = [16, 8], strides = [1, 1]} : vector<112x56xf32> to vector<16x8xf32>
    %233 = vector.extract_strided_slice %119 {offsets = [0, 24], sizes = [16, 8], strides = [1, 1]} : vector<16x56xf32> to vector<16x8xf32>
    %234 = arith.addf %232, %233 : vector<16x8xf32>
    %c3 = arith.constant 3 : index
    %c0_99 = arith.constant 0 : index
    %c0_100 = arith.constant 0 : index
    %235 = vector.load %arg15[%c3, %c0_99, %c0_100] : memref<7x1x8xf32, #tpu.memory_space<vmem>>, vector<1x1x8xf32>
    %236 = vector.shape_cast %235 : vector<1x1x8xf32> to vector<1x8xf32>
    %237 = vector.broadcast %236 : vector<1x8xf32> to vector<16x8xf32>
    %238 = arith.mulf %234, %237 : vector<16x8xf32>
    %cst_101 = arith.constant dense<0.000000e+00> : vector<16xf32>
    %239 = vector.multi_reduction <add>, %238, %cst_101 [1] : vector<16x8xf32> to vector<16xf32>
    %240 = vector.shape_cast %239 : vector<16xf32> to vector<16x1xf32>
    %241 = arith.negf %240 : vector<16x1xf32>
    %242 = math.exp %241 : vector<16x1xf32>
    %cst_102 = arith.constant 1.000000e+00 : f32
    %243 = vector.broadcast %cst_102 : f32 to vector<16x1xf32>
    %244 = arith.addf %243, %242 : vector<16x1xf32>
    %245 = arith.divf %243, %244 : vector<16x1xf32>
    %246 = vector.broadcast %245 : vector<16x1xf32> to vector<16x32xf32>
    %247 = arith.mulf %246, %231 : vector<16x32xf32>
    %c3_103 = arith.constant 3 : index
    %c0_104 = arith.constant 0 : index
    %c0_105 = arith.constant 0 : index
    %248 = vector.load %arg16[%c3_103, %c0_104, %c0_105] : memref<7x1x8xf32, #tpu.memory_space<vmem>>, vector<1x1x8xf32>
    %249 = vector.shape_cast %248 : vector<1x1x8xf32> to vector<1x8xf32>
    %250 = vector.broadcast %249 : vector<1x8xf32> to vector<16x8xf32>
    %251 = arith.mulf %232, %250 : vector<16x8xf32>
    %cst_106 = arith.constant dense<0.000000e+00> : vector<16xf32>
    %252 = vector.multi_reduction <add>, %251, %cst_106 [1] : vector<16x8xf32> to vector<16xf32>
    %253 = vector.shape_cast %252 : vector<16xf32> to vector<16x1xf32>
    %cst_107 = arith.constant dense<0.000000e+00> : vector<1xf32>
    %254 = vector.multi_reduction <add>, %253, %cst_107 [0] : vector<16x1xf32> to vector<1xf32>
    %255 = vector.shape_cast %254 : vector<1xf32> to vector<1x1xf32>
    %cst_108 = arith.constant 1.600000e+01 : f32
    %256 = vector.broadcast %cst_108 : f32 to vector<1x1xf32>
    %257 = arith.divf %255, %256 : vector<1x1xf32>
    %258 = vector.extract_strided_slice %113 {offsets = [64, 0], sizes = [16, 32], strides = [1, 1]} : vector<112x32xf32> to vector<16x32xf32>
    %259 = vector.extract_strided_slice %117 {offsets = [64, 32], sizes = [16, 8], strides = [1, 1]} : vector<112x56xf32> to vector<16x8xf32>
    %260 = vector.extract_strided_slice %119 {offsets = [0, 32], sizes = [16, 8], strides = [1, 1]} : vector<16x56xf32> to vector<16x8xf32>
    %261 = arith.addf %259, %260 : vector<16x8xf32>
    %c4 = arith.constant 4 : index
    %c0_109 = arith.constant 0 : index
    %c0_110 = arith.constant 0 : index
    %262 = vector.load %arg15[%c4, %c0_109, %c0_110] : memref<7x1x8xf32, #tpu.memory_space<vmem>>, vector<1x1x8xf32>
    %263 = vector.shape_cast %262 : vector<1x1x8xf32> to vector<1x8xf32>
    %264 = vector.broadcast %263 : vector<1x8xf32> to vector<16x8xf32>
    %265 = arith.mulf %261, %264 : vector<16x8xf32>
    %cst_111 = arith.constant dense<0.000000e+00> : vector<16xf32>
    %266 = vector.multi_reduction <add>, %265, %cst_111 [1] : vector<16x8xf32> to vector<16xf32>
    %267 = vector.shape_cast %266 : vector<16xf32> to vector<16x1xf32>
    %268 = arith.negf %267 : vector<16x1xf32>
    %269 = math.exp %268 : vector<16x1xf32>
    %cst_112 = arith.constant 1.000000e+00 : f32
    %270 = vector.broadcast %cst_112 : f32 to vector<16x1xf32>
    %271 = arith.addf %270, %269 : vector<16x1xf32>
    %272 = arith.divf %270, %271 : vector<16x1xf32>
    %273 = vector.broadcast %272 : vector<16x1xf32> to vector<16x32xf32>
    %274 = arith.mulf %273, %258 : vector<16x32xf32>
    %c4_113 = arith.constant 4 : index
    %c0_114 = arith.constant 0 : index
    %c0_115 = arith.constant 0 : index
    %275 = vector.load %arg16[%c4_113, %c0_114, %c0_115] : memref<7x1x8xf32, #tpu.memory_space<vmem>>, vector<1x1x8xf32>
    %276 = vector.shape_cast %275 : vector<1x1x8xf32> to vector<1x8xf32>
    %277 = vector.broadcast %276 : vector<1x8xf32> to vector<16x8xf32>
    %278 = arith.mulf %259, %277 : vector<16x8xf32>
    %cst_116 = arith.constant dense<0.000000e+00> : vector<16xf32>
    %279 = vector.multi_reduction <add>, %278, %cst_116 [1] : vector<16x8xf32> to vector<16xf32>
    %280 = vector.shape_cast %279 : vector<16xf32> to vector<16x1xf32>
    %cst_117 = arith.constant dense<0.000000e+00> : vector<1xf32>
    %281 = vector.multi_reduction <add>, %280, %cst_117 [0] : vector<16x1xf32> to vector<1xf32>
    %282 = vector.shape_cast %281 : vector<1xf32> to vector<1x1xf32>
    %cst_118 = arith.constant 1.600000e+01 : f32
    %283 = vector.broadcast %cst_118 : f32 to vector<1x1xf32>
    %284 = arith.divf %282, %283 : vector<1x1xf32>
    %285 = vector.extract_strided_slice %113 {offsets = [80, 0], sizes = [16, 32], strides = [1, 1]} : vector<112x32xf32> to vector<16x32xf32>
    %286 = vector.extract_strided_slice %117 {offsets = [80, 40], sizes = [16, 8], strides = [1, 1]} : vector<112x56xf32> to vector<16x8xf32>
    %287 = vector.extract_strided_slice %119 {offsets = [0, 40], sizes = [16, 8], strides = [1, 1]} : vector<16x56xf32> to vector<16x8xf32>
    %288 = arith.addf %286, %287 : vector<16x8xf32>
    %c5 = arith.constant 5 : index
    %c0_119 = arith.constant 0 : index
    %c0_120 = arith.constant 0 : index
    %289 = vector.load %arg15[%c5, %c0_119, %c0_120] : memref<7x1x8xf32, #tpu.memory_space<vmem>>, vector<1x1x8xf32>
    %290 = vector.shape_cast %289 : vector<1x1x8xf32> to vector<1x8xf32>
    %291 = vector.broadcast %290 : vector<1x8xf32> to vector<16x8xf32>
    %292 = arith.mulf %288, %291 : vector<16x8xf32>
    %cst_121 = arith.constant dense<0.000000e+00> : vector<16xf32>
    %293 = vector.multi_reduction <add>, %292, %cst_121 [1] : vector<16x8xf32> to vector<16xf32>
    %294 = vector.shape_cast %293 : vector<16xf32> to vector<16x1xf32>
    %295 = arith.negf %294 : vector<16x1xf32>
    %296 = math.exp %295 : vector<16x1xf32>
    %cst_122 = arith.constant 1.000000e+00 : f32
    %297 = vector.broadcast %cst_122 : f32 to vector<16x1xf32>
    %298 = arith.addf %297, %296 : vector<16x1xf32>
    %299 = arith.divf %297, %298 : vector<16x1xf32>
    %300 = vector.broadcast %299 : vector<16x1xf32> to vector<16x32xf32>
    %301 = arith.mulf %300, %285 : vector<16x32xf32>
    %c5_123 = arith.constant 5 : index
    %c0_124 = arith.constant 0 : index
    %c0_125 = arith.constant 0 : index
    %302 = vector.load %arg16[%c5_123, %c0_124, %c0_125] : memref<7x1x8xf32, #tpu.memory_space<vmem>>, vector<1x1x8xf32>
    %303 = vector.shape_cast %302 : vector<1x1x8xf32> to vector<1x8xf32>
    %304 = vector.broadcast %303 : vector<1x8xf32> to vector<16x8xf32>
    %305 = arith.mulf %286, %304 : vector<16x8xf32>
    %cst_126 = arith.constant dense<0.000000e+00> : vector<16xf32>
    %306 = vector.multi_reduction <add>, %305, %cst_126 [1] : vector<16x8xf32> to vector<16xf32>
    %307 = vector.shape_cast %306 : vector<16xf32> to vector<16x1xf32>
    %cst_127 = arith.constant dense<0.000000e+00> : vector<1xf32>
    %308 = vector.multi_reduction <add>, %307, %cst_127 [0] : vector<16x1xf32> to vector<1xf32>
    %309 = vector.shape_cast %308 : vector<1xf32> to vector<1x1xf32>
    %cst_128 = arith.constant 1.600000e+01 : f32
    %310 = vector.broadcast %cst_128 : f32 to vector<1x1xf32>
    %311 = arith.divf %309, %310 : vector<1x1xf32>
    %312 = arith.maximumf %257, %284 : vector<1x1xf32>
    %313 = arith.maximumf %312, %311 : vector<1x1xf32>
    %314 = arith.subf %257, %313 : vector<1x1xf32>
    %315 = math.exp %314 : vector<1x1xf32>
    %316 = arith.subf %284, %313 : vector<1x1xf32>
    %317 = math.exp %316 : vector<1x1xf32>
    %318 = arith.subf %311, %313 : vector<1x1xf32>
    %319 = math.exp %318 : vector<1x1xf32>
    %320 = arith.addf %315, %317 : vector<1x1xf32>
    %321 = arith.addf %320, %319 : vector<1x1xf32>
    %cst_129 = arith.constant 1.000000e+00 : f32
    %322 = vector.broadcast %cst_129 : f32 to vector<1x1xf32>
    %323 = arith.divf %322, %321 : vector<1x1xf32>
    %324 = arith.mulf %315, %323 : vector<1x1xf32>
    %325 = vector.broadcast %324 : vector<1x1xf32> to vector<16x32xf32>
    %326 = arith.mulf %247, %325 : vector<16x32xf32>
    %327 = arith.mulf %317, %323 : vector<1x1xf32>
    %328 = vector.broadcast %327 : vector<1x1xf32> to vector<16x32xf32>
    %329 = arith.mulf %274, %328 : vector<16x32xf32>
    %330 = arith.addf %326, %329 : vector<16x32xf32>
    %331 = arith.mulf %319, %323 : vector<1x1xf32>
    %332 = vector.broadcast %331 : vector<1x1xf32> to vector<16x32xf32>
    %333 = arith.mulf %301, %332 : vector<16x32xf32>
    %334 = arith.addf %330, %333 : vector<16x32xf32>
    %c0_130 = arith.constant 0 : index
    %c2_131 = arith.constant 2 : index
    %335 = memref.load %arg22[%c0_130, %c2_131] : memref<1x4xf32, #tpu.memory_space<smem>>
    %336 = vector.broadcast %335 : f32 to vector<16x32xf32>
    %337 = arith.mulf %334, %336 : vector<16x32xf32>
    %338 = arith.addf %230, %337 : vector<16x32xf32>
    %339 = vector.extract_strided_slice %113 {offsets = [96, 0], sizes = [16, 32], strides = [1, 1]} : vector<112x32xf32> to vector<16x32xf32>
    %340 = vector.extract_strided_slice %117 {offsets = [96, 48], sizes = [16, 8], strides = [1, 1]} : vector<112x56xf32> to vector<16x8xf32>
    %341 = vector.extract_strided_slice %119 {offsets = [0, 48], sizes = [16, 8], strides = [1, 1]} : vector<16x56xf32> to vector<16x8xf32>
    %342 = arith.addf %340, %341 : vector<16x8xf32>
    %c6 = arith.constant 6 : index
    %c0_132 = arith.constant 0 : index
    %c0_133 = arith.constant 0 : index
    %343 = vector.load %arg15[%c6, %c0_132, %c0_133] : memref<7x1x8xf32, #tpu.memory_space<vmem>>, vector<1x1x8xf32>
    %344 = vector.shape_cast %343 : vector<1x1x8xf32> to vector<1x8xf32>
    %345 = vector.broadcast %344 : vector<1x8xf32> to vector<16x8xf32>
    %346 = arith.mulf %342, %345 : vector<16x8xf32>
    %cst_134 = arith.constant dense<0.000000e+00> : vector<16xf32>
    %347 = vector.multi_reduction <add>, %346, %cst_134 [1] : vector<16x8xf32> to vector<16xf32>
    %348 = vector.shape_cast %347 : vector<16xf32> to vector<16x1xf32>
    %349 = arith.negf %348 : vector<16x1xf32>
    %350 = math.exp %349 : vector<16x1xf32>
    %cst_135 = arith.constant 1.000000e+00 : f32
    %351 = vector.broadcast %cst_135 : f32 to vector<16x1xf32>
    %352 = arith.addf %351, %350 : vector<16x1xf32>
    %353 = arith.divf %351, %352 : vector<16x1xf32>
    %354 = vector.broadcast %353 : vector<16x1xf32> to vector<16x32xf32>
    %355 = arith.mulf %354, %339 : vector<16x32xf32>
    %c0_136 = arith.constant 0 : index
    %c3_137 = arith.constant 3 : index
    %356 = memref.load %arg22[%c0_136, %c3_137] : memref<1x4xf32, #tpu.memory_space<smem>>
    %357 = vector.broadcast %356 : f32 to vector<16x32xf32>
    %358 = arith.mulf %355, %357 : vector<16x32xf32>
    %359 = arith.addf %338, %358 : vector<16x32xf32>
    %c0_138 = arith.constant 0 : index
    %c0_139 = arith.constant 0 : index
    %360 = vector.load %arg24[%c0_138, %c0_139] : memref<16x32xf32, #tpu.memory_space<vmem>>, vector<16x32xf32>
    tpu.vector_store %arg24[%c0_138, %c0_139], %359 {strides = array<i32>} : memref<16x32xf32, #tpu.memory_space<vmem>>, vector<16x32xf32>,
    %c0_140 = arith.constant 0 : index
    %c0_141 = arith.constant 0 : index
    %361 = vector.load %arg17[%c0_140, %c0_141] : memref<32x56xf32, #tpu.memory_space<vmem>>, vector<32x56xf32>
    %c0_142 = arith.constant 0 : index
    %c0_143 = arith.constant 0 : index
    %362 = vector.load %arg18[%c0_142, %c0_143] : memref<1x56xf32, #tpu.memory_space<vmem>>, vector<1x56xf32>
    %c0_144 = arith.constant 0 : index
    %c0_145 = arith.constant 0 : index
    %363 = vector.load %arg19[%c0_144, %c0_145] : memref<32x56xf32, #tpu.memory_space<vmem>>, vector<32x56xf32>
    %364 = arith.truncf %1 : vector<16x16xf32> to vector<16x16xbf16>
    %365 = arith.truncf %2 : vector<16x32xf32> to vector<16x32xbf16>
    %cst_146 = arith.constant dense<0.000000e+00> : vector<16xf32>
    %366 = vector.multi_reduction <add>, %1, %cst_146 [0] : vector<16x16xf32> to vector<16xf32>
    %367 = vector.shape_cast %366 : vector<16xf32> to vector<1x16xf32>
    %cst_147 = arith.constant dense<0.000000e+00> : vector<8xf32>
    %368 = vector.multi_reduction <add>, %45, %cst_147 [0] : vector<16x8xf32> to vector<8xf32>
    %369 = vector.shape_cast %368 : vector<8xf32> to vector<1x8xf32>
    %cst_148 = arith.constant dense<0.000000e+00> : vector<8xf32>
    %370 = vector.multi_reduction <add>, %46, %cst_148 [0] : vector<16x8xf32> to vector<8xf32>
    %371 = vector.shape_cast %370 : vector<8xf32> to vector<1x8xf32>
    %cst_149 = arith.constant dense<0.000000e+00> : vector<1x8xf32>
    %372 = tpu.matmul %367, %43, %cst_149 {dimension_numbers = #tpu.dot_dimension_numbers<[1], [0], [0], [1], [0, 0, 1, 1], [], []>} : vector<1x16xf32>, vector<16x8xf32>, vector<1x8xf32> -> vector<1x8xf32>
    %cst_150 = arith.constant dense<0.000000e+00> : vector<1x8xf32>
    %373 = tpu.matmul %367, %44, %cst_150 {dimension_numbers = #tpu.dot_dimension_numbers<[1], [0], [0], [1], [0, 0, 1, 1], [], []>} : vector<1x16xf32>, vector<16x8xf32>, vector<1x8xf32> -> vector<1x8xf32>
    %374 = vector.shape_cast %369 : vector<1x8xf32> to vector<1x8xf32>
    %375 = vector.broadcast %374 : vector<1x8xf32> to vector<16x8xf32>
    %376 = vector.shape_cast %372 : vector<1x8xf32> to vector<1x8xf32>
    %377 = vector.broadcast %376 : vector<1x8xf32> to vector<16x8xf32>
    %378 = vector.shape_cast %371 : vector<1x8xf32> to vector<1x8xf32>
    %379 = vector.broadcast %378 : vector<1x8xf32> to vector<16x8xf32>
    %380 = vector.shape_cast %373 : vector<1x8xf32> to vector<1x8xf32>
    %381 = vector.broadcast %380 : vector<1x8xf32> to vector<16x8xf32>
    %382 = tpu.concatenate %375, %377, %379, %381 in 0 : vector<16x8xf32>, vector<16x8xf32>, vector<16x8xf32>, vector<16x8xf32> -> vector<64x8xf32>
    %383 = tpu.concatenate %43, %44 in 0 : vector<16x8xf32>, vector<16x8xf32> -> vector<32x8xf32>
    %cst_151 = arith.constant dense<0.000000e+00> : vector<64x32xf32>
    %384 = tpu.matmul %382, %383, %cst_151 {dimension_numbers = #tpu.dot_dimension_numbers<[1], [1], [0], [0], [0, 0, 1, 0], [], []>} : vector<64x8xf32>, vector<32x8xf32>, vector<64x32xf32> -> vector<64x32xf32>
    %385 = vector.extract_strided_slice %384 {offsets = [0, 0], sizes = [16, 16], strides = [1, 1]} : vector<64x32xf32> to vector<16x16xf32>
    %386 = vector.extract_strided_slice %384 {offsets = [16, 0], sizes = [16, 16], strides = [1, 1]} : vector<64x32xf32> to vector<16x16xf32>
    %387 = vector.extract_strided_slice %384 {offsets = [32, 16], sizes = [16, 16], strides = [1, 1]} : vector<64x32xf32> to vector<16x16xf32>
    %388 = vector.extract_strided_slice %384 {offsets = [48, 16], sizes = [16, 16], strides = [1, 1]} : vector<64x32xf32> to vector<16x16xf32>
    %389 = tpu.iota {dimensions = array<i32: 0>} : vector<16x16xi32>
    %390 = tpu.iota {dimensions = array<i32: 1>} : vector<16x16xi32>
    %391 = arith.cmpi eq, %389, %390 : vector<16x16xi32>
    %392 = arith.truncf %45 : vector<16x8xf32> to vector<16x8xbf16>
    %cst_152 = arith.constant dense<0.000000e+00> : vector<16x16xf32>
    %393 = tpu.matmul %392, %392, %cst_152 {dimension_numbers = #tpu.dot_dimension_numbers<[1], [1], [0], [0], [0, 0, 1, 0], [], []>} : vector<16x8xbf16>, vector<16x8xbf16>, vector<16x16xf32> -> vector<16x16xf32>
    %cst_153 = arith.constant 0.000000e+00 : f32
    %394 = vector.broadcast %cst_153 : f32 to vector<16x16xf32>
    %395 = arith.select %391, %394, %393 : vector<16x16xi1>, vector<16x16xf32>
    %396 = arith.truncf %395 : vector<16x16xf32> to vector<16x16xbf16>
    %397 = arith.truncf %46 : vector<16x8xf32> to vector<16x8xbf16>
    %cst_154 = arith.constant dense<0.000000e+00> : vector<16x16xf32>
    %398 = tpu.matmul %397, %397, %cst_154 {dimension_numbers = #tpu.dot_dimension_numbers<[1], [1], [0], [0], [0, 0, 1, 0], [], []>} : vector<16x8xbf16>, vector<16x8xbf16>, vector<16x16xf32> -> vector<16x16xf32>
    %cst_155 = arith.constant 0.000000e+00 : f32
    %399 = vector.broadcast %cst_155 : f32 to vector<16x16xf32>
    %400 = arith.select %391, %399, %398 : vector<16x16xi1>, vector<16x16xf32>
    %401 = arith.truncf %400 : vector<16x16xf32> to vector<16x16xbf16>
    %402 = arith.truncf %47 : vector<16x8xf32> to vector<16x8xbf16>
    %cst_156 = arith.constant dense<0.000000e+00> : vector<16x16xf32>
    %403 = tpu.matmul %402, %402, %cst_156 {dimension_numbers = #tpu.dot_dimension_numbers<[1], [1], [0], [0], [0, 0, 1, 0], [], []>} : vector<16x8xbf16>, vector<16x8xbf16>, vector<16x16xf32> -> vector<16x16xf32>
    %cst_157 = arith.constant 0.000000e+00 : f32
    %404 = vector.broadcast %cst_157 : f32 to vector<16x16xf32>
    %405 = arith.select %391, %404, %403 : vector<16x16xi1>, vector<16x16xf32>
    %406 = arith.truncf %405 : vector<16x16xf32> to vector<16x16xbf16>
    %407 = tpu.concatenate %396, %401, %406 in 0 : vector<16x16xbf16>, vector<16x16xbf16>, vector<16x16xbf16> -> vector<48x16xbf16>
    %cst_158 = arith.constant dense<0.000000e+00> : vector<48x16xf32>
    %408 = tpu.matmul %407, %364, %cst_158 {dimension_numbers = #tpu.dot_dimension_numbers<[1], [0], [0], [1], [0, 0, 1, 1], [], []>} : vector<48x16xbf16>, vector<16x16xbf16>, vector<48x16xf32> -> vector<48x16xf32>
    %409 = vector.extract_strided_slice %408 {offsets = [0, 0], sizes = [16, 16], strides = [1, 1]} : vector<48x16xf32> to vector<16x16xf32>
    %410 = vector.extract_strided_slice %408 {offsets = [16, 0], sizes = [16, 16], strides = [1, 1]} : vector<48x16xf32> to vector<16x16xf32>
    %411 = vector.extract_strided_slice %408 {offsets = [32, 0], sizes = [16, 16], strides = [1, 1]} : vector<48x16xf32> to vector<16x16xf32>
    %412 = tpu.concatenate %385, %386, %409, %387, %388, %410, %411 in 0 : vector<16x16xf32>, vector<16x16xf32>, vector<16x16xf32>, vector<16x16xf32>, vector<16x16xf32>, vector<16x16xf32>, vector<16x16xf32> -> vector<112x16xf32>
    %cst_159 = arith.constant 0.000000e+00 : f32
    %413 = vector.broadcast %cst_159 : f32 to vector<112x16xf32>
    %414 = arith.cmpf ogt, %412, %413 : vector<112x16xf32>
    %415 = arith.extui %414 : vector<112x16xi1> to vector<112x16xi32>
    %416 = arith.sitofp %415 : vector<112x16xi32> to vector<112x16xf32>
    %417 = arith.truncf %416 : vector<112x16xf32> to vector<112x16xbf16>
    %418 = arith.extui %414 : vector<112x16xi1> to vector<112x16xi32>
    %cst_160 = arith.constant dense<0> : vector<112xi32>
    %419 = vector.multi_reduction <add>, %418, %cst_160 [1] : vector<112x16xi32> to vector<112xi32>
    %420 = vector.shape_cast %419 : vector<112xi32> to vector<112x1xi32>
    %421 = arith.sitofp %420 : vector<112x1xi32> to vector<112x1xf32>
    %cst_161 = arith.constant 1.000000e+00 : f32
    %422 = vector.broadcast %cst_161 : f32 to vector<112x1xf32>
    %423 = arith.maximumf %421, %422 : vector<112x1xf32>
    %cst_162 = arith.constant dense<0.000000e+00> : vector<112x32xf32>
    %424 = tpu.matmul %417, %365, %cst_162 {dimension_numbers = #tpu.dot_dimension_numbers<[1], [0], [0], [1], [0, 0, 1, 1], [], []>} : vector<112x16xbf16>, vector<16x32xbf16>, vector<112x32xf32> -> vector<112x32xf32>
    %cst_163 = arith.constant 1.000000e+00 : f32
    %425 = vector.broadcast %cst_163 : f32 to vector<112x1xf32>
    %426 = arith.divf %425, %423 : vector<112x1xf32>
    %427 = vector.broadcast %426 : vector<112x1xf32> to vector<112x32xf32>
    %428 = arith.mulf %424, %427 : vector<112x32xf32>
    %cst_164 = arith.constant dense<0.000000e+00> : vector<112x56xf32>
    %429 = tpu.matmul %428, %361, %cst_164 {dimension_numbers = #tpu.dot_dimension_numbers<[1], [0], [0], [1], [0, 0, 1, 1], [], []>} : vector<112x32xf32>, vector<32x56xf32>, vector<112x56xf32> -> vector<112x56xf32>
    %430 = vector.broadcast %362 : vector<1x56xf32> to vector<112x56xf32>
    %431 = arith.addf %429, %430 : vector<112x56xf32>
    %432 = math.tanh %431 : vector<112x56xf32>
    %cst_165 = arith.constant dense<0.000000e+00> : vector<16x56xf32>
    %433 = tpu.matmul %3, %363, %cst_165 {dimension_numbers = #tpu.dot_dimension_numbers<[1], [0], [0], [1], [0, 0, 1, 1], [], []>} : vector<16x32xf32>, vector<32x56xf32>, vector<16x56xf32> -> vector<16x56xf32>
    %434 = math.tanh %433 : vector<16x56xf32>
    %c0_166 = arith.constant 0 : index
    %c0_167 = arith.constant 0 : index
    %435 = memref.load %arg23[%c0_166, %c0_167] : memref<1x4xf32, #tpu.memory_space<smem>>
    %436 = vector.broadcast %435 : f32 to vector<16x32xf32>
    %437 = arith.mulf %42, %436 : vector<16x32xf32>
    %438 = vector.extract_strided_slice %428 {offsets = [0, 0], sizes = [16, 32], strides = [1, 1]} : vector<112x32xf32> to vector<16x32xf32>
    %439 = vector.extract_strided_slice %432 {offsets = [0, 0], sizes = [16, 8], strides = [1, 1]} : vector<112x56xf32> to vector<16x8xf32>
    %440 = vector.extract_strided_slice %434 {offsets = [0, 0], sizes = [16, 8], strides = [1, 1]} : vector<16x56xf32> to vector<16x8xf32>
    %441 = arith.addf %439, %440 : vector<16x8xf32>
    %c0_168 = arith.constant 0 : index
    %c0_169 = arith.constant 0 : index
    %c0_170 = arith.constant 0 : index
    %442 = vector.load %arg20[%c0_168, %c0_169, %c0_170] : memref<7x1x8xf32, #tpu.memory_space<vmem>>, vector<1x1x8xf32>
    %443 = vector.shape_cast %442 : vector<1x1x8xf32> to vector<1x8xf32>
    %444 = vector.broadcast %443 : vector<1x8xf32> to vector<16x8xf32>
    %445 = arith.mulf %441, %444 : vector<16x8xf32>
    %cst_171 = arith.constant dense<0.000000e+00> : vector<16xf32>
    %446 = vector.multi_reduction <add>, %445, %cst_171 [1] : vector<16x8xf32> to vector<16xf32>
    %447 = vector.shape_cast %446 : vector<16xf32> to vector<16x1xf32>
    %448 = arith.negf %447 : vector<16x1xf32>
    %449 = math.exp %448 : vector<16x1xf32>
    %cst_172 = arith.constant 1.000000e+00 : f32
    %450 = vector.broadcast %cst_172 : f32 to vector<16x1xf32>
    %451 = arith.addf %450, %449 : vector<16x1xf32>
    %452 = arith.divf %450, %451 : vector<16x1xf32>
    %453 = vector.broadcast %452 : vector<16x1xf32> to vector<16x32xf32>
    %454 = arith.mulf %453, %438 : vector<16x32xf32>
    %c0_173 = arith.constant 0 : index
    %c0_174 = arith.constant 0 : index
    %c0_175 = arith.constant 0 : index
    %455 = vector.load %arg21[%c0_173, %c0_174, %c0_175] : memref<7x1x8xf32, #tpu.memory_space<vmem>>, vector<1x1x8xf32>
    %456 = vector.shape_cast %455 : vector<1x1x8xf32> to vector<1x8xf32>
    %457 = vector.broadcast %456 : vector<1x8xf32> to vector<16x8xf32>
    %458 = arith.mulf %439, %457 : vector<16x8xf32>
    %cst_176 = arith.constant dense<0.000000e+00> : vector<16xf32>
    %459 = vector.multi_reduction <add>, %458, %cst_176 [1] : vector<16x8xf32> to vector<16xf32>
    %460 = vector.shape_cast %459 : vector<16xf32> to vector<16x1xf32>
    %cst_177 = arith.constant dense<0.000000e+00> : vector<1xf32>
    %461 = vector.multi_reduction <add>, %460, %cst_177 [0] : vector<16x1xf32> to vector<1xf32>
    %462 = vector.shape_cast %461 : vector<1xf32> to vector<1x1xf32>
    %cst_178 = arith.constant 1.600000e+01 : f32
    %463 = vector.broadcast %cst_178 : f32 to vector<1x1xf32>
    %464 = arith.divf %462, %463 : vector<1x1xf32>
    %465 = vector.extract_strided_slice %428 {offsets = [16, 0], sizes = [16, 32], strides = [1, 1]} : vector<112x32xf32> to vector<16x32xf32>
    %466 = vector.extract_strided_slice %432 {offsets = [16, 8], sizes = [16, 8], strides = [1, 1]} : vector<112x56xf32> to vector<16x8xf32>
    %467 = vector.extract_strided_slice %434 {offsets = [0, 8], sizes = [16, 8], strides = [1, 1]} : vector<16x56xf32> to vector<16x8xf32>
    %468 = arith.addf %466, %467 : vector<16x8xf32>
    %c1_179 = arith.constant 1 : index
    %c0_180 = arith.constant 0 : index
    %c0_181 = arith.constant 0 : index
    %469 = vector.load %arg20[%c1_179, %c0_180, %c0_181] : memref<7x1x8xf32, #tpu.memory_space<vmem>>, vector<1x1x8xf32>
    %470 = vector.shape_cast %469 : vector<1x1x8xf32> to vector<1x8xf32>
    %471 = vector.broadcast %470 : vector<1x8xf32> to vector<16x8xf32>
    %472 = arith.mulf %468, %471 : vector<16x8xf32>
    %cst_182 = arith.constant dense<0.000000e+00> : vector<16xf32>
    %473 = vector.multi_reduction <add>, %472, %cst_182 [1] : vector<16x8xf32> to vector<16xf32>
    %474 = vector.shape_cast %473 : vector<16xf32> to vector<16x1xf32>
    %475 = arith.negf %474 : vector<16x1xf32>
    %476 = math.exp %475 : vector<16x1xf32>
    %cst_183 = arith.constant 1.000000e+00 : f32
    %477 = vector.broadcast %cst_183 : f32 to vector<16x1xf32>
    %478 = arith.addf %477, %476 : vector<16x1xf32>
    %479 = arith.divf %477, %478 : vector<16x1xf32>
    %480 = vector.broadcast %479 : vector<16x1xf32> to vector<16x32xf32>
    %481 = arith.mulf %480, %465 : vector<16x32xf32>
    %c1_184 = arith.constant 1 : index
    %c0_185 = arith.constant 0 : index
    %c0_186 = arith.constant 0 : index
    %482 = vector.load %arg21[%c1_184, %c0_185, %c0_186] : memref<7x1x8xf32, #tpu.memory_space<vmem>>, vector<1x1x8xf32>
    %483 = vector.shape_cast %482 : vector<1x1x8xf32> to vector<1x8xf32>
    %484 = vector.broadcast %483 : vector<1x8xf32> to vector<16x8xf32>
    %485 = arith.mulf %466, %484 : vector<16x8xf32>
    %cst_187 = arith.constant dense<0.000000e+00> : vector<16xf32>
    %486 = vector.multi_reduction <add>, %485, %cst_187 [1] : vector<16x8xf32> to vector<16xf32>
    %487 = vector.shape_cast %486 : vector<16xf32> to vector<16x1xf32>
    %cst_188 = arith.constant dense<0.000000e+00> : vector<1xf32>
    %488 = vector.multi_reduction <add>, %487, %cst_188 [0] : vector<16x1xf32> to vector<1xf32>
    %489 = vector.shape_cast %488 : vector<1xf32> to vector<1x1xf32>
    %cst_189 = arith.constant 1.600000e+01 : f32
    %490 = vector.broadcast %cst_189 : f32 to vector<1x1xf32>
    %491 = arith.divf %489, %490 : vector<1x1xf32>
    %492 = vector.extract_strided_slice %428 {offsets = [32, 0], sizes = [16, 32], strides = [1, 1]} : vector<112x32xf32> to vector<16x32xf32>
    %493 = vector.extract_strided_slice %432 {offsets = [32, 16], sizes = [16, 8], strides = [1, 1]} : vector<112x56xf32> to vector<16x8xf32>
    %494 = vector.extract_strided_slice %434 {offsets = [0, 16], sizes = [16, 8], strides = [1, 1]} : vector<16x56xf32> to vector<16x8xf32>
    %495 = arith.addf %493, %494 : vector<16x8xf32>
    %c2_190 = arith.constant 2 : index
    %c0_191 = arith.constant 0 : index
    %c0_192 = arith.constant 0 : index
    %496 = vector.load %arg20[%c2_190, %c0_191, %c0_192] : memref<7x1x8xf32, #tpu.memory_space<vmem>>, vector<1x1x8xf32>
    %497 = vector.shape_cast %496 : vector<1x1x8xf32> to vector<1x8xf32>
    %498 = vector.broadcast %497 : vector<1x8xf32> to vector<16x8xf32>
    %499 = arith.mulf %495, %498 : vector<16x8xf32>
    %cst_193 = arith.constant dense<0.000000e+00> : vector<16xf32>
    %500 = vector.multi_reduction <add>, %499, %cst_193 [1] : vector<16x8xf32> to vector<16xf32>
    %501 = vector.shape_cast %500 : vector<16xf32> to vector<16x1xf32>
    %502 = arith.negf %501 : vector<16x1xf32>
    %503 = math.exp %502 : vector<16x1xf32>
    %cst_194 = arith.constant 1.000000e+00 : f32
    %504 = vector.broadcast %cst_194 : f32 to vector<16x1xf32>
    %505 = arith.addf %504, %503 : vector<16x1xf32>
    %506 = arith.divf %504, %505 : vector<16x1xf32>
    %507 = vector.broadcast %506 : vector<16x1xf32> to vector<16x32xf32>
    %508 = arith.mulf %507, %492 : vector<16x32xf32>
    %c2_195 = arith.constant 2 : index
    %c0_196 = arith.constant 0 : index
    %c0_197 = arith.constant 0 : index
    %509 = vector.load %arg21[%c2_195, %c0_196, %c0_197] : memref<7x1x8xf32, #tpu.memory_space<vmem>>, vector<1x1x8xf32>
    %510 = vector.shape_cast %509 : vector<1x1x8xf32> to vector<1x8xf32>
    %511 = vector.broadcast %510 : vector<1x8xf32> to vector<16x8xf32>
    %512 = arith.mulf %493, %511 : vector<16x8xf32>
    %cst_198 = arith.constant dense<0.000000e+00> : vector<16xf32>
    %513 = vector.multi_reduction <add>, %512, %cst_198 [1] : vector<16x8xf32> to vector<16xf32>
    %514 = vector.shape_cast %513 : vector<16xf32> to vector<16x1xf32>
    %cst_199 = arith.constant dense<0.000000e+00> : vector<1xf32>
    %515 = vector.multi_reduction <add>, %514, %cst_199 [0] : vector<16x1xf32> to vector<1xf32>
    %516 = vector.shape_cast %515 : vector<1xf32> to vector<1x1xf32>
    %cst_200 = arith.constant 1.600000e+01 : f32
    %517 = vector.broadcast %cst_200 : f32 to vector<1x1xf32>
    %518 = arith.divf %516, %517 : vector<1x1xf32>
    %519 = arith.maximumf %464, %491 : vector<1x1xf32>
    %520 = arith.maximumf %519, %518 : vector<1x1xf32>
    %521 = arith.subf %464, %520 : vector<1x1xf32>
    %522 = math.exp %521 : vector<1x1xf32>
    %523 = arith.subf %491, %520 : vector<1x1xf32>
    %524 = math.exp %523 : vector<1x1xf32>
    %525 = arith.subf %518, %520 : vector<1x1xf32>
    %526 = math.exp %525 : vector<1x1xf32>
    %527 = arith.addf %522, %524 : vector<1x1xf32>
    %528 = arith.addf %527, %526 : vector<1x1xf32>
    %cst_201 = arith.constant 1.000000e+00 : f32
    %529 = vector.broadcast %cst_201 : f32 to vector<1x1xf32>
    %530 = arith.divf %529, %528 : vector<1x1xf32>
    %531 = arith.mulf %522, %530 : vector<1x1xf32>
    %532 = vector.broadcast %531 : vector<1x1xf32> to vector<16x32xf32>
    %533 = arith.mulf %454, %532 : vector<16x32xf32>
    %534 = arith.mulf %524, %530 : vector<1x1xf32>
    %535 = vector.broadcast %534 : vector<1x1xf32> to vector<16x32xf32>
    %536 = arith.mulf %481, %535 : vector<16x32xf32>
    %537 = arith.addf %533, %536 : vector<16x32xf32>
    %538 = arith.mulf %526, %530 : vector<1x1xf32>
    %539 = vector.broadcast %538 : vector<1x1xf32> to vector<16x32xf32>
    %540 = arith.mulf %508, %539 : vector<16x32xf32>
    %541 = arith.addf %537, %540 : vector<16x32xf32>
    %c0_202 = arith.constant 0 : index
    %c1_203 = arith.constant 1 : index
    %542 = memref.load %arg23[%c0_202, %c1_203] : memref<1x4xf32, #tpu.memory_space<smem>>
    %543 = vector.broadcast %542 : f32 to vector<16x32xf32>
    %544 = arith.mulf %541, %543 : vector<16x32xf32>
    %545 = arith.addf %437, %544 : vector<16x32xf32>
    %546 = vector.extract_strided_slice %428 {offsets = [48, 0], sizes = [16, 32], strides = [1, 1]} : vector<112x32xf32> to vector<16x32xf32>
    %547 = vector.extract_strided_slice %432 {offsets = [48, 24], sizes = [16, 8], strides = [1, 1]} : vector<112x56xf32> to vector<16x8xf32>
    %548 = vector.extract_strided_slice %434 {offsets = [0, 24], sizes = [16, 8], strides = [1, 1]} : vector<16x56xf32> to vector<16x8xf32>
    %549 = arith.addf %547, %548 : vector<16x8xf32>
    %c3_204 = arith.constant 3 : index
    %c0_205 = arith.constant 0 : index
    %c0_206 = arith.constant 0 : index
    %550 = vector.load %arg20[%c3_204, %c0_205, %c0_206] : memref<7x1x8xf32, #tpu.memory_space<vmem>>, vector<1x1x8xf32>
    %551 = vector.shape_cast %550 : vector<1x1x8xf32> to vector<1x8xf32>
    %552 = vector.broadcast %551 : vector<1x8xf32> to vector<16x8xf32>
    %553 = arith.mulf %549, %552 : vector<16x8xf32>
    %cst_207 = arith.constant dense<0.000000e+00> : vector<16xf32>
    %554 = vector.multi_reduction <add>, %553, %cst_207 [1] : vector<16x8xf32> to vector<16xf32>
    %555 = vector.shape_cast %554 : vector<16xf32> to vector<16x1xf32>
    %556 = arith.negf %555 : vector<16x1xf32>
    %557 = math.exp %556 : vector<16x1xf32>
    %cst_208 = arith.constant 1.000000e+00 : f32
    %558 = vector.broadcast %cst_208 : f32 to vector<16x1xf32>
    %559 = arith.addf %558, %557 : vector<16x1xf32>
    %560 = arith.divf %558, %559 : vector<16x1xf32>
    %561 = vector.broadcast %560 : vector<16x1xf32> to vector<16x32xf32>
    %562 = arith.mulf %561, %546 : vector<16x32xf32>
    %c3_209 = arith.constant 3 : index
    %c0_210 = arith.constant 0 : index
    %c0_211 = arith.constant 0 : index
    %563 = vector.load %arg21[%c3_209, %c0_210, %c0_211] : memref<7x1x8xf32, #tpu.memory_space<vmem>>, vector<1x1x8xf32>
    %564 = vector.shape_cast %563 : vector<1x1x8xf32> to vector<1x8xf32>
    %565 = vector.broadcast %564 : vector<1x8xf32> to vector<16x8xf32>
    %566 = arith.mulf %547, %565 : vector<16x8xf32>
    %cst_212 = arith.constant dense<0.000000e+00> : vector<16xf32>
    %567 = vector.multi_reduction <add>, %566, %cst_212 [1] : vector<16x8xf32> to vector<16xf32>
    %568 = vector.shape_cast %567 : vector<16xf32> to vector<16x1xf32>
    %cst_213 = arith.constant dense<0.000000e+00> : vector<1xf32>
    %569 = vector.multi_reduction <add>, %568, %cst_213 [0] : vector<16x1xf32> to vector<1xf32>
    %570 = vector.shape_cast %569 : vector<1xf32> to vector<1x1xf32>
    %cst_214 = arith.constant 1.600000e+01 : f32
    %571 = vector.broadcast %cst_214 : f32 to vector<1x1xf32>
    %572 = arith.divf %570, %571 : vector<1x1xf32>
    %573 = vector.extract_strided_slice %428 {offsets = [64, 0], sizes = [16, 32], strides = [1, 1]} : vector<112x32xf32> to vector<16x32xf32>
    %574 = vector.extract_strided_slice %432 {offsets = [64, 32], sizes = [16, 8], strides = [1, 1]} : vector<112x56xf32> to vector<16x8xf32>
    %575 = vector.extract_strided_slice %434 {offsets = [0, 32], sizes = [16, 8], strides = [1, 1]} : vector<16x56xf32> to vector<16x8xf32>
    %576 = arith.addf %574, %575 : vector<16x8xf32>
    %c4_215 = arith.constant 4 : index
    %c0_216 = arith.constant 0 : index
    %c0_217 = arith.constant 0 : index
    %577 = vector.load %arg20[%c4_215, %c0_216, %c0_217] : memref<7x1x8xf32, #tpu.memory_space<vmem>>, vector<1x1x8xf32>
    %578 = vector.shape_cast %577 : vector<1x1x8xf32> to vector<1x8xf32>
    %579 = vector.broadcast %578 : vector<1x8xf32> to vector<16x8xf32>
    %580 = arith.mulf %576, %579 : vector<16x8xf32>
    %cst_218 = arith.constant dense<0.000000e+00> : vector<16xf32>
    %581 = vector.multi_reduction <add>, %580, %cst_218 [1] : vector<16x8xf32> to vector<16xf32>
    %582 = vector.shape_cast %581 : vector<16xf32> to vector<16x1xf32>
    %583 = arith.negf %582 : vector<16x1xf32>
    %584 = math.exp %583 : vector<16x1xf32>
    %cst_219 = arith.constant 1.000000e+00 : f32
    %585 = vector.broadcast %cst_219 : f32 to vector<16x1xf32>
    %586 = arith.addf %585, %584 : vector<16x1xf32>
    %587 = arith.divf %585, %586 : vector<16x1xf32>
    %588 = vector.broadcast %587 : vector<16x1xf32> to vector<16x32xf32>
    %589 = arith.mulf %588, %573 : vector<16x32xf32>
    %c4_220 = arith.constant 4 : index
    %c0_221 = arith.constant 0 : index
    %c0_222 = arith.constant 0 : index
    %590 = vector.load %arg21[%c4_220, %c0_221, %c0_222] : memref<7x1x8xf32, #tpu.memory_space<vmem>>, vector<1x1x8xf32>
    %591 = vector.shape_cast %590 : vector<1x1x8xf32> to vector<1x8xf32>
    %592 = vector.broadcast %591 : vector<1x8xf32> to vector<16x8xf32>
    %593 = arith.mulf %574, %592 : vector<16x8xf32>
    %cst_223 = arith.constant dense<0.000000e+00> : vector<16xf32>
    %594 = vector.multi_reduction <add>, %593, %cst_223 [1] : vector<16x8xf32> to vector<16xf32>
    %595 = vector.shape_cast %594 : vector<16xf32> to vector<16x1xf32>
    %cst_224 = arith.constant dense<0.000000e+00> : vector<1xf32>
    %596 = vector.multi_reduction <add>, %595, %cst_224 [0] : vector<16x1xf32> to vector<1xf32>
    %597 = vector.shape_cast %596 : vector<1xf32> to vector<1x1xf32>
    %cst_225 = arith.constant 1.600000e+01 : f32
    %598 = vector.broadcast %cst_225 : f32 to vector<1x1xf32>
    %599 = arith.divf %597, %598 : vector<1x1xf32>
    %600 = vector.extract_strided_slice %428 {offsets = [80, 0], sizes = [16, 32], strides = [1, 1]} : vector<112x32xf32> to vector<16x32xf32>
    %601 = vector.extract_strided_slice %432 {offsets = [80, 40], sizes = [16, 8], strides = [1, 1]} : vector<112x56xf32> to vector<16x8xf32>
    %602 = vector.extract_strided_slice %434 {offsets = [0, 40], sizes = [16, 8], strides = [1, 1]} : vector<16x56xf32> to vector<16x8xf32>
    %603 = arith.addf %601, %602 : vector<16x8xf32>
    %c5_226 = arith.constant 5 : index
    %c0_227 = arith.constant 0 : index
    %c0_228 = arith.constant 0 : index
    %604 = vector.load %arg20[%c5_226, %c0_227, %c0_228] : memref<7x1x8xf32, #tpu.memory_space<vmem>>, vector<1x1x8xf32>
    %605 = vector.shape_cast %604 : vector<1x1x8xf32> to vector<1x8xf32>
    %606 = vector.broadcast %605 : vector<1x8xf32> to vector<16x8xf32>
    %607 = arith.mulf %603, %606 : vector<16x8xf32>
    %cst_229 = arith.constant dense<0.000000e+00> : vector<16xf32>
    %608 = vector.multi_reduction <add>, %607, %cst_229 [1] : vector<16x8xf32> to vector<16xf32>
    %609 = vector.shape_cast %608 : vector<16xf32> to vector<16x1xf32>
    %610 = arith.negf %609 : vector<16x1xf32>
    %611 = math.exp %610 : vector<16x1xf32>
    %cst_230 = arith.constant 1.000000e+00 : f32
    %612 = vector.broadcast %cst_230 : f32 to vector<16x1xf32>
    %613 = arith.addf %612, %611 : vector<16x1xf32>
    %614 = arith.divf %612, %613 : vector<16x1xf32>
    %615 = vector.broadcast %614 : vector<16x1xf32> to vector<16x32xf32>
    %616 = arith.mulf %615, %600 : vector<16x32xf32>
    %c5_231 = arith.constant 5 : index
    %c0_232 = arith.constant 0 : index
    %c0_233 = arith.constant 0 : index
    %617 = vector.load %arg21[%c5_231, %c0_232, %c0_233] : memref<7x1x8xf32, #tpu.memory_space<vmem>>, vector<1x1x8xf32>
    %618 = vector.shape_cast %617 : vector<1x1x8xf32> to vector<1x8xf32>
    %619 = vector.broadcast %618 : vector<1x8xf32> to vector<16x8xf32>
    %620 = arith.mulf %601, %619 : vector<16x8xf32>
    %cst_234 = arith.constant dense<0.000000e+00> : vector<16xf32>
    %621 = vector.multi_reduction <add>, %620, %cst_234 [1] : vector<16x8xf32> to vector<16xf32>
    %622 = vector.shape_cast %621 : vector<16xf32> to vector<16x1xf32>
    %cst_235 = arith.constant dense<0.000000e+00> : vector<1xf32>
    %623 = vector.multi_reduction <add>, %622, %cst_235 [0] : vector<16x1xf32> to vector<1xf32>
    %624 = vector.shape_cast %623 : vector<1xf32> to vector<1x1xf32>
    %cst_236 = arith.constant 1.600000e+01 : f32
    %625 = vector.broadcast %cst_236 : f32 to vector<1x1xf32>
    %626 = arith.divf %624, %625 : vector<1x1xf32>
    %627 = arith.maximumf %572, %599 : vector<1x1xf32>
    %628 = arith.maximumf %627, %626 : vector<1x1xf32>
    %629 = arith.subf %572, %628 : vector<1x1xf32>
    %630 = math.exp %629 : vector<1x1xf32>
    %631 = arith.subf %599, %628 : vector<1x1xf32>
    %632 = math.exp %631 : vector<1x1xf32>
    %633 = arith.subf %626, %628 : vector<1x1xf32>
    %634 = math.exp %633 : vector<1x1xf32>
    %635 = arith.addf %630, %632 : vector<1x1xf32>
    %636 = arith.addf %635, %634 : vector<1x1xf32>
    %cst_237 = arith.constant 1.000000e+00 : f32
    %637 = vector.broadcast %cst_237 : f32 to vector<1x1xf32>
    %638 = arith.divf %637, %636 : vector<1x1xf32>
    %639 = arith.mulf %630, %638 : vector<1x1xf32>
    %640 = vector.broadcast %639 : vector<1x1xf32> to vector<16x32xf32>
    %641 = arith.mulf %562, %640 : vector<16x32xf32>
    %642 = arith.mulf %632, %638 : vector<1x1xf32>
    %643 = vector.broadcast %642 : vector<1x1xf32> to vector<16x32xf32>
    %644 = arith.mulf %589, %643 : vector<16x32xf32>
    %645 = arith.addf %641, %644 : vector<16x32xf32>
    %646 = arith.mulf %634, %638 : vector<1x1xf32>
    %647 = vector.broadcast %646 : vector<1x1xf32> to vector<16x32xf32>
    %648 = arith.mulf %616, %647 : vector<16x32xf32>
    %649 = arith.addf %645, %648 : vector<16x32xf32>
    %c0_238 = arith.constant 0 : index
    %c2_239 = arith.constant 2 : index
    %650 = memref.load %arg23[%c0_238, %c2_239] : memref<1x4xf32, #tpu.memory_space<smem>>
    %651 = vector.broadcast %650 : f32 to vector<16x32xf32>
    %652 = arith.mulf %649, %651 : vector<16x32xf32>
    %653 = arith.addf %545, %652 : vector<16x32xf32>
    %654 = vector.extract_strided_slice %428 {offsets = [96, 0], sizes = [16, 32], strides = [1, 1]} : vector<112x32xf32> to vector<16x32xf32>
    %655 = vector.extract_strided_slice %432 {offsets = [96, 48], sizes = [16, 8], strides = [1, 1]} : vector<112x56xf32> to vector<16x8xf32>
    %656 = vector.extract_strided_slice %434 {offsets = [0, 48], sizes = [16, 8], strides = [1, 1]} : vector<16x56xf32> to vector<16x8xf32>
    %657 = arith.addf %655, %656 : vector<16x8xf32>
    %c6_240 = arith.constant 6 : index
    %c0_241 = arith.constant 0 : index
    %c0_242 = arith.constant 0 : index
    %658 = vector.load %arg20[%c6_240, %c0_241, %c0_242] : memref<7x1x8xf32, #tpu.memory_space<vmem>>, vector<1x1x8xf32>
    %659 = vector.shape_cast %658 : vector<1x1x8xf32> to vector<1x8xf32>
    %660 = vector.broadcast %659 : vector<1x8xf32> to vector<16x8xf32>
    %661 = arith.mulf %657, %660 : vector<16x8xf32>
    %cst_243 = arith.constant dense<0.000000e+00> : vector<16xf32>
    %662 = vector.multi_reduction <add>, %661, %cst_243 [1] : vector<16x8xf32> to vector<16xf32>
    %663 = vector.shape_cast %662 : vector<16xf32> to vector<16x1xf32>
    %664 = arith.negf %663 : vector<16x1xf32>
    %665 = math.exp %664 : vector<16x1xf32>
    %cst_244 = arith.constant 1.000000e+00 : f32
    %666 = vector.broadcast %cst_244 : f32 to vector<16x1xf32>
    %667 = arith.addf %666, %665 : vector<16x1xf32>
    %668 = arith.divf %666, %667 : vector<16x1xf32>
    %669 = vector.broadcast %668 : vector<16x1xf32> to vector<16x32xf32>
    %670 = arith.mulf %669, %654 : vector<16x32xf32>
    %c0_245 = arith.constant 0 : index
    %c3_246 = arith.constant 3 : index
    %671 = memref.load %arg23[%c0_245, %c3_246] : memref<1x4xf32, #tpu.memory_space<smem>>
    %672 = vector.broadcast %671 : f32 to vector<16x32xf32>
    %673 = arith.mulf %670, %672 : vector<16x32xf32>
    %674 = arith.addf %653, %673 : vector<16x32xf32>
    %c0_247 = arith.constant 0 : index
    %c0_248 = arith.constant 0 : index
    %675 = vector.load %arg25[%c0_247, %c0_248] : memref<16x32xf32, #tpu.memory_space<vmem>>, vector<16x32xf32>
    tpu.vector_store %arg25[%c0_247, %c0_248], %674 {strides = array<i32>} : memref<16x32xf32, #tpu.memory_space<vmem>>, vector<16x32xf32>,
    return
  }
}

</mosaic_0001>

<bundles_post_ra>
// kernel: forward.1
= control target key start
LH: loop header
LB: loop body
LE: loop exit
PB: predicated region body
PF: predicated region fallthrough
CT: control target
= control target key end

     0   :  { %s7352_s0 = inlined_call_operand.vmem [shape: f32[16,16], index: 0, kind: input, shape index: {}]   ;;  %s7353_s1 = inlined_call_operand.vmem [shape: f32[16,16], index: 1, kind: input, shape index: {}]   ;;  %s7354_s2 = inlined_call_operand.vmem [shape: f32[16,32], index: 2, kind: input, shape index: {}]   ;;  %s7355_s3 = inlined_call_operand.vmem [shape: f32[16,32], index: 3, kind: input, shape index: {}]   ;;  %s7356_s4 = inlined_call_operand.vmem [shape: f32[32,32], index: 4, kind: input, shape index: {}]   ;;  %s7357_s5 = inlined_call_operand.vmem [shape: f32[1,32], index: 5, kind: input, shape index: {}]   ;;  %s7358_s6 = inlined_call_operand.vmem [shape: f32[1,32], index: 6, kind: input, shape index: {}]   ;;  %s7359_s7 = inlined_call_operand.vmem [shape: f32[16,8], index: 7, kind: input, shape index: {}]   ;;  %s7360_s8 = inlined_call_operand.vmem [shape: f32[16,8], index: 8, kind: input, shape index: {}]   ;;  %s7361_s9 = inlined_call_operand.vmem [shape: f32[16,8], index: 9, kind: input, shape index: {}]   ;;  %s7362_s10 = inlined_call_operand.vmem [shape: f32[16,8], index: 10, kind: input, shape index: {}]   ;;  %s7363_s11 = inlined_call_operand.vmem [shape: f32[16,8], index: 11, kind: input, shape index: {}]   ;;  %s7364_s12 = inlined_call_operand.vmem [shape: f32[32,56], index: 12, kind: input, shape index: {}]   ;;  %s7365_s13 = inlined_call_operand.vmem [shape: f32[1,56], index: 13, kind: input, shape index: {}]   ;;  %s7366_s14 = inlined_call_operand.vmem [shape: f32[32,56], index: 14, kind: input, shape index: {}]   ;;  %s7367_s15 = inlined_call_operand.vmem [shape: f32[7,1,8], index: 15, kind: input, shape index: {}]   ;;  %s7368_s16 = inlined_call_operand.vmem [shape: f32[7,1,8], index: 16, kind: input, shape index: {}]   ;;  %s7369_s17 = inlined_call_operand.vmem [shape: f32[32,56], index: 17, kind: input, shape index: {}]   ;;  %s7370_s18 = inlined_call_operand.vmem [shape: f32[1,56], index: 18, kind: input, shape index: {}]   ;;  %s7371_s19 = inlined_call_operand.vmem [shape: f32[32,56], index: 19, kind: input, shape index: {}]   ;;  %s7372_s20 = inlined_call_operand.vmem [shape: f32[7,1,8], index: 20, kind: input, shape index: {}]   ;;  %s7373_s21 = inlined_call_operand.vmem [shape: f32[7,1,8], index: 21, kind: input, shape index: {}]   ;;  %s7374_s22 = inlined_call_operand.vmem [shape: f32[1,4], index: 22, kind: input, shape index: {}]   ;;  %s7375_s23 = inlined_call_operand.vmem [shape: f32[1,4], index: 23, kind: input, shape index: {}]   ;;  %s7376_s24 = inlined_call_operand.hbm [shape: f32[16,32], index: 24, kind: output, shape index: {0}]   ;;  %s7377_s25 = inlined_call_operand.hbm [shape: f32[16,32], index: 25, kind: output, shape index: {1}]  }
   0x1   :  { %7422 = sst [smem:[#allocation49_spill]] %s7352_s0 }
   0x2   :  { %7423 = sst [smem:[#allocation50_spill]] %s7353_s1 }
   0x3   :  { %7424 = sst [smem:[#allocation51_spill]] %s7354_s2 }
   0x4   :  { %7425 = sst [smem:[#allocation52_spill]] %s7355_s3 }
   0x5   :  { %7426 = sst [smem:[#allocation53_spill]] %s7356_s4 }
   0x6   :  { %7427 = sst [smem:[#allocation54_spill]] %s7357_s5 }
   0x7   :  { %7428 = sst [smem:[#allocation55_spill]] %s7358_s6 }
   0x8   :  { %7429 = sst [smem:[#allocation56_spill]] %s7359_s7 }
   0x9   :  { %7430 = sst [smem:[#allocation57_spill]] %s7360_s8 }
   0xa   :  { %7431 = sst [smem:[#allocation58_spill]] %s7361_s9 }
   0xb   :  { %31 = vsyncpa [#allocation4], 0 }
   0xc   :  { %32 = vsyncpa [#allocation6], 0 }
   0xd   :  { %33 = vsyncpa [#allocation3], 0 }
   0xe   :  { %34 = vsyncpa [#allocation9], 0  ;;  %s85_s6 = sshll.u32 %s7374_s22, 4  ;;  %s95_s3 = sshll.u32 %s7375_s23, 4  ;;  %s86_s6 = int_to_ptr.vmem [resolvable:$true] %s85_s6  ;;  %s96_s3 = int_to_ptr.vmem [resolvable:$true] %s95_s3 }
   0xf   :  { %s5613_s26 = scalar_lea.vmem %s86_s6, 16  ;;  %p5618_p1 = scmp.lt.s32.totalorder %s86_s6, %s86_s6 }
  0x10   :  { %p5614_p0 = scmp.ne.s32.totalorder %s86_s6, %s5613_s26  ;;  %p5619_p2 = scmp.lt.s32.totalorder %s5613_s26, %s5613_s26 }
  0x12   :  { %p5620_p3 = por %p5619_p2, %p5618_p1 }
  0x14   :  { %p5621_p4 = pnand %p5620_p3, %p5614_p0 }
  0x16   :  { %5624 = shalt.err (!%p5621_p4)
}
  0x17   :  { %s5689_s1 = smov [#allocation2]   ;;  %s5625_s8 = scalar_lea.vmem %s96_s3, 16 }
  0x18   :  { %88 = dma.vmem_to_smem %s86_s6, 16, %s5689_s1, [#allocation4]  }
  0x19   :  { %p5626_p5 = scmp.ne.s32.totalorder %s96_s3, %s5625_s8  ;;  %p5630_p6 = scmp.lt.s32.totalorder %s96_s3, %s96_s3 }
  0x1a   :  { %p5631_p7 = scmp.lt.s32.totalorder %s5625_s8, %s5625_s8 }
  0x1c   :  { %p5632_p8 = por %p5631_p7, %p5630_p6 }
  0x1e   :  { %p5633_p9 = pnand %p5632_p8, %p5626_p5 }
  0x20   :  { %5636 = shalt.err (!%p5633_p9)
}
  0x21   :  { %s5690_s22 = smov [#allocation5]  }
  0x22   :  { %98 = dma.vmem_to_smem %s96_s3, 16, %s5690_s22, [#allocation6]  }
  0x23   :  { %5681 = dma.done.wait [#allocation4], 16  }
  0x24   :  { %5682 = vsyncadd [#allocation4], 4294967280 }
  0x25   :  { %5683 = dma.done.wait [#allocation6], 16  }
  0x26   :  { %5684 = vsyncadd [#allocation6], 4294967280 }
  0x27   :  { %105 = sfence }
  0x28   :  { %s7432_s4 = sld [smem:[#allocation52_spill]]  ;;  %s7433_s29 = sld [smem:[#allocation49_spill]]  ;;  %vm121_vm0 = vcmask 130048   ;;  %vm7396_vm1 = vcmask 261120   ;;  %v5691_v40 = vmov 0.0|0.0   ;;  %vm825_vm6 = vcmask 64512  }
  0x29   :  { %s7434_s30 = sld [smem:[#allocation51_spill]]  ;;  %s7435_s8 = sld [smem:[#allocation53_spill]]  ;;  %v803_v55 = vld [vmem:[%s7363_s11] sm:$0xff]  ;;  %v804_v56 = vld [vmem:[%s7363_s11 + $0x8] sm:$0xff]  ;;  %vm5692_vm7 = vmmov 0   ;;  %vm5975_vm8 = vmpackc.low %vm825_vm6, %vm825_vm6 }
  0x2a   :  { %s7436_s3 = sld [smem:[#allocation50_spill]]  ;;  %s7437_s22 = sld [smem:[#allocation54_spill]]  ;;  %v5936_v58 = vpack.c.bf16 %v804_v56, %v803_v55 }
  0x2b   :  { %s7438_s28 = sld [smem:[#allocation55_spill]]  ;;  %s7439_s0 = sld [smem:[#allocation56_spill]] }
  0x2c   :  { %s7440_s27 = sld [smem:[#allocation58_spill]]  ;;  %s5694_s23 = smov 112  }
  0x2d   :  { %s5695_s9 = smov 96   ;;  %s5702_s11 = smov 32  }
  0x2e   :  { %v113_v0 = vld [vmem:[%s7432_s4] sm:$0xff]  ;;  %v114_v1 = vld [vmem:[%s7432_s4 + $0x8] sm:$0xff]  ;;  %s5704_s26 = smov 88   ;;  %s5705_s1 = smov 48  }
  0x2f   :  { %v5855_v2 = vld [vmem:[%s7433_s29] sm:$0xff]  ;;  %v5857_v3 = vpack.c.bf16 %v114_v1, %v113_v0  ;;  %v112_v5 = vld [vmem:[%s7434_s30 + $0x8] sm:$0xff]  ;;  %v117_v9 = vld [vmem:[%s7435_s8 + $0x10] sm:$0xff]  ;;  %s7062_s5 = sld [smem:[#allocation2 + $0x1]]  ;;  %s7072_s6 = sld [smem:[#allocation2]] }
  0x30   :  { %4851 = vmatprep.mubr.msk.f32.mxu0 %vm121_vm0, %v5855_v2  ;;  %v111_v4 = vld [vmem:[%s7434_s30] sm:$0xff]  ;;  %v116_v8 = vld [vmem:[%s7435_s8 + $0x8] sm:$0xff]  ;;  %v118_v10 = vld [vmem:[%s7435_s8 + $0x18] sm:$0xff]  ;;  %v816_v41 = vsel %vm121_vm0, %v5855_v2, 0.0 }
  0x31   :  { %v5867_v6 = vpack.c.bf16 %v112_v5, %v111_v4  ;;  %v115_v7 = vld [vmem:[%s7435_s8] sm:$0xff]  ;;  %5192 = vmatprep.subr.bf16.mxu0 %v5857_v3  ;;  %v5886_v11 = vld [vmem:[%s7433_s29 + $0x8] sm:$0xff]  ;;  %v5199_v14 = vpack.c.bf16 %v118_v10, %v117_v9  ;;  %v7390_v4 = vmov 0.0   ;;  %s7443_s29 = sld [smem:[#allocation57_spill]]  ;;  %s5697_s8 = smov 8  }
  0x32   :  { %5194 = vmatpush3.bf16.msra.mxu0 %v5857_v3  ;;  %v5195_v12 = vpack.c.bf16 %v116_v8, %v115_v7  ;;  %v109_v13 = vld [vmem:[%s7436_s3] sm:$0xff]  ;;  %v110_v15 = vld [vmem:[%s7436_s3 + $0x8] sm:$0xff]  ;;  %v817_v42 = vsel %vm121_vm0, %v5886_v11, 0.0 }
  0x33   :  { %5204 = vmatprep.subr.bf16.mxu0 %v5867_v6  ;;  %v4466_v20 = vld [vmem:[%s7437_s22] ss:$0 sm:$0xff]  ;;  %v818_v43 = vadd.f32 %v817_v42, %v816_v41  ;;  %v796_v45 = vld [vmem:[%s7439_s0 + $0x8] sm:$0xff] }
  0x34   :  { %5196 = vmatprep.subr.bf16.mxu1 %v5195_v12  ;;  %v4471_v25 = vld [vmem:[%s7438_s28] ss:$0 sm:$0xff]  ;;  %v827_v48 = vsel %vm825_vm6, %v796_v45, 0.0  ;;  %v800_v61 = vld [vmem:[%s7440_s27 + $0x8] sm:$0xff] }
  0x35   :  { %4852 = vmatmul.mubr.msk.f32.vlgmr.msra.gmra.mrb[0].mxu0 %vm121_vm0, %v5886_v11  ;;  %5198 = vmatpush3.bf16.msra.mxu1 %v5195_v12  ;;  %v795_v44 = vld [vmem:[%s7439_s0] sm:$0xff]  ;;  %v819_v46 = vrot.slane %v818_v43, 4  ;;  %v802_v10 = vld [vmem:[%s7362_s10 + $0x8] sm:$0xff]  ;;  %s5698_s0 = smov 16  }
  0x36   :  { %5206 = vmatpush3.bf16.msra.mxu0 %v5867_v6  ;;  %4869 = vmatprep.mubr.msk.f32.mxu0 %vm121_vm0, %v109_v13  ;;  %v826_v47 = vsel %vm825_vm6, %v795_v44, 0.0  ;;  %v799_v60 = vld [vmem:[%s7440_s27] sm:$0xff] }
  0x37   :  { %5200 = vmatprep.subr.bf16.mxu1 %v5199_v14  ;;  %5208 = vmatprep.subr.bf16.mxu0 %v5195_v12  ;;  %v828_v49 = vadd.f32 %v827_v48, %v826_v47  ;;  %v820_v50 = vadd.f32 %v819_v46, %v818_v43  ;;  %v5946_v1 = vpack.c.bf16 %v800_v61, %v799_v60  ;;  %v801_v9 = vld [vmem:[%s7362_s10] sm:$0xff] }
  0x39   :  { %4870 = vmatmul.mubr.msk.f32.vlgmr.msra.gmra.mrb[2].mxu0 %vm121_vm0, %v110_v15  ;;  %5202 = vmatpush3.bf16.msra.mxu1 %v5199_v14  ;;  %v829_v51 = vrot.slane %v828_v49, 4  ;;  %v821_v52 = vrot.slane %v820_v50, 2 }
  0x3a   :  { %5210 = vmatpush3.bf16.msra.mxu0 %v5195_v12 }
  0x3b   :  { %5212 = vmatprep.subr.bf16.mxu0 %v5199_v14  ;;  %v830_v53 = vadd.f32 %v829_v51, %v828_v49  ;;  %v822_v54 = vadd.f32 %v821_v52, %v820_v50 }
  0x3d   :  { %v831_v59 = vrot.slane %v830_v53, 2  ;;  %v823_v62 = vrot.slane %v822_v54, 1 }
  0x3e   :  { %5214 = vmatpush3.bf16.msra.mxu0 %v5199_v14 }
  0x3f   :  { %v832_v5 = vadd.f32 %v831_v59, %v830_v53  ;;  %v824_v8 = vadd.f32 %v823_v62, %v822_v54 }
 0x108   :  { %v4853_v16 = vpop.f32.mrb[0].mxu0 }
 0x109   :  { %v194_v17 = vpop.f32.mrb[1].mxu0 }
 0x10a   :  { %4862 = vmatprep.mubr.msk.f32.mxu1 %vm7396_vm1, %v194_v17  ;;  %v797_v17 = vld [vmem:[%s7443_s29] sm:$0xff] }
 0x10b   :  { %4863 = vmatmul.mubr.msk.f32.vlgmr.msra.gmra.mrb[0].mxu1 %vm7396_vm1, %v4853_v16 }
 0x10c   :  { %v4871_v18 = vpop.f32.mrb[2].mxu0  ;;  %4887 = vmatprep.mubr.msk.f32.mxu1 %vm121_vm0, %v5855_v2 }
 0x10d   :  { %v369_v19 = vpop.f32.mrb[3].mxu0 }
 0x10e   :  { %4880 = vmatprep.mubr.msk.f32.mxu0 %vm7396_vm1, %v369_v19 }
 0x10f   :  { %4881 = vmatmul.mubr.msk.f32.vlgmr.msra.gmra.mrb[4].mxu0 %vm7396_vm1, %v4871_v18  ;;  %v798_v18 = vld [vmem:[%s7443_s29 + $0x8] sm:$0xff]  ;;  %s5699_s29 = smov 24  }
 0x110   :  { %4905 = vmatprep.mubr.msk.f32.mxu0 %vm121_vm0, %v109_v13  ;;  %v5966_v13 = vpack.c.bf16 %v802_v10, %v801_v9 }
 0x1de   :  { %v4864_v21 = vpop.f32.mrb[0].mxu1 }
 0x1df   :  { %v288_v22 = vadd.f32 %v4864_v21, %v4466_v20  ;;  %v282_v23 = vpop.f32.mrb[1].mxu1 }
 0x1e0   :  { %v283_v24 = vadd.f32 %v4466_v20, %v282_v23  ;;  %v5993_v20 = vpack.c.bf16 %v798_v18, %v797_v17  ;;  %v835_v23 = vsel %vm825_vm6, %v797_v17, 0.0 }
 0x1e1   :  { %vm292_vm2 = vcmp.gt.f32.partialorder %v288_v22, 0.0  ;;  %v294_v26 = vmul.f32 0.2, %v288_v22 }
 0x1e2   :  { %vm291_vm3 = vcmp.gt.f32.partialorder %v283_v24, 0.0  ;;  %v293_v27 = vmul.f32 0.2, %v283_v24  ;;  %v4882_v28 = vpop.f32.mrb[4].mxu0  ;;  %v1274_v21 = vsel %vm825_vm6, %v5993_v20, 0 }
 0x1e3   :  { %v462_v29 = vadd.f32 %v4882_v28, %v4471_v25  ;;  %v456_v30 = vpop.f32.mrb[5].mxu0  ;;  %v296_v31 = vsel %vm292_vm2, %v288_v22, %v294_v26  ;;  %v814_v22 = vpack.c.bf16 %v5886_v11, %v5855_v2  ;;  %v1057_v28 = vlaneseq }
 0x1e4   :  { %v457_v32 = vadd.f32 %v4471_v25, %v456_v30  ;;  %v295_v33 = vsel %vm291_vm3, %v283_v24, %v293_v27  ;;  %v836_v24 = vsel %vm825_vm6, %v798_v18, 0.0 }
 0x1e5   :  { %vm466_vm4 = vcmp.gt.f32.partialorder %v462_v29, 0.0  ;;  %v468_v34 = vmul.f32 0.2, %v462_v29  ;;  %v5227_v35 = vpack.c.bf16 %v296_v31, %v295_v33  ;;  %v837_v25 = vadd.f32 %v836_v24, %v835_v23 }
 0x1e6   :  { %vm465_vm5 = vcmp.gt.f32.partialorder %v457_v32, 0.0  ;;  %v467_v36 = vmul.f32 0.2, %v457_v32  ;;  %v1058_v31 = vshrl.u32 %v1057_v28, 7  ;;  %v1221_v43 = vand.u32 127, %v1057_v28 }
 0x1e7   :  { %5228 = vmatprep.subr.bf16.mxu0 %v5227_v35  ;;  %v470_v37 = vsel %vm466_vm4, %v462_v29, %v468_v34  ;;  %v838_v26 = vrot.slane %v837_v25, 4 }
 0x1e8   :  { %5230 = vmatpush3.bf16.msra.mxu0 %v5227_v35  ;;  %v469_v38 = vsel %vm465_vm5, %v457_v32, %v467_v36  ;;  %v6034_v35 = vsub.s32 0, %v1058_v31  ;;  %v1219_v47 = vadd.s32 8, %v1058_v31  ;;  %vm6041_vm9 = vcmp.eq.s32.totalorder %v1058_v31, %v1221_v43 }
 0x1e9   :  { %v5215_v39 = vpack.c.bf16 %v470_v37, %v469_v38  ;;  %5232 = vmatprep.subr.bf16.mxu0 %v5195_v12  ;;  %v839_v27 = vadd.f32 %v838_v26, %v837_v25 }
 0x1ea   :  { %vm6048_vm10 = vcmp.eq.s32.totalorder %v1219_v47, %v1221_v43  ;;  %v7388_v43 = vmov 0  }
 0x1eb   :  { %5216 = vmatprep.subr.bf16.mxu1 %v5215_v39  ;;  %4906 = vmatmul.mubr.msk.f32.vlgmr.msra.gmra.mrb[6].mxu0 %vm121_vm0, %v110_v15  ;;  %v840_v29 = vrot.slane %v839_v27, 2 }
 0x1ec   :  { %5218 = vmatpush3.bf16.msra.mxu1 %v5215_v39  ;;  %5234 = vmatpush3.bf16.msra.mxu0 %v5195_v12 }
 0x1ed   :  { %5220 = vmatprep.subr.bf16.mxu1 %v5195_v12  ;;  %5236 = vmatprep.subr.bf16.mxu0 %v5199_v14  ;;  %v841_v33 = vadd.f32 %v840_v29, %v839_v27 }
 0x1ef   :  { %4888 = vmatmul.mubr.msk.f32.vlgmr.msra.gmra.mrb[2].mxu1 %vm121_vm0, %v5886_v11  ;;  %v842_v36 = vrot.slane %v841_v33, 1 }
 0x1f0   :  { %5222 = vmatpush3.bf16.msra.mxu1 %v5195_v12  ;;  %5238 = vmatpush3.bf16.msra.mxu0 %v5199_v14  ;;  %v5959_v12 = vpack.c.bf16 %v796_v45, %v795_v44 }
 0x1f1   :  { %5224 = vmatprep.subr.bf16.mxu1 %v5199_v14  ;;  %5245 = vmatprep.subr.bf16.mxu0 %v5691_v40  ;;  %v843_v42 = vadd.f32 %v842_v36, %v841_v33 }
 0x1f2   :  { %v1226_v15 = vsel %vm825_vm6, %v5959_v12, 0 }
 0x1f4   :  { %5226 = vmatpush3.bf16.msra.mxu1 %v5199_v14  ;;  %v833_v14 = vrot.slane %v832_v5, 1 }
 0x1f5   :  { %5239 = vmatprep.subr.bf16.mxu1 %v5691_v40 }
 0x1f6   :  { %v834_v19 = vadd.f32 %v833_v14, %v832_v5 }
 0x2be   :  { %v4907_v57 = vpop.f32.mrb[6].mxu0 }
 0x2bf   :  { %v699_v63 = vpop.f32.mrb[7].mxu0 }
 0x2c0   :  { %4916 = vmatprep.mubr.msk.f32.mxu0 %vm7396_vm1, %v699_v63 }
 0x2c1   :  { %4917 = vmatmul.mubr.msk.f32.vlgmr.msra.gmra.mrb[8].mxu0 %vm7396_vm1, %v4907_v57 }
 0x2c2   :  { %v4889_v0 = vpop.f32.mrb[2].mxu1  ;;  %5247 = vmatpush3.bf16.msra.mxu0 %v5936_v58  ;;  %4937 = vmatprep.mubr.msk.f32.mxu0 %vm5692_vm7, %v7390_v4 }
 0x2c3   :  { %v537_v7 = vpop.f32.mrb[3].mxu1  ;;  %4967 = vmatprep.subr.bf16.mxu0 %v7390_v4 }
 0x2c4   :  { %4898 = vmatprep.mubr.msk.f32.mxu1 %vm7396_vm1, %v537_v7 }
 0x2c5   :  { %4899 = vmatmul.mubr.msk.f32.vlgmr.msra.gmra.mrb[4].mxu1 %vm7396_vm1, %v4889_v0  ;;  %4938 = vmatmul.mubr.msk.f32.vlgmr.msra.gmra.mrb[10].mxu0 %vm121_vm0, %v824_v8 }
 0x2c6   :  { %5241 = vmatpush3.bf16.msra.mxu1 %v5946_v1  ;;  %4923 = vmatprep.mubr.msk.f32.mxu1 %vm5692_vm7, %v7390_v4 }
 0x2c7   :  { %5242 = vmatprep.subr.bf16.mxu1 %v5691_v40  ;;  %4969 = vmatprep.mubr.msk.bf16.mxu0 %vm5692_vm7, %v7390_v4 }
 0x2c9   :  { %4924 = vmatmul.mubr.msk.f32.vlgmr.msra.gmra.mrb[6].mxu1 %vm121_vm0, %v824_v8 }
 0x2ca   :  { %5244 = vmatpush3.bf16.msra.mxu1 %v5966_v13  ;;  %4930 = vmatprep.mubr.msk.f32.mxu1 %vm5692_vm7, %v7390_v4 }
 0x2cb   :  { %4968 = vmatpush3.bf16.xpose.msra.mxu0 %v1226_v15  ;;  %5250 = vmatprep.subr.msk.bf16.mxu1 %vm5975_vm8, %v5946_v1 }
 0x2cc   :  { %4973 = vmatprep.subr.bf16.mxu0 %v7390_v4 }
 0x2cd   :  { %4931 = vmatmul.mubr.msk.f32.vlgmr.msra.gmra.mrb[8].mxu1 %vm121_vm0, %v824_v8 }
 0x2ce   :  { %4952 = vmatprep.mubr.msk.f32.mxu1 %vm825_vm6, %v834_v19 }
 0x2d2   :  { %4970 = vmatmul.mubr.msk.bf16.vlgmr.msra.gmra.mrb[12].mxu0 %vm825_vm6, %v5959_v12 }
 0x2d3   :  { %4974 = vmatpush3.bf16.xpose.msra.mxu0 %v1274_v21  ;;  %4975 = vmatprep.mubr.msk.bf16.mxu0 %vm5692_vm7, %v7390_v4 }
 0x2d4   :  { %5253 = vmatpush3.bf16.xpose.msk.msra.mxu1 %vm5975_vm8, %v5946_v1  ;;  %4979 = vmatprep.subr.bf16.mxu0 %v814_v22 }
 0x2d5   :  { %5256 = vmatprep.subr.msk.bf16.mxu1 %vm5975_vm8, %v5966_v13 }
 0x2da   :  { %4976 = vmatmul.mubr.msk.bf16.vlgmr.msra.gmra.mrb[16].mxu0 %vm825_vm6, %v5993_v20 }
 0x2db   :  { %4980 = vmatpush3.bf16.msra.mxu0 %v814_v22 }
 0x2dc   :  { %5259 = vmatpush3.bf16.xpose.msk.msra.mxu1 %vm5975_vm8, %v5966_v13  ;;  %4985 = vmatprep.subr.bf16.mxu0 %v7390_v4 }
 0x2dd   :  { %5262 = vmatprep.subr.msk.bf16.mxu1 %vm5975_vm8, %v5936_v58 }
 0x2e4   :  { %5265 = vmatpush3.bf16.xpose.msk.msra.mxu1 %vm5975_vm8, %v5936_v58 }
 0x2eb   :  { %4953 = vmatmul.mubr.msk.f32.vlgmr.msra.gmra.mrb[10].mxu1 %vm825_vm6, %v834_v19 }
 0x394   :  { %v6026_v30 = vpop.f32.mrb[8].mxu0 }
 0x395   :  { %7444 = vst [vmem:[#allocation14_spill] sm:$0xff] %v6026_v30  ;;  %v6028_v32 = vpop.f32.mrb[9].mxu0 }
 0x396   :  { %7445 = vst [vmem:[#allocation15_spill] sm:$0xff] %v6028_v32 }
 0x398   :  { %v6030_v2 = vpop.f32.mrb[4].mxu1  ;;  %v1053_v11 = vpop.f32.mrb[10].mxu0 }
 0x399   :  { %7446 = vst [vmem:[#allocation16_spill] sm:$0xff] %v6030_v2  ;;  %v6032_v34 = vpop.f32.mrb[5].mxu1  ;;  %v4939_v37 = vpop.f32.mrb[11].mxu0  ;;  %v1068_v49 = vrot.slane %v1053_v11, %v6034_v35 }
 0x39a   :  { %7447 = vst [vmem:[#allocation17_spill] sm:$0xff] %v6032_v34  ;;  %v7466_v34 = vmov 0  }
 0x39c   :  { %v913_v38 = vpop.f32.mrb[6].mxu1 }
 0x39d   :  { %v1060_v39 = vrot.slane %v913_v38, %v6034_v35  ;;  %v4925_v41 = vpop.f32.mrb[7].mxu1 }
 0x39f   :  { %4955 = vmatprep.mubr.msk.f32.mxu1 %vm825_vm6, %v1060_v39 }
 0x3a0   :  { %4956 = vmatmul.mubr.msk.f32.gmra.mrb[12].mxu1 %vm825_vm6, %v1060_v39  ;;  %v983_v44 = vpop.f32.mrb[8].mxu1 }
 0x3a1   :  { %4958 = vmatprep.mubr.msk.f32.mxu1 %vm825_vm6, %v843_v42  ;;  %v1064_v45 = vrot.slane %v983_v44, %v6034_v35  ;;  %v4932_v46 = vpop.f32.mrb[9].mxu1 }
 0x3a4   :  { %4959 = vmatmul.mubr.msk.f32.gmra.mrb[14].mxu1 %vm825_vm6, %v843_v42 }
 0x3a5   :  { %4961 = vmatprep.mubr.msk.f32.mxu1 %vm825_vm6, %v1064_v45  ;;  %v1262_v50 = vpop.f32.mrb[12].mxu0 }
 0x3a6   :  { %v1269_v52 = vsel %vm6041_vm9, 0.0, %v1262_v50  ;;  %v4971_v53 = vpop.f32.mrb[13].mxu0 }
 0x3a7   :  { %v1265_v54 = vpop.f32.mrb[14].mxu0 }
 0x3a8   :  { %4962 = vmatmul.mubr.msk.f32.gmra.mrb[16].mxu1 %vm825_vm6, %v1064_v45  ;;  %v1270_v55 = vsel %vm6048_vm10, 0.0, %v1265_v54  ;;  %v4972_v56 = vpop.f32.mrb[15].mxu0 }
 0x3a9   :  { %4964 = vmatprep.mubr.msk.f32.mxu1 %vm825_vm6, %v1068_v49  ;;  %v1271_v57 = vpack.c.bf16 %v1270_v55, %v1269_v52 }
 0x3ab   :  { %4981 = vmatprep.mubr.msk.bf16.mxu0 %vm121_vm0, %v1271_v57 }
 0x3ac   :  { %4965 = vmatmul.mubr.msk.f32.gmra.mrb[18].mxu1 %vm825_vm6, %v1068_v49 }
 0x3ad   :  { %v1310_v59 = vpop.f32.mrb[16].mxu0 }
 0x3ae   :  { %v1317_v60 = vsel %vm6041_vm9, 0.0, %v1310_v59  ;;  %v4977_v61 = vpop.f32.mrb[17].mxu0 }
 0x3af   :  { %v1313_v62 = vpop.f32.mrb[18].mxu0 }
 0x3b0   :  { %v1318_v63 = vsel %vm6048_vm10, 0.0, %v1313_v62  ;;  %v4978_v0 = vpop.f32.mrb[19].mxu0 }
 0x3b1   :  { %v1319_v5 = vpack.c.bf16 %v1318_v63, %v1317_v60 }
 0x3b3   :  { %4982 = vmatmul.mubr.msk.bf16.vlgmr.msra.gmra.mrb[20].mxu0 %vm121_vm0, %v1319_v5 }
 0x3b4   :  { %4986 = vmatpush3.bf16.msra.mxu0 %v5857_v3  ;;  %4987 = vmatprep.mubr.msk.bf16.mxu0 %vm5692_vm7, %v7390_v4 }
 0x3b5   :  { %5290 = vmatprep.subr.msk.bf16.mxu0 %vm5975_vm8, %v5959_v12 }
 0x3be   :  { %v4954_v7 = vpop.f32.mrb[10].mxu1 }
 0x3bf   :  { %vm1392_vm11 = vcmp.gt.f32.partialorder %v4954_v7, 0.0  ;;  %v1168_v8 = vpop.f32.mrb[11].mxu1 }
 0x3c0   :  { %v4506_v9 = vsel %vm1392_vm11, 1.0, %v7390_v4  ;;  %vm1391_vm12 = vcmp.gt.f32.partialorder %v1168_v8, 0.0  ;;  %v1406_v47 = vsel %vm1392_vm11, 1, %v7388_v43 }
 0x3c1   :  { %v4505_v10 = vsel %vm1391_vm12, 1.0, %v7390_v4  ;;  %v1405_v44 = vsel %vm1391_vm12, 1, %v7388_v43  ;;  %v1453_v52 = vsel %vm121_vm0, %v1406_v47, 0 }
 0x3c2   :  { %v1433_v14 = vpack.c.bf16 %v4506_v9, %v4505_v10  ;;  %v1440_v45 = vsel %vm121_vm0, %v1405_v44, 0  ;;  %v1454_v55 = vand.u32 65535, %v1453_v52  ;;  %v1455_v61 = vshrl.u32 %v1453_v52, 16 }
 0x3c3   :  { %v1442_v46 = vshrl.u32 %v1440_v45, 16  ;;  %v1441_v50 = vand.u32 65535, %v1440_v45 }
 0x3c4   :  { %4988 = vmatmul.mubr.msk.bf16.vlgmr.msra.gmra.mrb[24].mxu0 %vm121_vm0, %v1433_v14  ;;  %v1456_v59 = vcvt.s32.f32 %v1454_v55  ;;  %v1457_v8 = vcvt.s32.f32 %v1455_v61 }
 0x3c5   :  { %4991 = vmatprep.mubr.msk.bf16.mxu0 %vm5692_vm7, %v7390_v4  ;;  %5293 = vmatpush3.bf16.xpose.msk.msra.mxu0 %vm5975_vm8, %v5959_v12  ;;  %v1444_v49 = vcvt.s32.f32 %v1442_v46  ;;  %v1443_v54 = vcvt.s32.f32 %v1441_v50 }
 0x3c6   :  { %5296 = vmatprep.subr.msk.bf16.mxu0 %vm5975_vm8, %v5993_v20 }
 0x3cd   :  { %5299 = vmatpush3.bf16.xpose.msk.msra.mxu0 %vm5975_vm8, %v5993_v20 }
 0x3ce   :  { %5107 = vmatprep.subr.bf16.mxu0 %v7390_v4 }
 0x473   :  { %v4957_v3 = vpop.f32.mrb[12].mxu1 }
 0x474   :  { %vm1394_vm13 = vcmp.gt.f32.partialorder %v4957_v3, 0.0  ;;  %v1178_v15 = vpop.f32.mrb[13].mxu1 }
 0x475   :  { %v4508_v17 = vsel %vm1394_vm13, 1.0, %v7390_v4  ;;  %vm1393_vm14 = vcmp.gt.f32.partialorder %v1178_v15, 0.0  ;;  %v1408_v53 = vsel %vm1394_vm13, 1, %v7388_v43 }
 0x476   :  { %v4507_v18 = vsel %vm1393_vm14, 1.0, %v7390_v4  ;;  %v1479_v56 = vsel %vm121_vm0, %v1408_v53, 0  ;;  %v1407_v57 = vsel %vm1393_vm14, 1, %v7388_v43 }
 0x477   :  { %v1434_v19 = vpack.c.bf16 %v4508_v17, %v4507_v18  ;;  %v4960_v21 = vpop.f32.mrb[14].mxu1  ;;  %v1481_v60 = vshrl.u32 %v1479_v56, 16  ;;  %v1466_v62 = vsel %vm121_vm0, %v1407_v57, 0  ;;  %v1480_v5 = vand.u32 65535, %v1479_v56 }
 0x478   :  { %v1188_v22 = vpop.f32.mrb[15].mxu1  ;;  %v1468_v9 = vshrl.u32 %v1466_v62, 16  ;;  %v1467_v18 = vand.u32 65535, %v1466_v62 }
 0x479   :  { %1377 = vrot.lane.b32.xlu0 %v1188_v22, %s5694_s23  ;;  %4992 = vmatmul.mubr.msk.bf16.gmra.mrb[28].mxu0 %vm121_vm0, %v1434_v19  ;;  %v1483_v0 = vcvt.s32.f32 %v1481_v60  ;;  %v1482_v3 = vcvt.s32.f32 %v1480_v5 }
 0x47a   :  { %4995 = vmatprep.mubr.msk.bf16.mxu0 %vm5692_vm7, %v7390_v4  ;;  %v1470_v17 = vcvt.s32.f32 %v1468_v9  ;;  %v808_v9 = vld [vmem:[%s7364_s12 + $0x18] sm:$0xff] }
 0x47b   :  { %v4963_v16 = vpop.f32.mrb[16].mxu1 }
 0x47c   :  { %vm1400_vm15 = vcmp.gt.f32.partialorder %v4963_v16, 0.0  ;;  %v1198_v23 = vpop.f32.mrb[17].mxu1 }
 0x47d   :  { %v6098_v24 = vsel %vm1400_vm15, 1.0, %v7390_v4  ;;  %vm1399_vm2 = vcmp.gt.f32.partialorder %v1198_v23, 0.0  ;;  %1379 = vrot.lane.b32.xlu0 %v4960_v21, %s5694_s23  ;;  %v1414_v63 = vsel %vm1400_vm15, 1, %v7388_v43 }
 0x47e   :  { %v6103_v25 = vsel %vm1399_vm2, 1.0, %v7390_v4  ;;  %v1557_v7 = vsel %vm121_vm0, %v1414_v63, 0  ;;  %v1413_v10 = vsel %vm1399_vm2, 1, %v7388_v43  ;;  %v805_v63 = vld [vmem:[%s7364_s12] sm:$0xff] }
 0x47f   :  { %v1437_v26 = vpack.c.bf16 %v6098_v24, %v6103_v25  ;;  %v4966_v27 = vpop.f32.mrb[18].mxu1  ;;  %v1559_v15 = vshrl.u32 %v1557_v7, 16  ;;  %v1544_v19 = vsel %vm121_vm0, %v1413_v10, 0  ;;  %v1558_v23 = vand.u32 65535, %v1557_v7 }
 0x480   :  { %v1208_v28 = vpop.f32.mrb[19].mxu1  ;;  %v1545_v46 = vand.u32 65535, %v1544_v19 }
 0x481   :  { %1385 = vrot.lane.b32.xlu1 %v1208_v28, %s5695_s9  ;;  %v1561_v16 = vcvt.s32.f32 %v1559_v15  ;;  %v1469_v28 = vcvt.s32.f32 %v1467_v18  ;;  %v1560_v44 = vcvt.s32.f32 %v1558_v23 }
 0x482   :  { %v1547_v52 = vcvt.s32.f32 %v1545_v46 }
 0x485   :  { %1387 = vrot.lane.b32.xlu1 %v4966_v27, %s5695_s9 }
 0x486   :  { %v4983_v29 = vpop.f32.mrb[20].mxu0 }
 0x487   :  { %vm1401_vm3 = vcmp.gt.f32.partialorder %v4983_v29, 0.0  ;;  %v6109_v31 = vpop.f32.mrb[21].mxu0 }
 0x488   :  { %v6113_v33 = vsel %vm1401_vm3, 1.0, %v7390_v4  ;;  %vm1395_vm4 = vcmp.gt.f32.partialorder %v6109_v31, 0.0  ;;  %v4984_v11 = vpop.f32.mrb[22].mxu0  ;;  %v1415_v27 = vsel %vm1401_vm3, 1, %v7388_v43 }
 0x489   :  { %v4509_v36 = vsel %vm1395_vm4, 1.0, %v7390_v4  ;;  %vm1402_vm5 = vcmp.gt.f32.partialorder %v4984_v11, 0.0  ;;  %v1363_v37 = vpop.f32.mrb[23].mxu0  ;;  %v1546_v11 = vshrl.u32 %v1544_v19, 16 }
 0x48a   :  { %v6121_v38 = vsel %vm1402_vm5, 1.0, %v7390_v4  ;;  %vm1396_vm8 = vcmp.gt.f32.partialorder %v1363_v37, 0.0  ;;  %v1416_v14 = vsel %vm1402_vm5, 1, %v7388_v43  ;;  %v1409_v37 = vsel %vm1395_vm4, 1, %v7388_v43 }
 0x48b   :  { %v1438_v39 = vpack.c.bf16 %v6121_v38, %v6113_v33  ;;  %v4510_v41 = vsel %vm1396_vm8, 1.0, %v7390_v4  ;;  %v6151_v21 = vsel %vm121_vm0, %v1416_v14, 0  ;;  %v1410_v22 = vsel %vm1396_vm8, 1, %v7388_v43  ;;  %v4552_v33 = vld [vmem:[%s7368_s16 + $0x1] ss:$0 sm:$0xff] }
 0x48c   :  { %v1435_v42 = vpack.c.bf16 %v4510_v41, %v4509_v36  ;;  %v1585_v36 = vshrl.u32 %v6151_v21, 16  ;;  %v1505_v41 = vsel %vm121_vm0, %v1410_v22, 0  ;;  %v1548_v45 = vcvt.s32.f32 %v1546_v11 }
 0x48d   :  { %v1507_v47 = vshrl.u32 %v1505_v41, 16  ;;  %v1492_v50 = vsel %vm121_vm0, %v1409_v37, 0 }
 0x48e   :  { %4996 = vmatmul.mubr.msk.bf16.gmra.mrb[32].mxu0 %vm121_vm0, %v1435_v42  ;;  %v6160_v42 = vsel %vm121_vm0, %v1415_v27, 0  ;;  %v1587_v29 = vcvt.s32.f32 %v1585_v36  ;;  %v1494_v56 = vshrl.u32 %v1492_v50, 16 }
 0x48f   :  { %4999 = vmatprep.mubr.msk.bf16.mxu0 %vm5692_vm7, %v7390_v4  ;;  %v1509_v53 = vcvt.s32.f32 %v1507_v47  ;;  %v1571_v37 = vand.u32 65535, %v6160_v42 }
 0x490   :  { %v1496_v57 = vcvt.s32.f32 %v1494_v56 }
 0x497   :  { %v6167_v60 = vpop.f32.mrb[24].mxu0 }
 0x498   :  { %v4989_v62 = vpop.f32.mrb[25].mxu0 }
 0x499   :  { %v6175_v7 = vpop.f32.mrb[26].mxu0 }
 0x49a   :  { %v4990_v10 = vpop.f32.mrb[27].mxu0 }
 0x49c   :  { %1447 = vadd.xlane.f32.xlu0 %v1444_v49  ;;  %v1572_v49 = vshrl.u32 %v6160_v42, 16 }
 0x49e   :  { %v1574_v55 = vcvt.s32.f32 %v1572_v49 }
 0x4a0   :  { %1445 = vadd.xlane.f32.xlu0 %v1443_v54  ;;  %v1506_v54 = vand.u32 65535, %v1505_v41 }
 0x4a2   :  { %v1508_v31 = vcvt.s32.f32 %v1506_v54 }
 0x4a4   :  { %1458 = vadd.xlane.f32.xlu0 %v1456_v59  ;;  %v1493_v59 = vand.u32 65535, %v1492_v50 }
 0x4a6   :  { %v1495_v61 = vcvt.s32.f32 %v1493_v59 }
 0x4a8   :  { %1486 = vadd.xlane.f32.xlu0 %v1483_v0  ;;  %v806_v0 = vld [vmem:[%s7364_s12 + $0x8] sm:$0xff] }
 0x4a9   :  { %1460 = vadd.xlane.f32.xlu1 %v1457_v8  ;;  %v5266_v5 = vpack.c.bf16 %v806_v0, %v805_v63  ;;  %v807_v8 = vld [vmem:[%s7364_s12 + $0x10] sm:$0xff] }
 0x4aa   :  { %v5270_v14 = vpack.c.bf16 %v808_v9, %v807_v8 }
 0x4ab   :  { %5267 = vmatprep.subr.bf16.mxu1 %v5266_v5 }
 0x4ac   :  { %1484 = vadd.xlane.f32.xlu0 %v1482_v3  ;;  %5269 = vmatpush3.bf16.msra.mxu1 %v5266_v5 }
 0x4ad   :  { %1473 = vadd.xlane.f32.xlu1 %v1470_v17  ;;  %5271 = vmatprep.subr.bf16.mxu1 %v5270_v14 }
 0x4b0   :  { %1564 = vadd.xlane.f32.xlu0 %v1561_v16  ;;  %5273 = vmatpush3.bf16.msra.mxu1 %v5270_v14 }
 0x4b1   :  { %1471 = vadd.xlane.f32.xlu1 %v1469_v28 }
 0x4b4   :  { %1562 = vadd.xlane.f32.xlu0 %v1560_v44 }
 0x4b5   :  { %1551 = vadd.xlane.f32.xlu1 %v1548_v45 }
 0x4b8   :  { %1590 = vadd.xlane.f32.xlu0 %v1587_v29 }
 0x4b9   :  { %1549 = vadd.xlane.f32.xlu1 %v1547_v52  ;;  %v1584_v52 = vand.u32 65535, %v6151_v21 }
 0x4bc   :  { %1512 = vadd.xlane.f32.xlu0 %v1509_v53  ;;  %v1573_v53 = vcvt.s32.f32 %v1571_v37 }
 0x4bd   :  { %1577 = vadd.xlane.f32.xlu1 %v1574_v55 }
 0x4c0   :  { %1510 = vadd.xlane.f32.xlu0 %v1508_v31 }
 0x4c1   :  { %1499 = vadd.xlane.f32.xlu1 %v1496_v57  ;;  %v1586_v57 = vcvt.s32.f32 %v1584_v52 }
 0x4c5   :  { %1497 = vadd.xlane.f32.xlu1 %v1495_v61 }
 0x4eb   :  { %v1378_v3 = vpop.permute.xlu0 %1377 }
 0x4ec   :  { %vm1397_vm11 = vcmp.gt.f32.partialorder %v1378_v3, 0.0 }
 0x4ed   :  { %v1411_v15 = vsel %vm1397_vm11, 1, %v7388_v43  ;;  %v4511_v22 = vsel %vm1397_vm11, 1.0, %v7390_v4 }
 0x4ee   :  { %v1518_v17 = vsel %vm121_vm0, %v1411_v15, 0 }
 0x4ef   :  { %v1380_v18 = vpop.permute.xlu0 %1379  ;;  %v1520_v19 = vshrl.u32 %v1518_v17, 16  ;;  %v1519_v28 = vand.u32 65535, %v1518_v17 }
 0x4f0   :  { %vm1398_vm12 = vcmp.gt.f32.partialorder %v1380_v18, 0.0 }
 0x4f1   :  { %v1412_v16 = vsel %vm1398_vm12, 1, %v7388_v43  ;;  %v4512_v23 = vsel %vm1398_vm12, 1.0, %v7390_v4  ;;  %v1522_v27 = vcvt.s32.f32 %v1520_v19  ;;  %v1521_v46 = vcvt.s32.f32 %v1519_v28 }
 0x4f2   :  { %v1436_v11 = vpack.c.bf16 %v4512_v23, %v4511_v22  ;;  %v1531_v36 = vsel %vm121_vm0, %v1412_v16, 0 }
 0x4f3   :  { %v1386_v41 = vpop.permute.xlu1 %1385  ;;  %1525 = vadd.xlane.f32.xlu1 %v1522_v27  ;;  %v1533_v44 = vshrl.u32 %v1531_v36, 16  ;;  %v1532_v47 = vand.u32 65535, %v1531_v36 }
 0x4f4   :  { %vm1403_vm13 = vcmp.gt.f32.partialorder %v1386_v41, 0.0  ;;  %5000 = vmatmul.mubr.msk.bf16.gmra.mrb[36].mxu0 %vm121_vm0, %v1436_v11 }
 0x4f5   :  { %v1417_v45 = vsel %vm1403_vm13, 1, %v7388_v43  ;;  %v1535_v29 = vcvt.s32.f32 %v1533_v44  ;;  %5003 = vmatprep.mubr.msk.bf16.mxu0 %vm5692_vm7, %v7390_v4  ;;  %v1534_v54 = vcvt.s32.f32 %v1532_v47 }
 0x4f6   :  { %v1596_v49 = vsel %vm121_vm0, %v1417_v45, 0 }
 0x4f7   :  { %v1388_v50 = vpop.permute.xlu1 %1387  ;;  %1523 = vadd.xlane.f32.xlu1 %v1521_v46  ;;  %1538 = vadd.xlane.f32.xlu0 %v1535_v29  ;;  %v1598_v55 = vshrl.u32 %v1596_v49, 16  ;;  %v1597_v59 = vand.u32 65535, %v1596_v49 }
 0x4f8   :  { %vm1404_vm14 = vcmp.gt.f32.partialorder %v1388_v50, 0.0 }
 0x4f9   :  { %v1418_v42 = vsel %vm1404_vm14, 1, %v7388_v43  ;;  %v1600_v31 = vcvt.s32.f32 %v1598_v55  ;;  %v1599_v61 = vcvt.s32.f32 %v1597_v59  ;;  %v4518_v25 = vsel %vm1404_vm14, 1.0, %v7390_v4 }
 0x4fa   :  { %v1609_v56 = vsel %vm121_vm0, %v1418_v42, 0 }
 0x4fb   :  { %1575 = vadd.xlane.f32.xlu1 %v1573_v53  ;;  %1536 = vadd.xlane.f32.xlu0 %v1534_v54  ;;  %v1611_v21 = vshrl.u32 %v1609_v56, 16  ;;  %v1610_v63 = vand.u32 65535, %v1609_v56 }
 0x4fc   :  { %5004 = vmatmul.mubr.msk.bf16.gmra.mrb[40].mxu0 %vm121_vm0, %v1437_v26  ;;  %v4517_v26 = vsel %vm1403_vm13, 1.0, %v7390_v4 }
 0x4fd   :  { %5007 = vmatprep.mubr.msk.bf16.mxu0 %vm5692_vm7, %v7390_v4  ;;  %v1613_v62 = vcvt.s32.f32 %v1611_v21  ;;  %v1612_v24 = vcvt.s32.f32 %v1610_v63  ;;  %v1439_v0 = vpack.c.bf16 %v4518_v25, %v4517_v26 }
 0x4ff   :  { %1603 = vadd.xlane.f32.xlu1 %v1600_v31  ;;  %1588 = vadd.xlane.f32.xlu0 %v1586_v57 }
 0x503   :  { %1601 = vadd.xlane.f32.xlu1 %v1599_v61  ;;  %1616 = vadd.xlane.f32.xlu0 %v1613_v62 }
 0x504   :  { %5008 = vmatmul.mubr.msk.bf16.gmra.mrb[44].mxu0 %vm121_vm0, %v1438_v39 }
 0x505   :  { %5011 = vmatprep.mubr.msk.bf16.mxu0 %vm5692_vm7, %v7390_v4 }
 0x507   :  { %1614 = vadd.xlane.f32.xlu0 %v1612_v24 }
 0x50c   :  { %5012 = vmatmul.mubr.msk.bf16.gmra.mrb[48].mxu0 %vm121_vm0, %v1439_v0 }
 0x51d   :  { %2190 = vrot.lane.b32.xlu0 %v4552_v33, %s5697_s8 }
 0x529   :  { %v1448_v38 = vpop.xlane.xlu0 %1447 }
 0x52a   :  { %v1450_v39 = vcvt.f32.s32 %v1448_v38 }
 0x52c   :  { %v1451_v8 = vshll.u32 %v1450_v39, 16 }
 0x52d   :  { %v1446_v5 = vpop.xlane.xlu0 %1445 }
 0x52e   :  { %v1449_v9 = vcvt.f32.s32 %v1446_v5 }
 0x530   :  { %v1452_v10 = vadd.s32 %v1451_v8, %v1449_v9 }
 0x531   :  { %v1459_v14 = vpop.xlane.xlu0 %1458 }
 0x532   :  { %v1622_v3 = vcvt.s32.f32 %v1452_v10  ;;  %v1462_v16 = vcvt.f32.s32 %v1459_v14 }
 0x534   :  { %v1636_v15 = vmax.f32 %v1622_v3, 1.0 }
 0x535   :  { %v1487_v17 = vpop.xlane.xlu0 %1486 }
 0x536   :  { %5337 = vrcp.f32 %v1636_v15  ;;  %v1489_v18 = vcvt.f32.s32 %v1487_v17  ;;  %v1461_v19 = vpop.xlane.xlu1 %1460 }
 0x537   :  { %v1463_v22 = vcvt.f32.s32 %v1461_v19 }
 0x538   :  { %v1490_v28 = vshll.u32 %v1489_v18, 16 }
 0x539   :  { %v1464_v23 = vshll.u32 %v1463_v22, 16  ;;  %v1485_v27 = vpop.xlane.xlu0 %1484 }
 0x53a   :  { %v1488_v11 = vcvt.f32.s32 %v1485_v27  ;;  %v1474_v36 = vpop.xlane.xlu1 %1473 }
 0x53b   :  { %v1465_v41 = vadd.s32 %v1464_v23, %v1462_v16  ;;  %v1476_v44 = vcvt.f32.s32 %v1474_v36  ;;  %v4554_v36 = vld [vmem:[%s7367_s15 + $0x2] ss:$0 sm:$0xff] }
 0x53c   :  { %v1491_v37 = vadd.s32 %v1490_v28, %v1488_v11  ;;  %2226 = vrot.lane.b32.xlu0 %v4554_v36, %s5698_s0 }
 0x53d   :  { %v1623_v45 = vcvt.s32.f32 %v1465_v41  ;;  %v6221_v46 = vpop.xlane.xlu0 %1564  ;;  %v1477_v49 = vshll.u32 %v1476_v44, 16  ;;  %v810_v41 = vld [vmem:[%s7366_s14] sm:$0xff]  ;;  %v811_v44 = vld [vmem:[%s7366_s14 + $0x8] sm:$0xff] }
 0x53e   :  { %v1472_v29 = vpop.xlane.xlu1 %1471  ;;  %v1625_v42 = vcvt.s32.f32 %v1491_v37  ;;  %v5274_v37 = vpack.c.bf16 %v811_v44, %v810_v41 }
 0x53f   :  { %v1637_v47 = vmax.f32 %v1623_v45, 1.0  ;;  %v1475_v50 = vcvt.f32.s32 %v1472_v29  ;;  %v4558_v45 = vld [vmem:[%s7368_s16 + $0x2] ss:$0 sm:$0xff] }
 0x540   :  { %v5338_v52 = vpop.eup %5337  ;;  %v1639_v57 = vmax.f32 %v1625_v42, 1.0  ;;  %2266 = vrot.lane.b32.xlu0 %v4558_v45, %s5698_s0  ;;  %5275 = vmatprep.subr.bf16.mxu1 %v5274_v37 }
 0x541   :  { %5339 = vrcp.f32 %v1637_v47  ;;  %v1478_v53 = vadd.s32 %v1477_v49, %v1475_v50  ;;  %v6224_v54 = vmul.f32 %v5338_v52, %v6167_v60  ;;  %v6226_v55 = vpop.xlane.xlu0 %1562  ;;  %v812_v50 = vld [vmem:[%s7366_s14 + $0x10] sm:$0xff]  ;;  %v813_v52 = vld [vmem:[%s7366_s14 + $0x18] sm:$0xff]  ;;  %s5703_s14 = smov 40  }
 0x542   :  { %v6228_v56 = vpop.xlane.xlu1 %1551 }
 0x543   :  { %7452 = vst [vmem:[#allocation18_spill] sm:$0xff] %v6224_v54  ;;  %v1624_v31 = vcvt.s32.f32 %v1478_v53  ;;  %5023 = vmatprep.mubr.msk.f32.mxu1 %vm7396_vm1, %v6224_v54  ;;  %v5278_v53 = vpack.c.bf16 %v813_v52, %v812_v50 }
 0x545   :  { %v1638_v59 = vmax.f32 %v1624_v31, 1.0  ;;  %v6232_v21 = vpop.xlane.xlu0 %1590 }
 0x546   :  { %v6234_v61 = vpop.xlane.xlu1 %1549 }
 0x547   :  { %5341 = vrcp.f32 %v1638_v59 }
 0x548   :  { %5343 = vrcp.f32 %v1639_v57 }
 0x549   :  { %v1513_v62 = vpop.xlane.xlu0 %1512 }
 0x54a   :  { %v6236_v63 = vpop.xlane.xlu1 %1577  ;;  %v1515_v60 = vcvt.f32.s32 %v1513_v62 }
 0x54b   :  { %v5340_v24 = vpop.eup %5339 }
 0x54c   :  { %v6239_v25 = vmul.f32 %v5340_v24, %v6175_v7  ;;  %v1713_v26 = vpop.f32.mrb[28].mxu0  ;;  %v1516_v0 = vshll.u32 %v1515_v60, 16  ;;  %v4548_v60 = vld [vmem:[%s7367_s15 + $0x1] ss:$0 sm:$0xff]  ;;  %v4561_v24 = vld [vmem:[%s7367_s15 + $0x3] ss:$0 sm:$0xff] }
 0x54d   :  { %v4993_v33 = vpop.f32.mrb[29].mxu0  ;;  %v1511_v38 = vpop.xlane.xlu0 %1510  ;;  %2150 = vrot.lane.b32.xlu1 %v4548_v60, %s5697_s8  ;;  %2336 = vrot.lane.b32.xlu0 %v4561_v24, %s5699_s29 }
 0x54e   :  { %7453 = vst [vmem:[#allocation19_spill] sm:$0xff] %v6239_v25  ;;  %v1716_v39 = vpop.f32.mrb[30].mxu0  ;;  %5024 = vmatmul.mubr.msk.f32.vlgmr.msra.gmra.mrb[20].mxu1 %vm7396_vm1, %v6239_v25  ;;  %v1500_v5 = vpop.xlane.xlu1 %1499  ;;  %v1514_v8 = vcvt.f32.s32 %v1511_v38 }
 0x54f   :  { %v4994_v9 = vpop.f32.mrb[31].mxu0  ;;  %v1502_v10 = vcvt.f32.s32 %v1500_v5  ;;  %5277 = vmatpush3.bf16.msra.mxu1 %v5274_v37 }
 0x550   :  { %v1517_v14 = vadd.s32 %v1516_v0, %v1514_v8  ;;  %5279 = vmatprep.subr.bf16.mxu1 %v5278_v53 }
 0x551   :  { %v5342_v3 = vpop.eup %5341  ;;  %v1503_v15 = vshll.u32 %v1502_v10, 16 }
 0x552   :  { %v5344_v17 = vpop.eup %5343  ;;  %v6243_v18 = vmul.f32 %v5342_v3, %v1713_v26  ;;  %v1498_v7 = vpop.xlane.xlu1 %1497  ;;  %v1627_v19 = vcvt.s32.f32 %v1517_v14  ;;  %v4565_v26 = vld [vmem:[%s7368_s16 + $0x3] ss:$0 sm:$0xff] }
 0x553   :  { %v6245_v22 = vmul.f32 %v5344_v17, %v1716_v39  ;;  %v1501_v16 = vcvt.f32.s32 %v1498_v7  ;;  %5281 = vmatpush3.bf16.msra.mxu1 %v5278_v53  ;;  %2376 = vrot.lane.b32.xlu0 %v4565_v26, %s5699_s29  ;;  %v1554_v17 = vcvt.f32.s32 %v6228_v56 }
 0x554   :  { %7454 = vst [vmem:[#allocation20_spill] sm:$0xff] %v6243_v18  ;;  %5026 = vmatprep.mubr.msk.f32.mxu1 %vm7396_vm1, %v6243_v18  ;;  %v1641_v23 = vmax.f32 %v1627_v19, 1.0  ;;  %5282 = vmatprep.subr.bf16.mxu1 %v5691_v40  ;;  %v1567_v19 = vcvt.f32.s32 %v6221_v46  ;;  %v1593_v46 = vcvt.f32.s32 %v6232_v21 }
 0x555   :  { %5027 = vmatmul.mubr.msk.f32.gmra.mrb[22].mxu1 %vm7396_vm1, %v6245_v22  ;;  %v1504_v27 = vadd.s32 %v1503_v15, %v1501_v16  ;;  %v1553_v16 = vcvt.f32.s32 %v6234_v61 }
 0x556   :  { %5345 = vrcp.f32 %v1641_v23  ;;  %v1568_v44 = vshll.u32 %v1567_v19, 16 }
 0x557   :  { %v1626_v28 = vcvt.s32.f32 %v1504_v27 }
 0x559   :  { %v1640_v11 = vmax.f32 %v1626_v28, 1.0  ;;  %v1566_v28 = vcvt.f32.s32 %v6226_v55 }
 0x55b   :  { %5347 = vrcp.f32 %v1640_v11  ;;  %v1555_v11 = vshll.u32 %v1554_v17, 16 }
 0x55d   :  { %v1556_v37 = vadd.s32 %v1555_v11, %v1553_v16 }
 0x55f   :  { %v1630_v50 = vcvt.s32.f32 %v1556_v37  ;;  %v6316_v37 = vld [vmem:[%s7436_s3 + $0x8] sm:$0xff] }
 0x560   :  { %v5346_v47 = vpop.eup %5345 }
 0x561   :  { %v1721_v29 = vpop.f32.mrb[32].mxu0 }
 0x562   :  { %v4997_v49 = vpop.f32.mrb[33].mxu0 }
 0x563   :  { %v1724_v42 = vpop.f32.mrb[34].mxu0 }
 0x564   :  { %v4998_v31 = vpop.f32.mrb[35].mxu0  ;;  %v6271_v59 = vmul.f32 %v5346_v47, %v1724_v42  ;;  %v1580_v47 = vcvt.f32.s32 %v6236_v63 }
 0x565   :  { %v5348_v57 = vpop.eup %5347  ;;  %v1644_v31 = vmax.f32 %v1630_v50, 1.0 }
 0x566   :  { %7455 = vst [vmem:[#allocation21_spill] sm:$0xff] %v6271_v59  ;;  %v6273_v62 = vmul.f32 %v5348_v57, %v1721_v29  ;;  %v1569_v29 = vadd.s32 %v1568_v44, %v1566_v28  ;;  %v1581_v53 = vshll.u32 %v1580_v47, 16  ;;  %v1594_v57 = vshll.u32 %v1593_v46, 16 }
 0x568   :  { %7456 = vst [vmem:[#allocation22_spill] sm:$0xff] %v6273_v62  ;;  %5029 = vmatprep.mubr.msk.f32.mxu1 %vm7396_vm1, %v6273_v62  ;;  %v1631_v42 = vcvt.s32.f32 %v1569_v29 }
 0x569   :  { %5030 = vmatmul.mubr.msk.f32.gmra.mrb[24].mxu1 %vm7396_vm1, %v6271_v59 }
 0x56a   :  { %v1645_v26 = vmax.f32 %v1631_v42, 1.0 }
 0x580   :  { %v1526_v0 = vpop.xlane.xlu1 %1525 }
 0x581   :  { %v1528_v39 = vcvt.f32.s32 %v1526_v0 }
 0x583   :  { %v1529_v10 = vshll.u32 %v1528_v39, 16 }
 0x584   :  { %v1539_v33 = vpop.xlane.xlu0 %1538  ;;  %v1524_v38 = vpop.xlane.xlu1 %1523 }
 0x585   :  { %v1527_v8 = vcvt.f32.s32 %v1524_v38  ;;  %v1541_v9 = vcvt.f32.s32 %v1539_v33 }
 0x587   :  { %v1530_v3 = vadd.s32 %v1529_v10, %v1527_v8  ;;  %v1542_v15 = vshll.u32 %v1541_v9, 16 }
 0x588   :  { %v1537_v5 = vpop.xlane.xlu0 %1536  ;;  %v1576_v27 = vpop.xlane.xlu1 %1575 }
 0x589   :  { %v1540_v14 = vcvt.f32.s32 %v1537_v5  ;;  %v1628_v23 = vcvt.s32.f32 %v1530_v3  ;;  %v1579_v61 = vcvt.f32.s32 %v1576_v27 }
 0x58b   :  { %v1543_v7 = vadd.s32 %v1542_v15, %v1540_v14  ;;  %v1642_v45 = vmax.f32 %v1628_v23, 1.0  ;;  %v1582_v60 = vadd.s32 %v1581_v53, %v1579_v61 }
 0x58c   :  { %v1589_v41 = vpop.xlane.xlu0 %1588  ;;  %v1604_v56 = vpop.xlane.xlu1 %1603 }
 0x58d   :  { %v1629_v36 = vcvt.s32.f32 %v1543_v7  ;;  %5349 = vrcp.f32 %v1642_v45  ;;  %v1592_v55 = vcvt.f32.s32 %v1589_v41  ;;  %v1606_v0 = vcvt.f32.s32 %v1604_v56  ;;  %v6309_v41 = vld [vmem:[%s7436_s3] sm:$0xff] }
 0x58e   :  { %v1632_v38 = vcvt.s32.f32 %v1582_v60  ;;  %v2650_v44 = vsel %vm121_vm0, %v6309_v41, 0.0  ;;  %v2651_v45 = vsel %vm121_vm0, %v6316_v37, 0.0 }
 0x58f   :  { %v1643_v49 = vmax.f32 %v1629_v36, 1.0  ;;  %v1595_v33 = vadd.s32 %v1594_v57, %v1592_v55  ;;  %v1607_v8 = vshll.u32 %v1606_v0, 16  ;;  %v2652_v50 = vadd.f32 %v2651_v45, %v2650_v44 }
 0x590   :  { %v1617_v52 = vpop.xlane.xlu0 %1616  ;;  %v1602_v24 = vpop.xlane.xlu1 %1601  ;;  %v1646_v7 = vmax.f32 %v1632_v38, 1.0 }
 0x591   :  { %5351 = vrcp.f32 %v1643_v49  ;;  %v1605_v39 = vcvt.f32.s32 %v1602_v24  ;;  %v1619_v5 = vcvt.f32.s32 %v1617_v52  ;;  %v1633_v9 = vcvt.s32.f32 %v1595_v33 }
 0x592   :  { %5353 = vrcp.f32 %v1644_v31  ;;  %v2653_v60 = vrot.slane %v2652_v50, 4 }
 0x593   :  { %5355 = vrcp.f32 %v1645_v26  ;;  %v1608_v19 = vadd.s32 %v1607_v8, %v1605_v39  ;;  %v1620_v16 = vshll.u32 %v1619_v5, 16  ;;  %v1647_v11 = vmax.f32 %v1633_v9, 1.0 }
 0x594   :  { %v1615_v63 = vpop.xlane.xlu0 %1614  ;;  %5357 = vrcp.f32 %v1646_v7  ;;  %v2654_v0 = vadd.f32 %v2653_v60, %v2652_v50 }
 0x595   :  { %v1618_v10 = vcvt.f32.s32 %v1615_v63  ;;  %v1634_v29 = vcvt.s32.f32 %v1608_v19  ;;  %5359 = vrcp.f32 %v1647_v11  ;;  %v5603_v11 = vld [vmem:[%s7434_s30] sm:$0xff] }
 0x596   :  { %v2655_v8 = vrot.slane %v2654_v0, 2 }
 0x597   :  { %v5350_v21 = vpop.eup %5349  ;;  %v1621_v36 = vadd.s32 %v1620_v16, %v1618_v10  ;;  %v1648_v42 = vmax.f32 %v1634_v29, 1.0 }
 0x599   :  { %v1635_v49 = vcvt.s32.f32 %v1621_v36  ;;  %5361 = vrcp.f32 %v1648_v42  ;;  %v5604_v36 = vld [vmem:[%s7434_s30 + $0x8] sm:$0xff] }
 0x59b   :  { %v5352_v17 = vpop.eup %5351  ;;  %v1649_v57 = vmax.f32 %v1635_v49, 1.0 }
 0x59c   :  { %v5354_v47 = vpop.eup %5353 }
 0x59d   :  { %v5356_v52 = vpop.eup %5355  ;;  %5363 = vrcp.f32 %v1649_v57 }
 0x59e   :  { %v5358_v24 = vpop.eup %5357 }
 0x59f   :  { %v5360_v38 = vpop.eup %5359 }
 0x5a3   :  { %v5362_v9 = vpop.eup %5361 }
 0x5a7   :  { %v5364_v7 = vpop.eup %5363 }
 0x5c7   :  { %v1729_v14 = vpop.f32.mrb[36].mxu0 }
 0x5c8   :  { %v6298_v3 = vmul.f32 %v5350_v21, %v1729_v14  ;;  %v5001_v15 = vpop.f32.mrb[37].mxu0 }
 0x5c9   :  { %v1732_v23 = vpop.f32.mrb[38].mxu0 }
 0x5ca   :  { %7457 = vst [vmem:[#allocation23_spill] sm:$0xff] %v6298_v3  ;;  %v6300_v27 = vmul.f32 %v5352_v17, %v1732_v23  ;;  %v5002_v28 = vpop.f32.mrb[39].mxu0  ;;  %5032 = vmatprep.mubr.msk.f32.mxu1 %vm7396_vm1, %v6298_v3  ;;  %v2656_v17 = vadd.f32 %v2655_v8, %v2654_v0 }
 0x5cc   :  { %7458 = vst [vmem:[#allocation24_spill] sm:$0xff] %v6300_v27  ;;  %5033 = vmatmul.mubr.msk.f32.gmra.mrb[26].mxu1 %vm7396_vm1, %v6300_v27  ;;  %v2657_v28 = vrot.slane %v2656_v17, 1 }
 0x5ce   :  { %v2658_v44 = vadd.f32 %v2657_v28, %v2656_v17  ;;  %v5606_v17 = vld [vmem:[%s7440_s27 + $0x8] sm:$0xff] }
 0x5cf   :  { %v1737_v56 = vpop.f32.mrb[40].mxu0 }
 0x5d0   :  { %v6320_v46 = vmul.f32 %v5354_v47, %v1737_v56  ;;  %v5005_v61 = vpop.f32.mrb[41].mxu0  ;;  %v4546_v56 = vld [vmem:[%s7368_s16] ss:$0 sm:$0xff] }
 0x5d1   :  { %v1740_v53 = vpop.f32.mrb[42].mxu0 }
 0x5d2   :  { %7459 = vst [vmem:[#allocation25_spill] sm:$0xff] %v6320_v46  ;;  %v6322_v55 = vmul.f32 %v5356_v52, %v1740_v53  ;;  %v5006_v31 = vpop.f32.mrb[43].mxu0  ;;  %5035 = vmatprep.mubr.msk.f32.mxu1 %vm7396_vm1, %v6320_v46 }
 0x5d4   :  { %7460 = vst [vmem:[#allocation26_spill] sm:$0xff] %v6322_v55  ;;  %5036 = vmatmul.mubr.msk.f32.gmra.mrb[28].mxu1 %vm7396_vm1, %v6322_v55 }
 0x5d7   :  { %v1745_v26 = vpop.f32.mrb[44].mxu0 }
 0x5d8   :  { %v6328_v33 = vmul.f32 %v5358_v24, %v1745_v26  ;;  %v5009_v63 = vpop.f32.mrb[45].mxu0  ;;  %v2191_v26 = vpop.permute.xlu0 %2190 }
 0x5d9   :  { %v1748_v39 = vpop.f32.mrb[46].mxu0 }
 0x5da   :  { %7461 = vst [vmem:[#allocation27_spill] sm:$0xff] %v6328_v33  ;;  %v6330_v5 = vmul.f32 %v5360_v38, %v1748_v39  ;;  %v5010_v21 = vpop.f32.mrb[47].mxu0  ;;  %5038 = vmatprep.mubr.msk.f32.mxu1 %vm7396_vm1, %v6328_v33 }
 0x5dc   :  { %7462 = vst [vmem:[#allocation28_spill] sm:$0xff] %v6330_v5  ;;  %5039 = vmatmul.mubr.msk.f32.gmra.mrb[30].mxu1 %vm7396_vm1, %v6330_v5  ;;  %v6388_v21 = vpop.permute.xlu0 %2226 }
 0x5df   :  { %v1753_v10 = vpop.f32.mrb[48].mxu0 }
 0x5e0   :  { %v6336_v14 = vmul.f32 %v5362_v9, %v1753_v10  ;;  %v5013_v15 = vpop.f32.mrb[49].mxu0  ;;  %v5605_v10 = vld [vmem:[%s7440_s27] sm:$0xff] }
 0x5e1   :  { %v1756_v19 = vpop.f32.mrb[50].mxu0  ;;  %v2659_v15 = vsel %vm825_vm6, %v5605_v10, 0.0 }
 0x5e2   :  { %7463 = vst [vmem:[#allocation29_spill] sm:$0xff] %v6336_v14  ;;  %v6338_v16 = vmul.f32 %v5364_v7, %v1756_v19  ;;  %v5014_v23 = vpop.f32.mrb[51].mxu0  ;;  %5041 = vmatprep.mubr.msk.f32.mxu1 %vm7396_vm1, %v6336_v14  ;;  %v2660_v7 = vsel %vm825_vm6, %v5606_v17, 0.0 }
 0x5e3   :  { %v2267_v23 = vpop.permute.xlu0 %2266 }
 0x5e4   :  { %7464 = vst [vmem:[#allocation30_spill] sm:$0xff] %v6338_v16  ;;  %5042 = vmatmul.mubr.msk.f32.gmra.mrb[32].mxu1 %vm7396_vm1, %v6338_v16 }
 0x5e5   :  { %5052 = vmatprep.mubr.msk.f32.mxu1 %vm7396_vm1, %v5603_v11  ;;  %v2661_v11 = vadd.f32 %v2660_v7, %v2659_v15 }
 0x5e8   :  { %5053 = vmatmul.mubr.msk.f32.vlgmr.msra.gmra.mrb[34].mxu1 %vm7396_vm1, %v5604_v36 }
 0x5e9   :  { %5284 = vmatpush3.bf16.msra.mxu1 %v5959_v12  ;;  %5059 = vmatprep.mubr.msk.f32.mxu1 %vm5692_vm7, %v7390_v4  ;;  %v6367_v12 = vld [vmem:[%s7365_s13] ss:$0 sm:$0xff]  ;;  %s5700_s13 = smov 120  }
 0x5ea   :  { %5285 = vmatprep.subr.bf16.mxu1 %v5691_v40 }
 0x5ec   :  { %5060 = vmatmul.mubr.msk.f32.vlgmr.msra.gmra.mrb[36].mxu1 %vm121_vm0, %v2658_v44 }
 0x5ed   :  { %5287 = vmatpush3.bf16.msra.mxu1 %v5993_v20  ;;  %5066 = vmatprep.mubr.msk.f32.mxu1 %vm5692_vm7, %v7390_v4 }
 0x5ee   :  { %5089 = vmatprep.subr.bf16.mxu1 %v7390_v4 }
 0x5f0   :  { %5067 = vmatmul.mubr.msk.f32.vlgmr.msra.gmra.mrb[38].mxu1 %vm121_vm0, %v2658_v44 }
 0x5f1   :  { %5091 = vmatprep.mubr.msk.bf16.mxu1 %vm5692_vm7, %v7390_v4 }
 0x621   :  { %v5025_v40 = vpop.f32.mrb[20].mxu1 }
 0x622   :  { %v1922_v45 = vadd.f32 %v5025_v40, %v6367_v12  ;;  %v1916_v29 = vpop.f32.mrb[21].mxu1 }
 0x623   :  { %v1917_v20 = vadd.f32 %v6367_v12, %v1916_v29 }
 0x624   :  { %5365 = vtanh.f32 %v1922_v45  ;;  %v2662_v45 = vrot.slane %v2661_v11, 4 }
 0x625   :  { %5367 = vtanh.f32 %v1917_v20  ;;  %v5607_v20 = vld [vmem:[%s7362_s10] sm:$0xff] }
 0x626   :  { %v2663_v29 = vadd.f32 %v2662_v45, %v2661_v11  ;;  %v6441_v45 = vpop.permute.xlu0 %2336 }
 0x628   :  { %v5028_v47 = vpop.f32.mrb[22].mxu1 }
 0x629   :  { %v1926_v49 = vpop.f32.mrb[23].mxu1  ;;  %v1932_v53 = vadd.f32 %v5028_v47, %v6367_v12  ;;  %v2668_v47 = vsel %vm825_vm6, %v5607_v20, 0.0 }
 0x62a   :  { %v1927_v60 = vadd.f32 %v6367_v12, %v1926_v49  ;;  %v5608_v49 = vld [vmem:[%s7362_s10 + $0x8] sm:$0xff]  ;;  %s5701_s10 = smov 104  }
 0x62b   :  { %5369 = vtanh.f32 %v1932_v53 }
 0x62c   :  { %5371 = vtanh.f32 %v1927_v60  ;;  %v2959_v60 = vsel %vm825_vm6, %v5946_v1, 0 }
 0x62d   :  { %5090 = vmatpush3.bf16.xpose.msra.mxu1 %v2959_v60 }
 0x62e   :  { %v6374_v50 = vpop.eup %5365  ;;  %5095 = vmatprep.subr.bf16.mxu1 %v7390_v4 }
 0x62f   :  { %v6376_v61 = vpop.eup %5367  ;;  %v2125_v52 = vmul.f32 %v6374_v50, %v4546_v56 }
 0x630   :  { %v2124_v42 = vmul.f32 %v6376_v61, %v4546_v56  ;;  %v2669_v56 = vsel %vm825_vm6, %v5608_v49, 0.0 }
 0x631   :  { %v2129_v31 = vsel %vm825_vm6, %v2125_v52, 0.0  ;;  %v2664_v52 = vrot.slane %v2663_v29, 2  ;;  %v2670_v53 = vadd.f32 %v2669_v56, %v2668_v47 }
 0x632   :  { %2130 = vadd.xlane.f32.xlu0 %v2129_v31  ;;  %v2126_v57 = vsel %vm825_vm6, %v2124_v42, 0.0 }
 0x633   :  { %2127 = vadd.xlane.f32.xlu1 %v2126_v57  ;;  %v2665_v42 = vadd.f32 %v2664_v52, %v2663_v29 }
 0x634   :  { %5092 = vmatmul.mubr.msk.bf16.vlgmr.msra.gmra.mrb[40].mxu1 %vm825_vm6, %v5946_v1 }
 0x635   :  { %v6386_v39 = vpop.eup %5369  ;;  %v2666_v31 = vrot.slane %v2665_v42, 1  ;;  %5097 = vmatprep.mubr.msk.bf16.mxu1 %vm5692_vm7, %v7390_v4 }
 0x636   :  { %v2194_v8 = vmul.f32 %v6386_v39, %v2191_v26  ;;  %v6391_v9 = vpop.eup %5371 }
 0x637   :  { %v2193_v19 = vmul.f32 %v6391_v9, %v2191_v26  ;;  %v2667_v57 = vadd.f32 %v2666_v31, %v2665_v42 }
 0x639   :  { %5077 = vmatprep.mubr.msk.f32.mxu0 %vm825_vm6, %v2667_v57 }
 0x63a   :  { %5078 = vmatmul.mubr.msk.f32.vlgmr.msra.gmra.mrb[52].mxu0 %vm825_vm6, %v2667_v57  ;;  %v2377_v57 = vpop.permute.xlu0 %2376 }
 0x63c   :  { %v5031_v24 = vpop.f32.mrb[24].mxu1 }
 0x63d   :  { %v1942_v0 = vadd.f32 %v5031_v24, %v6367_v12  ;;  %v1936_v63 = vpop.f32.mrb[25].mxu1 }
 0x63e   :  { %v1937_v38 = vadd.f32 %v6367_v12, %v1936_v63 }
 0x63f   :  { %5373 = vtanh.f32 %v1942_v0 }
 0x640   :  { %5375 = vtanh.f32 %v1937_v38  ;;  %v2671_v38 = vrot.slane %v2670_v53, 4 }
 0x642   :  { %v2672_v15 = vadd.f32 %v2671_v38, %v2670_v53 }
 0x644   :  { %2199 = vrot.lane.b32.xlu1 %v2194_v8, %s5700_s13  ;;  %v2673_v17 = vrot.slane %v2672_v15, 2 }
 0x646   :  { %v2674_v11 = vadd.f32 %v2673_v17, %v2672_v15 }
 0x648   :  { %2197 = vrot.lane.b32.xlu1 %v2193_v19, %s5700_s13  ;;  %v2675_v20 = vrot.slane %v2674_v11, 1 }
 0x649   :  { %v6404_v28 = vpop.eup %5373 }
 0x64a   :  { %v6406_v36 = vpop.eup %5375  ;;  %v2270_v44 = vmul.f32 %v6404_v28, %v2267_v23  ;;  %v2676_v53 = vadd.f32 %v2675_v20, %v2674_v11 }
 0x64b   :  { %v2269_v40 = vmul.f32 %v6406_v36, %v2267_v23 }
 0x64c   :  { %2275 = vrot.lane.b32.xlu1 %v2270_v44, %s5694_s23  ;;  %v6439_v44 = vpop.permute.xlu1 %2150 }
 0x64d   :  { %2273 = vrot.lane.b32.xlu0 %v2269_v40, %s5694_s23 }
 0x69f   :  { %v5034_v24 = vpop.f32.mrb[26].mxu1 }
 0x6a0   :  { %v1946_v26 = vpop.f32.mrb[27].mxu1  ;;  %v1952_v7 = vadd.f32 %v5034_v24, %v6367_v12 }
 0x6a1   :  { %v1947_v1 = vadd.f32 %v6367_v12, %v1946_v26 }
 0x6a2   :  { %5377 = vtanh.f32 %v1952_v7 }
 0x6a3   :  { %5379 = vtanh.f32 %v1947_v1 }
 0x6a7   :  { %v6429_v0 = vpop.f32.mrb[28].mxu1 }
 0x6a8   :  { %v6431_v63 = vpop.f32.mrb[29].mxu1 }
 0x6ac   :  { %v5378_v24 = vpop.eup %5377 }
 0x6ad   :  { %v5380_v17 = vpop.eup %5379 }
 0x6af   :  { %v6433_v8 = vpop.f32.mrb[30].mxu1 }
 0x6b0   :  { %v6435_v10 = vpop.f32.mrb[31].mxu1 }
 0x6b7   :  { %v5043_v19 = vpop.f32.mrb[32].mxu1 }
 0x6b8   :  { %v1976_v23 = vpop.f32.mrb[33].mxu1  ;;  %v1982_v49 = vadd.f32 %v5043_v19, %v6367_v12 }
 0x6b9   :  { %v1977_v47 = vadd.f32 %v6367_v12, %v1976_v23 }
 0x6bb   :  { %v5054_v40 = vpop.f32.mrb[34].mxu1 }
 0x6bc   :  { %5381 = vtanh.f32 %v5054_v40  ;;  %v2071_v29 = vpop.f32.mrb[35].mxu1 }
 0x6bd   :  { %5383 = vtanh.f32 %v2071_v29 }
 0x6be   :  { %5385 = vtanh.f32 %v1977_v47 }
 0x6bf   :  { %v2746_v56 = vpop.f32.mrb[36].mxu1  ;;  %5387 = vtanh.f32 %v1982_v49  ;;  %v6455_v19 = vpop.xlane.xlu0 %2130 }
 0x6c0   :  { %v6445_v52 = vpop.xlane.xlu1 %2127  ;;  %v2823_v42 = vrot.slane %v2746_v56, %v6034_v35  ;;  %v5061_v31 = vpop.f32.mrb[37].mxu1 }
 0x6c1   :  { %v2380_v31 = vmul.f32 %v5378_v24, %v2377_v57 }
 0x6c2   :  { %5080 = vmatprep.mubr.msk.f32.mxu0 %vm825_vm6, %v2823_v42 }
 0x6c3   :  { %5081 = vmatmul.mubr.msk.f32.gmra.mrb[54].mxu0 %vm825_vm6, %v2823_v42  ;;  %v2816_v60 = vpop.f32.mrb[38].mxu1  ;;  %v2274_v20 = vpop.permute.xlu0 %2273 }
 0x6c4   :  { %v2200_v26 = vpop.permute.xlu1 %2199  ;;  %5083 = vmatprep.mubr.msk.f32.mxu0 %vm825_vm6, %v2676_v53  ;;  %v2827_v38 = vrot.slane %v2816_v60, %v6034_v35  ;;  %v5068_v15 = vpop.f32.mrb[39].mxu1  ;;  %v2279_v56 = vsel %vm825_vm6, %v2274_v20, 0.0  ;;  %v2379_v60 = vmul.f32 %v5380_v17, %v2377_v57  ;;  %v4543_v57 = vld [vmem:[%s7367_s15] ss:$0 sm:$0xff] }
 0x6c5   :  { %v2206_v7 = vsel %vm825_vm6, %v2200_v26, 0.0 }
 0x6c6   :  { %v6453_v1 = vpop.eup %5381  ;;  %2207 = vadd.xlane.f32.xlu1 %v2206_v7 }
 0x6c7   :  { %v6457_v23 = vpop.eup %5383  ;;  %5084 = vmatmul.mubr.msk.f32.gmra.mrb[56].mxu0 %vm825_vm6, %v2676_v53  ;;  %v2328_v11 = vadd.f32 %v6453_v1, %v5378_v24  ;;  %v2218_v26 = vadd.f32 %v6453_v1, %v6404_v28 }
 0x6c8   :  { %v2198_v40 = vpop.permute.xlu1 %2197  ;;  %5086 = vmatprep.mubr.msk.f32.mxu0 %vm825_vm6, %v2827_v38  ;;  %v2327_v35 = vadd.f32 %v6457_v23, %v5380_v17  ;;  %v5386_v47 = vpop.eup %5385  ;;  %v2217_v20 = vadd.f32 %v6457_v23, %v6406_v36 }
 0x6c9   :  { %v2203_v29 = vsel %vm825_vm6, %v2198_v40, 0.0  ;;  %v5388_v49 = vpop.eup %5387  ;;  %v6469_v42 = vadd.f32 %v5386_v47, %v6457_v23  ;;  %v2340_v15 = vmul.f32 %v6441_v45, %v2328_v11  ;;  %v2087_v40 = vadd.f32 %v6453_v1, %v6374_v50 }
 0x6ca   :  { %2204 = vadd.xlane.f32.xlu0 %v2203_v29  ;;  %v6472_v53 = vadd.f32 %v5388_v49, %v6453_v1  ;;  %v2142_v11 = vadd.f32 %v6453_v1, %v6386_v39  ;;  %v2229_v50 = vmul.f32 %v6388_v21, %v2217_v20  ;;  %v2339_v47 = vmul.f32 %v6441_v45, %v2327_v35 }
 0x6cb   :  { %5087 = vmatmul.mubr.msk.f32.gmra.mrb[58].mxu0 %vm825_vm6, %v2827_v38  ;;  %v2230_v38 = vmul.f32 %v6388_v21, %v2218_v26  ;;  %v2096_v28 = vmul.f32 %v4543_v57, %v2087_v40  ;;  %v2141_v49 = vadd.f32 %v6457_v23, %v6391_v9  ;;  %v2086_v21 = vadd.f32 %v6457_v23, %v6376_v61 }
 0x6cc   :  { %5109 = vmatprep.mubr.msk.bf16.mxu0 %vm5692_vm7, %v7390_v4  ;;  %v2276_v7 = vpop.permute.xlu1 %2275  ;;  %v2154_v29 = vmul.f32 %v6439_v44, %v2142_v11 }
 0x6cd   :  { %v2282_v24 = vsel %vm825_vm6, %v2276_v7, 0.0  ;;  %v2100_v17 = vsel %vm825_vm6, %v2096_v28, 0.0  ;;  %v2153_v39 = vmul.f32 %v6439_v44, %v2141_v49  ;;  %v2648_v7 = vpack.c.bf16 %v6316_v37, %v6309_v41 }
 0x6ce   :  { %2280 = vadd.xlane.f32.xlu0 %v2279_v56  ;;  %v3055_v41 = vsel %vm825_vm6, %v5936_v58, 0 }
 0x6cf   :  { %5108 = vmatpush3.bf16.msra.mxu0 %v2648_v7 }
 0x6d7   :  { %2385 = vrot.lane.b32.xlu1 %v2380_v31, %s5701_s10  ;;  %v2095_v31 = vmul.f32 %v4543_v57, %v2086_v21 }
 0x6db   :  { %2383 = vrot.lane.b32.xlu1 %v2379_v60, %s5701_s10  ;;  %v2097_v60 = vsel %vm825_vm6, %v2095_v31, 0.0 }
 0x6e4   :  { %2235 = vrot.lane.b32.xlu0 %v2230_v38, %s5694_s23 }
 0x6e8   :  { %2345 = vrot.lane.b32.xlu0 %v2340_v15, %s5701_s10 }
 0x6ff   :  { %2283 = vadd.xlane.f32.xlu1 %v2282_v24 }
 0x707   :  { %2101 = vadd.xlane.f32.xlu0 %v2100_v17  ;;  %v2995_v15 = vpop.f32.mrb[40].mxu1 }
 0x708   :  { %v3002_v24 = vsel %vm6041_vm9, 0.0, %v2995_v15  ;;  %v5093_v40 = vpop.f32.mrb[41].mxu1 }
 0x709   :  { %v2998_v57 = vpop.f32.mrb[42].mxu1 }
 0x70a   :  { %v3003_v28 = vsel %vm6048_vm10, 0.0, %v2998_v57  ;;  %v5094_v17 = vpop.f32.mrb[43].mxu1 }
 0x70b   :  { %v3004_v11 = vpack.c.bf16 %v3003_v28, %v3002_v24 }
 0x70d   :  { %v6503_v56 = vpop.f32.mrb[52].mxu0  ;;  %5110 = vmatmul.mubr.msk.bf16.vlgmr.msra.gmra.mrb[60].mxu0 %vm121_vm0, %v3004_v11  ;;  %v4567_v11 = vld [vmem:[%s7367_s15 + $0x4] ss:$0 sm:$0xff] }
 0x70e   :  { %v6505_v36 = vpop.f32.mrb[53].mxu0  ;;  %vm3184_vm15 = vcmp.gt.f32.partialorder %v6503_v56, 0.0  ;;  %5113 = vmatprep.mubr.msk.bf16.mxu0 %vm5692_vm7, %v7390_v4 }
 0x70f   :  { %vm3183_vm2 = vcmp.gt.f32.partialorder %v6505_v36, 0.0  ;;  %v4605_v9 = vsel %vm3184_vm15, 1.0, %v7390_v4 }
 0x710   :  { %2159 = vrot.lane.b32.xlu1 %v2154_v29, %s5700_s13  ;;  %v4604_v44 = vsel %vm3183_vm2, 1.0, %v7390_v4  ;;  %v3007_v29 = vsel %vm825_vm6, %v5966_v13, 0  ;;  %v3197_v2 = vsel %vm3183_vm2, 1, %v7466_v34 }
 0x711   :  { %v3225_v45 = vpack.c.bf16 %v4605_v9, %v4604_v44  ;;  %5096 = vmatpush3.bf16.xpose.msra.mxu1 %v3007_v29  ;;  %v3232_v25 = vsel %vm121_vm0, %v3197_v2, 0 }
 0x712   :  { %5101 = vmatprep.subr.bf16.mxu1 %v7390_v4  ;;  %v3233_v59 = vand.u32 65535, %v3232_v25 }
 0x714   :  { %2233 = vrot.lane.b32.xlu1 %v2229_v50, %s5694_s23  ;;  %v3235_v56 = vcvt.s32.f32 %v3233_v59 }
 0x718   :  { %2343 = vrot.lane.b32.xlu1 %v2339_v47, %s5701_s10  ;;  %5098 = vmatmul.mubr.msk.bf16.vlgmr.msra.gmra.mrb[44].mxu1 %vm825_vm6, %v5966_v13 }
 0x719   :  { %5102 = vmatpush3.bf16.xpose.msra.mxu1 %v3055_v41  ;;  %5103 = vmatprep.mubr.msk.bf16.mxu1 %vm5692_vm7, %v7390_v4 }
 0x71a   :  { %5121 = vmatprep.subr.bf16.mxu1 %v7390_v4 }
 0x71d   :  { %2157 = vrot.lane.b32.xlu0 %v2153_v39, %s5700_s13 }
 0x720   :  { %5104 = vmatmul.mubr.msk.bf16.vlgmr.msra.gmra.mrb[48].mxu1 %vm825_vm6, %v5936_v58 }
 0x721   :  { %5122 = vmatpush3.bf16.msra.mxu1 %v5867_v6  ;;  %5123 = vmatprep.mubr.msk.bf16.mxu1 %vm5692_vm7, %v7390_v4 }
 0x728   :  { %5124 = vmatmul.mubr.msk.bf16.vlgmr.msra.gmra.mrb[52].mxu1 %vm121_vm0, %v3225_v45 }
 0x729   :  { %5127 = vmatprep.mubr.msk.bf16.mxu1 %vm5692_vm7, %v7390_v4 }
 0x73c   :  { %2098 = vadd.xlane.f32.xlu1 %v2097_v60 }
 0x753   :  { %v6518_v35 = vpop.xlane.xlu1 %2207 }
 0x757   :  { %v6520_v61 = vpop.permute.xlu1 %2385  ;;  %v6547_v37 = vpop.xlane.xlu0 %2204 }
 0x758   :  { %v2392_v41 = vsel %vm825_vm6, %v6520_v61, 0.0 }
 0x75b   :  { %v2384_v26 = vpop.permute.xlu1 %2383  ;;  %v6552_v13 = vpop.xlane.xlu0 %2280 }
 0x75c   :  { %v2389_v38 = vsel %vm825_vm6, %v2384_v26, 0.0 }
 0x75d   :  { %2390 = vadd.xlane.f32.xlu0 %v2389_v38 }
 0x75f   :  { %v2236_v20 = vpop.permute.xlu0 %2235 }
 0x760   :  { %v2242_v39 = vsel %vm825_vm6, %v2236_v20, 0.0  ;;  %v1962_v20 = vadd.f32 %v6429_v0, %v6367_v12 }
 0x762   :  { %5389 = vtanh.f32 %v1962_v20 }
 0x763   :  { %v2346_v47 = vpop.permute.xlu0 %2345 }
 0x764   :  { %v2352_v45 = vsel %vm825_vm6, %v2346_v47, 0.0  ;;  %v1957_v47 = vadd.f32 %v6367_v12, %v6431_v63 }
 0x766   :  { %5391 = vtanh.f32 %v1957_v47 }
 0x78c   :  { %v6554_v50 = vpop.xlane.xlu1 %2283 }
 0x790   :  { %v2160_v49 = vpop.permute.xlu1 %2159 }
 0x791   :  { %v2166_v58 = vsel %vm825_vm6, %v2160_v49, 0.0 }
 0x792   :  { %2167 = vadd.xlane.f32.xlu0 %v2166_v58 }
 0x794   :  { %v6557_v6 = vpop.xlane.xlu0 %2101  ;;  %v2234_v60 = vpop.permute.xlu1 %2233 }
 0x795   :  { %v2239_v40 = vsel %vm825_vm6, %v2234_v60, 0.0 }
 0x796   :  { %2243 = vadd.xlane.f32.xlu0 %v2242_v39  ;;  %v6560_v21 = vpop.f32.mrb[54].mxu0 }
 0x797   :  { %vm3186_vm3 = vcmp.gt.f32.partialorder %v6560_v21, 0.0  ;;  %v6563_v31 = vpop.f32.mrb[55].mxu0 }
 0x798   :  { %v2158_v9 = vpop.permute.xlu0 %2157  ;;  %v4607_v44 = vsel %vm3186_vm3, 1.0, %v7390_v4  ;;  %vm3185_vm4 = vcmp.gt.f32.partialorder %v6563_v31, 0.0  ;;  %v2344_v57 = vpop.permute.xlu1 %2343 }
 0x799   :  { %v2163_v26 = vsel %vm825_vm6, %v2158_v9, 0.0  ;;  %v4606_v38 = vsel %vm3185_vm4, 1.0, %v7390_v4  ;;  %v2349_v17 = vsel %vm825_vm6, %v2344_v57, 0.0  ;;  %v6600_v9 = vpop.eup %5389  ;;  %v3199_v2 = vsel %vm3185_vm4, 1, %v7466_v34 }
 0x79a   :  { %2353 = vadd.xlane.f32.xlu0 %v2352_v45  ;;  %2164 = vadd.xlane.f32.xlu1 %v2163_v26  ;;  %v5085_v15 = vpop.f32.mrb[56].mxu0  ;;  %v3226_v7 = vpack.c.bf16 %v4607_v44, %v4606_v38  ;;  %v6602_v61 = vpop.eup %5391  ;;  %v2404_v63 = vadd.f32 %v6600_v9, %v6453_v1 }
 0x79b   :  { %v2938_v24 = vpop.f32.mrb[57].mxu0  ;;  %v2403_v0 = vadd.f32 %v6602_v61, %v6457_v23 }
 0x79c   :  { %5128 = vmatmul.mubr.msk.bf16.gmra.mrb[56].mxu1 %vm121_vm0, %v3226_v7 }
 0x79d   :  { %5131 = vmatprep.mubr.msk.bf16.mxu1 %vm5692_vm7, %v7390_v4 }
 0x79e   :  { %2240 = vadd.xlane.f32.xlu1 %v2239_v40  ;;  %v5088_v28 = vpop.f32.mrb[58].mxu0 }
 0x79f   :  { %v2948_v29 = vpop.f32.mrb[59].mxu0 }
 0x7a2   :  { %2350 = vadd.xlane.f32.xlu1 %v2349_v17 }
 0x7b0   :  { %2412 = vrot.lane.b32.xlu0 %v4567_v11, %s5702_s11 }
 0x7b3   :  { %3171 = vrot.lane.b32.xlu1 %v5085_v15, %s5694_s23 }
 0x7b7   :  { %3169 = vrot.lane.b32.xlu1 %v2938_v24, %s5694_s23 }
 0x7bb   :  { %3179 = vrot.lane.b32.xlu1 %v5088_v28, %s5694_s23 }
 0x7c9   :  { %v6604_v44 = vpop.xlane.xlu1 %2098 }
 0x7df   :  { %2393 = vadd.xlane.f32.xlu1 %v2392_v41 }
 0x7e0   :  { %v6621_v57 = vpop.f32.mrb[60].mxu0 }
 0x7e1   :  { %vm3187_vm5 = vcmp.gt.f32.partialorder %v6621_v57, 0.0  ;;  %v5111_v28 = vpop.f32.mrb[61].mxu0 }
 0x7e2   :  { %v4608_v17 = vsel %vm3187_vm5, 1.0, %v7390_v4  ;;  %v6627_v11 = vpop.f32.mrb[62].mxu0 }
 0x7e3   :  { %vm3188_vm8 = vcmp.gt.f32.partialorder %v6627_v11, 0.0 }
 0x7e4   :  { %v4609_v20 = vsel %vm3188_vm8, 1.0, %v7390_v4 }
 0x7e5   :  { %v3227_v47 = vpack.c.bf16 %v4609_v20, %v4608_v17 }
 0x7e7   :  { %5132 = vmatmul.mubr.msk.bf16.gmra.mrb[60].mxu1 %vm121_vm0, %v3227_v47 }
 0x7e8   :  { %5135 = vmatprep.mubr.msk.bf16.mxu1 %vm5692_vm7, %v7390_v4 }
 0x7ea   :  { %v6592_v49 = vpop.xlane.xlu0 %2390 }
 0x81f   :  { %v6594_v58 = vpop.xlane.xlu0 %2167 }
 0x823   :  { %v6596_v39 = vpop.xlane.xlu0 %2243 }
 0x827   :  { %v6598_v60 = vpop.xlane.xlu0 %2353  ;;  %v6610_v15 = vpop.xlane.xlu1 %2164 }
 0x82b   :  { %v2413_v45 = vpop.permute.xlu0 %2412  ;;  %v6615_v7 = vpop.xlane.xlu1 %2240 }
 0x82c   :  { %v2415_v26 = vmul.f32 %v2413_v45, %v2403_v0  ;;  %v2416_v38 = vmul.f32 %v2413_v45, %v2404_v63  ;;  %v3043_v0 = vpop.f32.mrb[44].mxu1 }
 0x82d   :  { %v3050_v63 = vsel %vm6041_vm9, 0.0, %v3043_v0  ;;  %v5099_v45 = vpop.f32.mrb[45].mxu1 }
 0x82e   :  { %2421 = vrot.lane.b32.xlu0 %v2416_v38, %s5695_s9  ;;  %2419 = vrot.lane.b32.xlu1 %v2415_v26, %s5695_s9  ;;  %v3046_v28 = vpop.f32.mrb[46].mxu1 }
 0x82f   :  { %v6617_v24 = vpop.xlane.xlu1 %2350  ;;  %v3051_v17 = vsel %vm6048_vm10, 0.0, %v3046_v28 }
 0x830   :  { %v3052_v20 = vpack.c.bf16 %v3051_v17, %v3050_v63 }
 0x832   :  { %3177 = vrot.lane.b32.xlu0 %v2948_v29, %s5694_s23  ;;  %v5112_v29 = vpop.f32.mrb[63].mxu0  ;;  %5114 = vmatmul.mubr.msk.bf16.gmra.mrb[64].mxu0 %vm121_vm0, %v3052_v20 }
 0x833   :  { %v6619_v40 = vpop.permute.xlu1 %3171  ;;  %v5100_v29 = vpop.f32.mrb[47].mxu1  ;;  %5117 = vmatprep.mubr.msk.bf16.mxu0 %vm5692_vm7, %v7390_v4 }
 0x834   :  { %vm3190_vm11 = vcmp.gt.f32.partialorder %v6619_v40, 0.0  ;;  %v3091_v0 = vpop.f32.mrb[48].mxu1 }
 0x835   :  { %v4611_v26 = vsel %vm3190_vm11, 1.0, %v7390_v4  ;;  %v3098_v45 = vsel %vm6041_vm9, 0.0, %v3091_v0  ;;  %v5105_v43 = vpop.f32.mrb[49].mxu1 }
 0x836   :  { %v3094_v32 = vpop.f32.mrb[50].mxu1 }
 0x837   :  { %v6630_v41 = vpop.permute.xlu1 %3169  ;;  %v3099_v63 = vsel %vm6048_vm10, 0.0, %v3094_v32 }
 0x838   :  { %vm3189_vm12 = vcmp.gt.f32.partialorder %v6630_v41, 0.0 }
 0x839   :  { %v4610_v38 = vsel %vm3189_vm12, 1.0, %v7390_v4 }
 0x83a   :  { %v3228_v47 = vpack.c.bf16 %v4611_v26, %v4610_v38  ;;  %v5106_v26 = vpop.f32.mrb[51].mxu1  ;;  %v3100_v38 = vpack.c.bf16 %v3099_v63, %v3098_v45 }
 0x83b   :  { %v6661_v28 = vpop.f32.mrb[52].mxu1 }
 0x83c   :  { %5136 = vmatmul.mubr.msk.bf16.gmra.mrb[64].mxu1 %vm121_vm0, %v3228_v47  ;;  %5118 = vmatmul.mubr.msk.bf16.gmra.mrb[68].mxu0 %vm121_vm0, %v3100_v38  ;;  %v5125_v17 = vpop.f32.mrb[53].mxu1  ;;  %v7465_v38 = vmov 0.0  }
 0x83d   :  { %5139 = vmatprep.mubr.msk.bf16.mxu1 %vm5692_vm7, %v7390_v4  ;;  %v6663_v29 = vpop.f32.mrb[54].mxu1  ;;  %v6669_v4 = vpop.permute.xlu1 %3179 }
 0x83e   :  { %v5126_v20 = vpop.f32.mrb[55].mxu1  ;;  %vm7397_vm9 = vcmp.gt.f32.partialorder %v6669_v4, 0.0 }
 0x83f   :  { %v4613_v17 = vsel %vm7397_vm9, 1.0, %v7465_v38 }
 0x86c   :  { %v6671_v51 = vpop.xlane.xlu1 %2393 }
 0x86f   :  { %v6665_v48 = vpop.f32.mrb[56].mxu1 }
 0x870   :  { %v5129_v43 = vpop.f32.mrb[57].mxu1 }
 0x871   :  { %v6667_v47 = vpop.f32.mrb[58].mxu1 }
 0x872   :  { %v5130_v0 = vpop.f32.mrb[59].mxu1 }
 0x8a0   :  { %v2422_v32 = vpop.permute.xlu0 %2421  ;;  %v2420_v45 = vpop.permute.xlu1 %2419 }
 0x8a1   :  { %v2428_v63 = vsel %vm825_vm6, %v2422_v32, 0.0  ;;  %v2425_v26 = vsel %vm825_vm6, %v2420_v45, 0.0  ;;  %v4571_v32 = vld [vmem:[%s7368_s16 + $0x4] ss:$0 sm:$0xff] }
 0x8a2   :  { %2429 = vadd.xlane.f32.xlu0 %v2428_v63  ;;  %2426 = vadd.xlane.f32.xlu1 %v2425_v26 }
 0x8a4   :  { %v6679_v20 = vpop.permute.xlu0 %3177 }
 0x8a5   :  { %vm3191_vm10 = vcmp.gt.f32.partialorder %v6679_v20, 0.0 }
 0x8a6   :  { %v4612_v43 = vsel %vm3191_vm10, 1.0, %v7465_v38 }
 0x8a7   :  { %v3229_v0 = vpack.c.bf16 %v4613_v17, %v4612_v43 }
 0x8a9   :  { %5140 = vmatmul.mubr.msk.bf16.gmra.mrb[68].mxu1 %vm121_vm0, %v3229_v0 }
 0x8aa   :  { %5143 = vmatprep.mubr.msk.bf16.mxu1 %vm5692_vm7, %v7465_v38 }
 0x8b8   :  { %2452 = vrot.lane.b32.xlu0 %v4571_v32, %s5702_s11 }
 0x8ba   :  { %v6692_v45 = vpop.f32.mrb[60].mxu1 }
 0x8bb   :  { %v5133_v63 = vpop.f32.mrb[61].mxu1 }
 0x8bc   :  { %v6694_v26 = vpop.f32.mrb[62].mxu1 }
 0x8bd   :  { %v5134_v30 = vpop.f32.mrb[63].mxu1 }
 0x905   :  { %v6706_v63 = vpop.f32.mrb[64].mxu0 }
 0x906   :  { %vm3193_vm13 = vcmp.gt.f32.partialorder %v6706_v63, 0.0  ;;  %v5115_v30 = vpop.f32.mrb[65].mxu0 }
 0x90f   :  { %v6696_v16 = vpop.f32.mrb[64].mxu1 }
 0x910   :  { %v5137_v17 = vpop.f32.mrb[65].mxu1 }
 0x911   :  { %v6698_v43 = vpop.f32.mrb[66].mxu1  ;;  %v4614_v17 = vsel %vm3193_vm13, 1.0, %v7465_v38 }
 0x912   :  { %v5138_v0 = vpop.f32.mrb[67].mxu1 }
 0x913   :  { %v6712_v0 = vpop.f32.mrb[66].mxu0 }
 0x914   :  { %vm3194_vm14 = vcmp.gt.f32.partialorder %v6712_v0, 0.0  ;;  %v2639_v0 = vld [vmem:[%s7369_s17] sm:$0xff] }
 0x915   :  { %v3208_v11 = vsel %vm3194_vm14, 1, %v7466_v34 }
 0x92f   :  { %v6700_v14 = vpop.xlane.xlu0 %2429  ;;  %v6738_v27 = vpop.xlane.xlu1 %2426 }
 0x933   :  { %v2453_v33 = vpop.permute.xlu0 %2452 }
 0x934   :  { %v2455_v5 = vmul.f32 %v6602_v61, %v2453_v33  ;;  %v2456_v32 = vmul.f32 %v6600_v9, %v2453_v33  ;;  %v5116_v61 = vpop.f32.mrb[67].mxu0  ;;  %v4615_v33 = vsel %vm3194_vm14, 1.0, %v7465_v38 }
 0x935   :  { %v6719_v9 = vpop.f32.mrb[68].mxu0 }
 0x936   :  { %2459 = vrot.lane.b32.xlu1 %v2455_v5, %s5695_s9  ;;  %v3230_v5 = vpack.c.bf16 %v4615_v33, %v4614_v17  ;;  %vm3195_vm1 = vcmp.gt.f32.partialorder %v6719_v9, 0.0 }
 0x937   :  { %v4616_v30 = vsel %vm3195_vm1, 1.0, %v7465_v38 }
 0x938   :  { %5144 = vmatmul.mubr.msk.bf16.gmra.mrb[72].mxu1 %vm121_vm0, %v3230_v5 }
 0x939   :  { %5147 = vmatprep.mubr.msk.bf16.mxu1 %vm5692_vm7, %v7465_v38 }
 0x93a   :  { %2461 = vrot.lane.b32.xlu1 %v2456_v32, %s5695_s9  ;;  %v5119_v32 = vpop.f32.mrb[69].mxu0 }
 0x93b   :  { %v6727_v61 = vpop.f32.mrb[70].mxu0 }
 0x93c   :  { %vm3196_vm9 = vcmp.gt.f32.partialorder %v6727_v61, 0.0  ;;  %v5120_v46 = vpop.f32.mrb[71].mxu0 }
 0x93d   :  { %v4617_v17 = vsel %vm3196_vm9, 1.0, %v7465_v38  ;;  %v3210_v9 = vsel %vm3196_vm9, 1, %v7466_v34 }
 0x93e   :  { %v3231_v33 = vpack.c.bf16 %v4617_v17, %v4616_v30  ;;  %v3198_v30 = vsel %vm3184_vm15, 1, %v7466_v34  ;;  %v3234_v17 = vshrl.u32 %v3232_v25, 16  ;;  %v3200_v25 = vsel %vm3186_vm3, 1, %v7466_v34 }
 0x93f   :  { %v3271_v31 = vsel %vm121_vm0, %v3200_v25, 0  ;;  %v3401_v61 = vsel %vm121_vm0, %v3210_v9, 0 }
 0x940   :  { %5148 = vmatmul.mubr.msk.bf16.gmra.mrb[76].mxu1 %vm121_vm0, %v3231_v33  ;;  %v3236_v62 = vcvt.s32.f32 %v3234_v17  ;;  %v3273_v63 = vshrl.u32 %v3271_v31, 16  ;;  %v3402_v41 = vand.u32 65535, %v3401_v61 }
 0x97c   :  { %v6734_v5 = vpop.f32.mrb[68].mxu1 }
 0x97d   :  { %v5141_v55 = vpop.f32.mrb[69].mxu1 }
 0x97e   :  { %v6736_v32 = vpop.f32.mrb[70].mxu1 }
 0x97f   :  { %v5142_v3 = vpop.f32.mrb[71].mxu1 }
 0x980   :  { %v3245_v3 = vsel %vm121_vm0, %v3198_v30, 0 }
 0x981   :  { %v3247_v36 = vshrl.u32 %v3245_v3, 16 }
 0x983   :  { %v3249_v54 = vcvt.s32.f32 %v3247_v36 }
 0x9a8   :  { %v2460_v46 = vpop.permute.xlu1 %2459 }
 0x9a9   :  { %v2465_v38 = vsel %vm825_vm6, %v2460_v46, 0.0  ;;  %v3246_v46 = vand.u32 65535, %v3245_v3 }
 0x9aa   :  { %2466 = vadd.xlane.f32.xlu0 %v2465_v38  ;;  %v3258_v38 = vsel %vm121_vm0, %v3199_v2, 0 }
 0x9ab   :  { %v3248_v18 = vcvt.s32.f32 %v3246_v46  ;;  %v3260_v30 = vshrl.u32 %v3258_v38, 16 }
 0x9ac   :  { %v2462_v55 = vpop.permute.xlu1 %2461 }
 0x9ad   :  { %v2468_v33 = vsel %vm825_vm6, %v2462_v55, 0.0  ;;  %v4573_v55 = vld [vmem:[%s7367_s15 + $0x5] ss:$0 sm:$0xff]  ;;  %v3262_v59 = vcvt.s32.f32 %v3260_v30  ;;  %v3207_v30 = vsel %vm3193_vm13, 1, %v7466_v34 }
 0x9ae   :  { %2469 = vadd.xlane.f32.xlu1 %v2468_v33  ;;  %v3272_v33 = vand.u32 65535, %v3271_v31  ;;  %v3275_v31 = vcvt.s32.f32 %v3273_v63 }
 0x9b0   :  { %v3274_v57 = vcvt.s32.f32 %v3272_v33 }
 0x9b2   :  { %3239 = vadd.xlane.f32.xlu1 %v3236_v62  ;;  %v3259_v62 = vand.u32 65535, %v3258_v38 }
 0x9b4   :  { %v3261_v3 = vcvt.s32.f32 %v3259_v62 }
 0x9b6   :  { %3252 = vadd.xlane.f32.xlu1 %v3249_v54  ;;  %v3201_v54 = vsel %vm3187_vm5, 1, %v7466_v34 }
 0x9b7   :  { %v3284_v17 = vsel %vm121_vm0, %v3201_v54, 0  ;;  %v3362_v54 = vsel %vm121_vm0, %v3207_v30, 0 }
 0x9b8   :  { %v3286_v21 = vshrl.u32 %v3284_v17, 16  ;;  %v3285_v2 = vand.u32 65535, %v3284_v17  ;;  %v3375_v17 = vsel %vm121_vm0, %v3208_v11, 0  ;;  %v3363_v33 = vand.u32 65535, %v3362_v54 }
 0x9b9   :  { %v3376_v30 = vand.u32 65535, %v3375_v17  ;;  %v3203_v11 = vsel %vm3189_vm12, 1, %v7466_v34 }
 0x9ba   :  { %3237 = vadd.xlane.f32.xlu1 %v3235_v56  ;;  %v3288_v36 = vcvt.s32.f32 %v3286_v21  ;;  %v3287_v38 = vcvt.s32.f32 %v3285_v2  ;;  %v3310_v63 = vsel %vm121_vm0, %v3203_v11, 0 }
 0x9be   :  { %3250 = vadd.xlane.f32.xlu1 %v3248_v18  ;;  %v3202_v18 = vsel %vm3188_vm8, 1, %v7466_v34 }
 0x9bf   :  { %v3297_v56 = vsel %vm121_vm0, %v3202_v18, 0 }
 0x9c0   :  { %2488 = vrot.lane.b32.xlu0 %v4573_v55, %s5703_s14  ;;  %v3299_v46 = vshrl.u32 %v3297_v56, 16  ;;  %v3298_v55 = vand.u32 65535, %v3297_v56 }
 0x9c2   :  { %3265 = vadd.xlane.f32.xlu1 %v3262_v59  ;;  %v3301_v25 = vcvt.s32.f32 %v3299_v46  ;;  %v3364_v59 = vshrl.u32 %v3362_v54, 16  ;;  %v3300_v62 = vcvt.s32.f32 %v3298_v55  ;;  %v3365_v46 = vcvt.s32.f32 %v3363_v33  ;;  %v2641_v55 = vld [vmem:[%s7369_s17 + $0x10] sm:$0xff] }
 0x9c4   :  { %v3366_v21 = vcvt.s32.f32 %v3364_v59 }
 0x9c6   :  { %3263 = vadd.xlane.f32.xlu1 %v3261_v3  ;;  %v3209_v3 = vsel %vm3195_vm1, 1, %v7466_v34  ;;  %vm7467_vm1 = vcmp.gt.f32.partialorder %v6669_v4, 0.0 }
 0x9c7   :  { %v3388_v18 = vsel %vm121_vm0, %v3209_v3, 0  ;;  %v3403_v3 = vshrl.u32 %v3401_v61, 16  ;;  %v3206_v40 = vsel %vm7467_vm1, 1, %v7466_v34 }
 0x9c8   :  { %v3390_v56 = vshrl.u32 %v3388_v18, 16  ;;  %v3389_v59 = vand.u32 65535, %v3388_v18  ;;  %v3205_v18 = vsel %vm3191_vm10, 1, %v7466_v34 }
 0x9ca   :  { %3276 = vadd.xlane.f32.xlu1 %v3274_v57  ;;  %v3377_v57 = vshrl.u32 %v3375_v17, 16  ;;  %v3378_v17 = vcvt.s32.f32 %v3376_v30  ;;  %v3391_v33 = vcvt.s32.f32 %v3389_v59 }
 0x9ce   :  { %3291 = vadd.xlane.f32.xlu1 %v3288_v36  ;;  %v2640_v36 = vld [vmem:[%s7369_s17 + $0x8] sm:$0xff] }
 0x9cf   :  { %v5300_v2 = vpack.c.bf16 %v2640_v36, %v2639_v0  ;;  %v3312_v0 = vshrl.u32 %v3310_v63, 16 }
 0x9d1   :  { %5301 = vmatprep.subr.bf16.mxu0 %v5300_v2  ;;  %v3314_v9 = vcvt.s32.f32 %v3312_v0  ;;  %v2644_v0 = vld [vmem:[%s7371_s19] sm:$0xff] }
 0x9d2   :  { %3289 = vadd.xlane.f32.xlu1 %v3287_v38  ;;  %v3379_v38 = vcvt.s32.f32 %v3377_v57  ;;  %5303 = vmatpush3.bf16.msra.mxu0 %v5300_v2  ;;  %v3405_v57 = vcvt.s32.f32 %v3403_v3  ;;  %v3404_v2 = vcvt.s32.f32 %v3402_v41 }
 0x9d6   :  { %3304 = vadd.xlane.f32.xlu1 %v3301_v25  ;;  %v2642_v25 = vld [vmem:[%s7369_s17 + $0x18] sm:$0xff] }
 0x9d7   :  { %v5304_v54 = vpack.c.bf16 %v2642_v25, %v2641_v55  ;;  %v3349_v25 = vsel %vm121_vm0, %v3206_v40, 0 }
 0x9d8   :  { %v3351_v59 = vshrl.u32 %v3349_v25, 16 }
 0x9d9   :  { %5305 = vmatprep.subr.bf16.mxu0 %v5304_v54 }
 0x9da   :  { %3302 = vadd.xlane.f32.xlu1 %v3300_v62  ;;  %v3392_v62 = vcvt.s32.f32 %v3390_v56  ;;  %5307 = vmatpush3.bf16.msra.mxu0 %v5304_v54  ;;  %v3336_v56 = vsel %vm121_vm0, %v3205_v18, 0  ;;  %v3353_v3 = vcvt.s32.f32 %v3351_v59  ;;  %v2645_v18 = vld [vmem:[%s7371_s19 + $0x8] sm:$0xff] }
 0x9db   :  { %v3338_v30 = vshrl.u32 %v3336_v56, 16  ;;  %v3337_v54 = vand.u32 65535, %v3336_v56  ;;  %v1967_v56 = vadd.f32 %v6367_v12, %v6435_v10 }
 0x9dd   :  { %v3340_v61 = vcvt.s32.f32 %v3338_v30 }
 0x9de   :  { %3369 = vadd.xlane.f32.xlu1 %v3366_v21  ;;  %v3204_v21 = vsel %vm3190_vm11, 1, %v7466_v34 }
 0x9df   :  { %3278 = vadd.xlane.f32.xlu0 %v3275_v31  ;;  %v3323_v36 = vsel %vm121_vm0, %v3204_v21, 0  ;;  %v3311_v31 = vand.u32 65535, %v3310_v63  ;;  %vm7469_vm0 = vcmask 261120  }
 0x9e0   :  { %v3324_v55 = vand.u32 65535, %v3323_v36  ;;  %vm7471_vm7 = vmmov %vm7469_vm0 }
 0x9e1   :  { %vm7473_vm15 = vmmov %vm7469_vm0 }
 0x9e2   :  { %3367 = vadd.xlane.f32.xlu1 %v3365_v46  ;;  %v3325_v46 = vshrl.u32 %v3323_v36, 16  ;;  %v3326_v11 = vcvt.s32.f32 %v3324_v55  ;;  %vm7476_vm2 = vmmov %vm7469_vm0 }
 0x9e3   :  { %3382 = vadd.xlane.f32.xlu0 %v3379_v38  ;;  %v3313_v38 = vcvt.s32.f32 %v3311_v31  ;;  %v1972_v31 = vadd.f32 %v6433_v8, %v6367_v12  ;;  %vm7478_vm3 = vmmov %vm7469_vm0 }
 0x9e4   :  { %v3327_v20 = vcvt.s32.f32 %v3325_v46  ;;  %vm7479_vm4 = vmmov %vm7469_vm0 }
 0x9e5   :  { %5393 = vtanh.f32 %v1972_v31  ;;  %vm7481_vm5 = vmmov %vm7469_vm0 }
 0x9e6   :  { %3395 = vadd.xlane.f32.xlu1 %v3392_v62  ;;  %v3339_v62 = vcvt.s32.f32 %v3337_v54  ;;  %5395 = vtanh.f32 %v1967_v56  ;;  %vm7483_vm8 = vmmov %vm7469_vm0 }
 0x9e7   :  { %3380 = vadd.xlane.f32.xlu0 %v3378_v17  ;;  %v3350_v17 = vand.u32 65535, %v3349_v25  ;;  %vm7485_vm11 = vmmov %vm7469_vm0 }
 0x9e8   :  { %vm7488_vm12 = vmmov %vm7469_vm0 }
 0x9e9   :  { %v3352_v4 = vcvt.s32.f32 %v3350_v17  ;;  %vm7490_vm9 = vmmov %vm7469_vm0 }
 0x9ea   :  { %3393 = vadd.xlane.f32.xlu1 %v3391_v33  ;;  %vm7492_vm10 = vmmov %vm7469_vm0 }
 0x9eb   :  { %3408 = vadd.xlane.f32.xlu0 %v3405_v57  ;;  %vm7494_vm13 = vmmov %vm7469_vm0 }
 0x9ec   :  { %vm7495_vm14 = vmmov %vm7469_vm0 }
 0x9ed   :  { %vm7496_vm1 = vmmov %vm7469_vm0 }
 0x9ee   :  { %3317 = vadd.xlane.f32.xlu1 %v3314_v9 }
 0x9ef   :  { %3406 = vadd.xlane.f32.xlu0 %v3404_v2  ;;  %v5308_v2 = vpack.c.bf16 %v2645_v18, %v2644_v0  ;;  %v6834_v40 = vpop.eup %5393 }
 0x9f1   :  { %5309 = vmatprep.subr.bf16.mxu0 %v5308_v2 }
 0x9f2   :  { %3315 = vadd.xlane.f32.xlu1 %v3313_v38  ;;  %v6836_v38 = vpop.eup %5395 }
 0x9f3   :  { %3330 = vadd.xlane.f32.xlu0 %v3327_v20  ;;  %v2479_v30 = vadd.f32 %v6836_v38, %v6457_v23  ;;  %v2480_v20 = vadd.f32 %v6834_v40, %v6453_v1 }
 0x9f6   :  { %3343 = vadd.xlane.f32.xlu1 %v3340_v61 }
 0x9f7   :  { %3328 = vadd.xlane.f32.xlu0 %v3326_v11 }
 0x9fa   :  { %3341 = vadd.xlane.f32.xlu1 %v3339_v62 }
 0x9fb   :  { %3356 = vadd.xlane.f32.xlu0 %v3353_v3 }
 0x9ff   :  { %3354 = vadd.xlane.f32.xlu0 %v3352_v4 }
 0xa0b   :  { %v6814_v34 = vpop.f32.mrb[72].mxu1 }
 0xa0c   :  { %v5145_v63 = vpop.f32.mrb[73].mxu1 }
 0xa0d   :  { %v6816_v33 = vpop.f32.mrb[74].mxu1 }
 0xa0e   :  { %v5146_v21 = vpop.f32.mrb[75].mxu1 }
 0xa13   :  { %v6818_v57 = vpop.f32.mrb[76].mxu1 }
 0xa14   :  { %v5149_v41 = vpop.f32.mrb[77].mxu1 }
 0xa15   :  { %v6826_v36 = vpop.f32.mrb[78].mxu1 }
 0xa16   :  { %v5150_v9 = vpop.f32.mrb[79].mxu1 }
 0xa37   :  { %v6832_v46 = vpop.xlane.xlu0 %2466 }
 0xa3b   :  { %v2489_v55 = vpop.permute.xlu0 %2488  ;;  %v6842_v25 = vpop.xlane.xlu1 %2469 }
 0xa3c   :  { %v2491_v8 = vmul.f32 %v2489_v55, %v2479_v30  ;;  %v2492_v61 = vmul.f32 %v2489_v55, %v2480_v20 }
 0xa3e   :  { %2497 = vrot.lane.b32.xlu0 %v2492_v61, %s5704_s26  ;;  %2495 = vrot.lane.b32.xlu1 %v2491_v8, %s5704_s26 }
 0xa3f   :  { %v3240_v12 = vpop.xlane.xlu1 %3239 }
 0xa40   :  { %v3242_v54 = vcvt.f32.s32 %v3240_v12 }
 0xa42   :  { %v3243_v59 = vshll.u32 %v3242_v54, 16 }
 0xa43   :  { %v3253_v10 = vpop.xlane.xlu1 %3252 }
 0xa44   :  { %v3255_v62 = vcvt.f32.s32 %v3253_v10 }
 0xa46   :  { %v3256_v1 = vshll.u32 %v3255_v62, 16  ;;  %v2647_v62 = vld [vmem:[%s7371_s19 + $0x18] sm:$0xff] }
 0xa47   :  { %v3238_v11 = vpop.xlane.xlu1 %3237 }
 0xa48   :  { %v3241_v23 = vcvt.f32.s32 %v3238_v11 }
 0xa4a   :  { %v3244_v17 = vadd.s32 %v3243_v59, %v3241_v23  ;;  %v2646_v59 = vld [vmem:[%s7371_s19 + $0x10] sm:$0xff] }
 0xa4b   :  { %v3251_v3 = vpop.xlane.xlu1 %3250 }
 0xa4c   :  { %v3414_v4 = vcvt.s32.f32 %v3244_v17  ;;  %v3254_v63 = vcvt.f32.s32 %v3251_v3 }
 0xa4e   :  { %v3428_v21 = vmax.f32 %v3414_v4, 1.0  ;;  %v3257_v41 = vadd.s32 %v3256_v1, %v3254_v63  ;;  %v5312_v1 = vpack.c.bf16 %v2647_v62, %v2646_v59 }
 0xa4f   :  { %v3266_v0 = vpop.xlane.xlu1 %3265 }
 0xa50   :  { %5397 = vrcp.f32 %v3428_v21  ;;  %v3415_v18 = vcvt.s32.f32 %v3257_v41  ;;  %v3268_v9 = vcvt.f32.s32 %v3266_v0 }
 0xa52   :  { %v3429_v31 = vmax.f32 %v3415_v18, 1.0  ;;  %v3269_v30 = vshll.u32 %v3268_v9, 16 }
 0xa53   :  { %v3264_v56 = vpop.xlane.xlu1 %3263 }
 0xa54   :  { %5399 = vrcp.f32 %v3429_v31  ;;  %v3267_v20 = vcvt.f32.s32 %v3264_v56 }
 0xa56   :  { %v3270_v55 = vadd.s32 %v3269_v30, %v3267_v20 }
 0xa57   :  { %v3277_v8 = vpop.xlane.xlu1 %3276 }
 0xa58   :  { %v3416_v61 = vcvt.s32.f32 %v3270_v55 }
 0xa5a   :  { %v5398_v12 = vpop.eup %5397  ;;  %v3430_v10 = vmax.f32 %v3416_v61, 1.0 }
 0xa5b   :  { %v3292_v54 = vpop.xlane.xlu1 %3291  ;;  %v6847_v11 = vmul.f32 %v5398_v12, %v6661_v28 }
 0xa5c   :  { %5401 = vrcp.f32 %v3430_v10  ;;  %v3294_v28 = vcvt.f32.s32 %v3292_v54  ;;  %v3280_v10 = vcvt.f32.s32 %v3277_v8 }
 0xa5d   :  { %7468 = vst [vmem:[#allocation31_spill] sm:$0xff] %v6847_v11  ;;  %5159 = vmatprep.mubr.msk.f32.mxu0 %vm7469_vm0, %v6847_v11 }
 0xa5e   :  { %v5400_v23 = vpop.eup %5399  ;;  %v3295_v63 = vshll.u32 %v3294_v28, 16 }
 0xa5f   :  { %v6858_v17 = vmul.f32 %v5400_v23, %v6663_v29  ;;  %v3290_v3 = vpop.xlane.xlu1 %3289 }
 0xa60   :  { %v3293_v21 = vcvt.f32.s32 %v3290_v3 }
 0xa61   :  { %7470 = vst [vmem:[#allocation32_spill] sm:$0xff] %v6858_v17  ;;  %5160 = vmatmul.mubr.msk.f32.vlgmr.msra.gmra.mrb[72].mxu0 %vm7471_vm7, %v6858_v17 }
 0xa62   :  { %5311 = vmatpush3.bf16.msra.mxu0 %v5308_v2  ;;  %v3296_v29 = vadd.s32 %v3295_v63, %v3293_v21 }
 0xa63   :  { %v3305_v4 = vpop.xlane.xlu1 %3304  ;;  %5313 = vmatprep.subr.bf16.mxu0 %v5312_v1 }
 0xa64   :  { %v3307_v41 = vcvt.f32.s32 %v3305_v4  ;;  %v3418_v2 = vcvt.s32.f32 %v3296_v29 }
 0xa66   :  { %v5402_v0 = vpop.eup %5401  ;;  %v3308_v18 = vshll.u32 %v3307_v41, 16  ;;  %5315 = vmatpush3.bf16.msra.mxu0 %v5312_v1  ;;  %v3432_v62 = vmax.f32 %v3418_v2, 1.0 }
 0xa67   :  { %v3303_v9 = vpop.xlane.xlu1 %3302  ;;  %v6863_v31 = vmul.f32 %v5402_v0, %v6665_v48 }
 0xa68   :  { %v3306_v56 = vcvt.f32.s32 %v3303_v9  ;;  %5403 = vrcp.f32 %v3432_v62 }
 0xa69   :  { %7472 = vst [vmem:[#allocation33_spill] sm:$0xff] %v6863_v31  ;;  %5162 = vmatprep.mubr.msk.f32.mxu0 %vm7473_vm15, %v6863_v31 }
 0xa6a   :  { %v3309_v30 = vadd.s32 %v3308_v18, %v3306_v56 }
 0xa6b   :  { %v3370_v20 = vpop.xlane.xlu1 %3369 }
 0xa6c   :  { %v3279_v55 = vpop.xlane.xlu0 %3278  ;;  %v3419_v12 = vcvt.s32.f32 %v3309_v30  ;;  %v3372_v29 = vcvt.f32.s32 %v3370_v20 }
 0xa6d   :  { %v3281_v61 = vcvt.f32.s32 %v3279_v55 }
 0xa6e   :  { %v3433_v1 = vmax.f32 %v3419_v12, 1.0 }
 0xa6f   :  { %v3282_v54 = vshll.u32 %v3281_v61, 16  ;;  %v3368_v59 = vpop.xlane.xlu1 %3367 }
 0xa70   :  { %v3383_v23 = vpop.xlane.xlu0 %3382  ;;  %5405 = vrcp.f32 %v3433_v1 }
 0xa71   :  { %v3283_v3 = vadd.s32 %v3282_v54, %v3280_v10  ;;  %v3373_v10 = vshll.u32 %v3372_v29, 16 }
 0xa72   :  { %v5404_v8 = vpop.eup %5403 }
 0xa73   :  { %v3417_v48 = vcvt.s32.f32 %v3283_v3  ;;  %v3396_v28 = vpop.xlane.xlu1 %3395  ;;  %v6868_v62 = vmul.f32 %v5404_v8, %v6692_v45  ;;  %v3371_v3 = vcvt.f32.s32 %v3368_v59 }
 0xa74   :  { %v3381_v4 = vpop.xlane.xlu0 %3380  ;;  %v3398_v1 = vcvt.f32.s32 %v3396_v28 }
 0xa75   :  { %v3431_v63 = vmax.f32 %v3417_v48, 1.0  ;;  %7474 = vst [vmem:[#allocation34_spill] sm:$0xff] %v6868_v62  ;;  %v3374_v59 = vadd.s32 %v3373_v10, %v3371_v3 }
 0xa77   :  { %5407 = vrcp.f32 %v3431_v63  ;;  %v3394_v21 = vpop.xlane.xlu1 %3393 }
 0xa78   :  { %v3409_v41 = vpop.xlane.xlu0 %3408  ;;  %v3397_v28 = vcvt.f32.s32 %v3394_v21 }
 0xa79   :  { %v3411_v29 = vcvt.f32.s32 %v3409_v41 }
 0xa7a   :  { %v5406_v30 = vpop.eup %5405 }
 0xa7b   :  { %v3318_v0 = vpop.xlane.xlu1 %3317 }
 0xa7c   :  { %v3320_v18 = vcvt.f32.s32 %v3318_v0  ;;  %v3407_v9 = vpop.xlane.xlu0 %3406  ;;  %v3385_v0 = vcvt.f32.s32 %v3383_v23 }
 0xa7e   :  { %v3321_v2 = vshll.u32 %v3320_v18, 16  ;;  %v6876_v18 = vmul.f32 %v5406_v30, %v6694_v26  ;;  %v3412_v26 = vshll.u32 %v3411_v29, 16 }
 0xa7f   :  { %v3316_v56 = vpop.xlane.xlu1 %3315 }
 0xa80   :  { %v3319_v55 = vcvt.f32.s32 %v3316_v56  ;;  %v3331_v61 = vpop.xlane.xlu0 %3330  ;;  %7477 = vst [vmem:[#allocation36_spill] sm:$0xff] %v6876_v18  ;;  %v3386_v56 = vshll.u32 %v3385_v0, 16 }
 0xa81   :  { %v5408_v12 = vpop.eup %5407  ;;  %v3333_v54 = vcvt.f32.s32 %v3331_v61 }
 0xa82   :  { %v3322_v48 = vadd.s32 %v3321_v2, %v3319_v55  ;;  %v6871_v63 = vmul.f32 %v5408_v12, %v6667_v47  ;;  %v3399_v47 = vshll.u32 %v3398_v1, 16  ;;  %v3384_v2 = vcvt.f32.s32 %v3381_v4 }
 0xa83   :  { %v3344_v20 = vpop.xlane.xlu1 %3343  ;;  %v3334_v45 = vshll.u32 %v3333_v54, 16  ;;  %v3424_v54 = vcvt.s32.f32 %v3374_v59 }
 0xa84   :  { %7475 = vst [vmem:[#allocation35_spill] sm:$0xff] %v6871_v63  ;;  %v3420_v31 = vcvt.s32.f32 %v3322_v48  ;;  %v3346_v11 = vcvt.f32.s32 %v3344_v20  ;;  %v3329_v17 = vpop.xlane.xlu0 %3328  ;;  %5163 = vmatmul.mubr.msk.f32.gmra.mrb[74].mxu0 %vm7476_vm2, %v6871_v63  ;;  %v3400_v10 = vadd.s32 %v3399_v47, %v3397_v28  ;;  %v3387_v21 = vadd.s32 %v3386_v56, %v3384_v2  ;;  %vm7516_vm2 = vmmov %vm7469_vm0 }
 0xa85   :  { %v3332_v8 = vcvt.f32.s32 %v3329_v17  ;;  %5165 = vmatprep.mubr.msk.f32.mxu0 %vm7478_vm3, %v6868_v62  ;;  %v3410_v17 = vcvt.f32.s32 %v3407_v9  ;;  %vm7517_vm3 = vmmov %vm7469_vm0 }
 0xa86   :  { %v3434_v23 = vmax.f32 %v3420_v31, 1.0  ;;  %v3347_v12 = vshll.u32 %v3346_v11, 16  ;;  %v3425_v62 = vcvt.s32.f32 %v3387_v21  ;;  %v4577_v21 = vld [vmem:[%s7368_s16 + $0x5] ss:$0 sm:$0xff] }
 0xa87   :  { %v3335_v55 = vadd.s32 %v3334_v45, %v3332_v8  ;;  %v3342_v61 = vpop.xlane.xlu1 %3341  ;;  %v3413_v0 = vadd.s32 %v3412_v26, %v3410_v17  ;;  %v3438_v8 = vmax.f32 %v3424_v54, 1.0 }
 0xa88   :  { %5409 = vrcp.f32 %v3434_v23  ;;  %v3345_v48 = vcvt.f32.s32 %v3342_v61  ;;  %v3357_v20 = vpop.xlane.xlu0 %3356  ;;  %5166 = vmatmul.mubr.msk.f32.gmra.mrb[76].mxu0 %vm7479_vm4, %v6876_v18  ;;  %v3426_v23 = vcvt.s32.f32 %v3400_v10  ;;  %v3439_v47 = vmax.f32 %v3425_v62, 1.0 }
 0xa89   :  { %v3421_v41 = vcvt.s32.f32 %v3335_v55  ;;  %v3359_v30 = vcvt.f32.s32 %v3357_v20  ;;  %v3427_v9 = vcvt.s32.f32 %v3413_v0 }
 0xa8a   :  { %v3348_v3 = vadd.s32 %v3347_v12, %v3345_v48  ;;  %v3440_v59 = vmax.f32 %v3426_v23, 1.0 }
 0xa8b   :  { %v3435_v31 = vmax.f32 %v3421_v41, 1.0  ;;  %v3360_v45 = vshll.u32 %v3359_v30, 16  ;;  %v3441_v2 = vmax.f32 %v3427_v9, 1.0 }
 0xa8c   :  { %v3422_v1 = vcvt.s32.f32 %v3348_v3  ;;  %v3355_v4 = vpop.xlane.xlu0 %3354 }
 0xa8d   :  { %5411 = vrcp.f32 %v3435_v31  ;;  %v3358_v11 = vcvt.f32.s32 %v3355_v4 }
 0xa8e   :  { %v3436_v61 = vmax.f32 %v3422_v1, 1.0 }
 0xa8f   :  { %v3361_v63 = vadd.s32 %v3360_v45, %v3358_v11 }
 0xa90   :  { %5413 = vrcp.f32 %v3436_v61 }
 0xa91   :  { %v3423_v29 = vcvt.s32.f32 %v3361_v63  ;;  %5415 = vrcp.f32 %v3438_v8 }
 0xa92   :  { %v5410_v55 = vpop.eup %5409 }
 0xa93   :  { %v3437_v28 = vmax.f32 %v3423_v29, 1.0  ;;  %v6883_v56 = vmul.f32 %v5410_v55, %v6696_v16 }
 0xa95   :  { %7480 = vst [vmem:[#allocation37_spill] sm:$0xff] %v6883_v56  ;;  %5417 = vrcp.f32 %v3437_v28  ;;  %5168 = vmatprep.mubr.msk.f32.mxu0 %vm7481_vm5, %v6883_v56 }
 0xa96   :  { %5419 = vrcp.f32 %v3440_v59 }
 0xa97   :  { %v5412_v12 = vpop.eup %5411  ;;  %5421 = vrcp.f32 %v3439_v47 }
 0xa98   :  { %v6888_v48 = vmul.f32 %v5412_v12, %v6698_v43  ;;  %5423 = vrcp.f32 %v3441_v2 }
 0xa9a   :  { %7482 = vst [vmem:[#allocation38_spill] sm:$0xff] %v6888_v48  ;;  %v5414_v63 = vpop.eup %5413  ;;  %5169 = vmatmul.mubr.msk.f32.gmra.mrb[78].mxu0 %vm7483_vm8, %v6888_v48 }
 0xa9b   :  { %v6893_v62 = vmul.f32 %v5414_v63, %v6734_v5  ;;  %v5416_v16 = vpop.eup %5415 }
 0xa9c   :  { %v6898_v26 = vmul.f32 %v5416_v16, %v6814_v34  ;;  %v5609_v34 = vld [vmem:[%s7432_s4] sm:$0xff] }
 0xa9d   :  { %7484 = vst [vmem:[#allocation39_spill] sm:$0xff] %v6893_v62  ;;  %5171 = vmatprep.mubr.msk.f32.mxu0 %vm7485_vm11, %v6893_v62 }
 0xa9e   :  { %7486 = vst [vmem:[#allocation40_spill] sm:$0xff] %v6898_v26 }
 0xa9f   :  { %v5418_v20 = vpop.eup %5417 }
 0xaa0   :  { %v5420_v17 = vpop.eup %5419  ;;  %v6901_v43 = vmul.f32 %v5418_v20, %v6736_v32 }
 0xaa1   :  { %v5422_v41 = vpop.eup %5421  ;;  %v6906_v5 = vmul.f32 %v5420_v17, %v6818_v57 }
 0xaa2   :  { %7487 = vst [vmem:[#allocation41_spill] sm:$0xff] %v6901_v43  ;;  %5172 = vmatmul.mubr.msk.f32.gmra.mrb[80].mxu0 %vm7488_vm12, %v6901_v43  ;;  %v5424_v30 = vpop.eup %5423  ;;  %v6911_v54 = vmul.f32 %v5422_v41, %v6816_v33  ;;  %v5610_v33 = vld [vmem:[%s7432_s4 + $0x8] sm:$0xff] }
 0xaa3   :  { %7489 = vst [vmem:[#allocation42_spill] sm:$0xff] %v6906_v5  ;;  %5174 = vmatprep.mubr.msk.f32.mxu0 %vm7490_vm9, %v6898_v26  ;;  %v6916_v32 = vmul.f32 %v5424_v30, %v6826_v36 }
 0xaa4   :  { %7491 = vst [vmem:[#allocation43_spill] sm:$0xff] %v6911_v54 }
 0xaa5   :  { %7493 = vst [vmem:[#allocation44_spill] sm:$0xff] %v6916_v32 }
 0xaa6   :  { %5175 = vmatmul.mubr.msk.f32.gmra.mrb[82].mxu0 %vm7492_vm10, %v6911_v54 }
 0xaa7   :  { %5177 = vmatprep.mubr.msk.f32.mxu0 %vm7494_vm13, %v6906_v5 }
 0xaaa   :  { %5178 = vmatmul.mubr.msk.f32.gmra.mrb[84].mxu0 %vm7495_vm14, %v6916_v32 }
 0xaab   :  { %5188 = vmatprep.mubr.msk.f32.mxu0 %vm7496_vm1, %v5609_v34 }
 0xaae   :  { %5189 = vmatmul.mubr.msk.f32.vlgmr.msra.gmra.mrb[86].mxu0 %vm7469_vm0, %v5610_v33 }
 0xab0   :  { %v2498_v57 = vpop.permute.xlu0 %2497  ;;  %v2496_v36 = vpop.permute.xlu1 %2495 }
 0xab1   :  { %v2504_v10 = vsel %vm825_vm6, %v2498_v57, 0.0  ;;  %v2501_v3 = vsel %vm825_vm6, %v2496_v36, 0.0 }
 0xab2   :  { %2505 = vadd.xlane.f32.xlu0 %v2504_v10  ;;  %2502 = vadd.xlane.f32.xlu1 %v2501_v3 }
 0xac3   :  { %2528 = vrot.lane.b32.xlu1 %v4577_v21, %s5703_s14 }
 0xb34   :  { %v6936_v31 = vpop.f32.mrb[72].mxu0 }
 0xb35   :  { %v3708_v1 = vpop.f32.mrb[73].mxu0 }
 0xb3f   :  { %v6938_v4 = vpop.xlane.xlu1 %2502 }
 0xb43   :  { %v2529_v0 = vpop.permute.xlu1 %2528 }
 0xb44   :  { %v2531_v45 = vmul.f32 %v6836_v38, %v2529_v0  ;;  %v2532_v11 = vmul.f32 %v6834_v40, %v2529_v0  ;;  %v6959_v40 = vld [vmem:[%s7370_s18] ss:$0 sm:$0xff] }
 0xb45   :  { %v3709_v34 = vadd.f32 %v6959_v40, %v3708_v1 }
 0xb46   :  { %2537 = vrot.lane.b32.xlu1 %v2532_v11, %s5704_s26  ;;  %2535 = vrot.lane.b32.xlu0 %v2531_v45, %s5704_s26 }
 0xb57   :  { %v6944_v8 = vpop.f32.mrb[74].mxu0 }
 0xb58   :  { %v6946_v23 = vpop.f32.mrb[75].mxu0 }
 0xb5b   :  { %v6948_v61 = vpop.f32.mrb[76].mxu0 }
 0xb5c   :  { %v6950_v9 = vpop.f32.mrb[77].mxu0 }
 0xb6d   :  { %v5170_v29 = vpop.f32.mrb[78].mxu0 }
 0xb6e   :  { %v6952_v55 = vpop.f32.mrb[79].mxu0  ;;  %v3744_v38 = vadd.f32 %v5170_v29, %v6959_v40 }
 0xb70   :  { %5425 = vtanh.f32 %v3744_v38 }
 0xb75   :  { %v5173_v59 = vpop.f32.mrb[80].mxu0 }
 0xb76   :  { %v6954_v47 = vpop.f32.mrb[81].mxu0  ;;  %v3754_v2 = vadd.f32 %v5173_v59, %v6959_v40 }
 0xb78   :  { %5427 = vtanh.f32 %v3754_v2 }
 0xb79   :  { %v5176_v28 = vpop.f32.mrb[82].mxu0 }
 0xb7a   :  { %v3758_v12 = vpop.f32.mrb[83].mxu0  ;;  %v3764_v63 = vadd.f32 %v5176_v28, %v6959_v40  ;;  %v6968_v36 = vpop.eup %5425 }
 0xb7b   :  { %v3759_v30 = vadd.f32 %v6959_v40, %v3758_v12 }
 0xb7c   :  { %5429 = vtanh.f32 %v3764_v63 }
 0xb7d   :  { %v5179_v16 = vpop.f32.mrb[84].mxu0 }
 0xb7e   :  { %v3774_v20 = vadd.f32 %v5179_v16, %v6959_v40  ;;  %v3768_v17 = vpop.f32.mrb[85].mxu0  ;;  %v7007_v16 = vld [vmem:[%s7372_s20] ss:$0 sm:$0xff] }
 0xb7f   :  { %v3769_v41 = vadd.f32 %v6959_v40, %v3768_v17  ;;  %7499 = vst [vmem:[#allocation47_spill] sm:$0xff] %v7007_v16 }
 0xb80   :  { %5431 = vtanh.f32 %v3774_v20 }
 0xb81   :  { %5433 = vtanh.f32 %v3769_v41  ;;  %v5190_v33 = vpop.f32.mrb[86].mxu0  ;;  %v7014_v41 = vpop.xlane.xlu0 %2505 }
 0xb82   :  { %5435 = vtanh.f32 %v5190_v33  ;;  %v3863_v57 = vpop.f32.mrb[87].mxu0  ;;  %v6970_v10 = vpop.eup %5427 }
 0xb83   :  { %5437 = vtanh.f32 %v3863_v57 }
 0xb84   :  { %5439 = vtanh.f32 %v3759_v30 }
 0xb85   :  { %5441 = vtanh.f32 %v3709_v34 }
 0xb86   :  { %v6972_v3 = vpop.eup %5429 }
 0xb8a   :  { %v5432_v21 = vpop.eup %5431 }
 0xb8b   :  { %v5434_v0 = vpop.eup %5433 }
 0xb8c   :  { %v6974_v45 = vpop.eup %5435 }
 0xb8d   :  { %v6976_v11 = vpop.eup %5437  ;;  %v6980_v1 = vadd.f32 %v6974_v45, %v6968_v36  ;;  %v6984_v29 = vadd.f32 %v6974_v45, %v6970_v10  ;;  %v6996_v2 = vadd.f32 %v6974_v45, %v6972_v3  ;;  %v7002_v63 = vadd.f32 %v6974_v45, %v5432_v21  ;;  %v4580_v21 = vld [vmem:[%s7367_s15 + $0x6] ss:$0 sm:$0xff]  ;;  %s5706_s15 = smov 80  }
 0xb8e   :  { %v6986_v59 = vpop.eup %5439  ;;  %v6999_v12 = vadd.f32 %v6976_v11, %v5434_v0  ;;  %v2209_v0 = vadd.f32 %v6518_v35, %v6547_v37 }
 0xb8f   :  { %v6988_v38 = vpop.eup %5441  ;;  %v6992_v28 = vadd.f32 %v6986_v59, %v6976_v11  ;;  %7498 = vst [vmem:[#allocation46_spill] sm:$0xff] %v7002_v63 }
 0xb90   :  { %7497 = vst [vmem:[#allocation45_spill] sm:$0xff] %v6999_v12  ;;  %v3878_v20 = vadd.f32 %v6988_v38, %v6976_v11  ;;  %v2210_v5 = vrot.slane %v2209_v0, 4 }
 0xb92   :  { %v7012_v17 = vmul.f32 %v7007_v16, %v3878_v20  ;;  %v2132_v20 = vadd.f32 %v6455_v19, %v6445_v52 }
 0xb94   :  { %7500 = vst [vmem:[#allocation48_spill] sm:$0xff] %v7012_v17 }
 0xbb8   :  { %v2538_v30 = vpop.permute.xlu1 %2537  ;;  %v2536_v34 = vpop.permute.xlu0 %2535 }
 0xbb9   :  { %v2544_v33 = vsel %vm825_vm6, %v2538_v30, 0.0  ;;  %v2541_v57 = vsel %vm825_vm6, %v2536_v34, 0.0  ;;  %v2285_v30 = vadd.f32 %v6554_v50, %v6552_v13  ;;  %v2133_v34 = vrot.slane %v2132_v20, 4 }
 0xbba   :  { %2545 = vadd.xlane.f32.xlu0 %v2544_v33  ;;  %2542 = vadd.xlane.f32.xlu1 %v2541_v57  ;;  %v2211_v57 = vadd.f32 %v2210_v5, %v2209_v0  ;;  %v2471_v5 = vadd.f32 %v6842_v25, %v6832_v46 }
 0xbbb   :  { %v2286_v33 = vrot.slane %v2285_v30, 4  ;;  %v2134_v26 = vadd.f32 %v2133_v34, %v2132_v20 }
 0xbbc   :  { %v2212_v62 = vrot.slane %v2211_v57, 2 }
 0xbbd   :  { %v2287_v32 = vadd.f32 %v2286_v33, %v2285_v30  ;;  %v2135_v56 = vrot.slane %v2134_v26, 2 }
 0xbbe   :  { %v2213_v43 = vadd.f32 %v2212_v62, %v2211_v57  ;;  %v2472_v62 = vrot.slane %v2471_v5, 4 }
 0xbbf   :  { %v2288_v54 = vrot.slane %v2287_v32, 2 }
 0xbc0   :  { %v2214_v18 = vrot.slane %v2213_v43, 1 }
 0xbc1   :  { %v2289_v48 = vadd.f32 %v2288_v54, %v2287_v32 }
 0xbc2   :  { %v2215_v17 = vadd.f32 %v2214_v18, %v2213_v43  ;;  %v2473_v43 = vadd.f32 %v2472_v62, %v2471_v5  ;;  %v4555_v5 = vmul.f32 -1.442695, %v6615_v7 }
 0xbc3   :  { %v2290_v37 = vrot.slane %v2289_v48, 1 }
 0xbc4   :  { %v2216_v12 = vmul.f32 0.0625, %v2215_v17  ;;  %v4544_v17 = vmul.f32 -1.442695, %v6604_v44  ;;  %v2474_v30 = vrot.slane %v2473_v43, 2  ;;  %v4549_v44 = vmul.f32 -1.442695, %v6610_v15 }
 0xbc5   :  { %v2291_v19 = vadd.f32 %v2290_v37, %v2289_v48  ;;  %v4545_v15 = vmul.f32 -1.442695, %v6557_v6  ;;  %v4562_v6 = vmul.f32 -1.442695, %v6617_v24 }
 0xbc6   :  { %v2475_v46 = vadd.f32 %v2474_v30, %v2473_v43  ;;  %v4563_v43 = vmul.f32 -1.442695, %v6598_v60  ;;  %v4568_v30 = vmul.f32 -1.442695, %v6738_v27 }
 0xbc7   :  { %v2292_v50 = vmul.f32 0.0625, %v2291_v19 }
 0xbd0   :  { %2598 = vrot.lane.b32.xlu0 %v4580_v21, %s5705_s1  ;;  %v2136_v21 = vadd.f32 %v2135_v56, %v2134_v26  ;;  %v2395_v56 = vadd.f32 %v6671_v51, %v6592_v49  ;;  %v4550_v49 = vmul.f32 -1.442695, %v6594_v58  ;;  %v4556_v58 = vmul.f32 -1.442695, %v6596_v39 }
 0xbd2   :  { %v2137_v35 = vrot.slane %v2136_v21, 1  ;;  %v2396_v32 = vrot.slane %v2395_v56, 4 }
 0xbd4   :  { %v2138_v52 = vadd.f32 %v2137_v35, %v2136_v21  ;;  %v2397_v48 = vadd.f32 %v2396_v32, %v2395_v56  ;;  %v2476_v21 = vrot.slane %v2475_v46, 1 }
 0xbd6   :  { %v2140_v13 = vmul.f32 0.0625, %v2138_v52  ;;  %v2398_v34 = vrot.slane %v2397_v48, 2 }
 0xbd8   :  { %v2293_v16 = vmax.f32 %v2140_v13, %v2216_v12  ;;  %v2399_v51 = vadd.f32 %v2398_v34, %v2397_v48 }
 0xbda   :  { %v2294_v63 = vmax.f32 %v2293_v16, %v2292_v50  ;;  %v2400_v52 = vrot.slane %v2399_v51, 1 }
 0xbdc   :  { %v2295_v0 = vsub.f32 %v2140_v13, %v2294_v63  ;;  %v2298_v20 = vsub.f32 %v2216_v12, %v2294_v63  ;;  %v2301_v18 = vsub.f32 %v2292_v50, %v2294_v63 }
 0xbde   :  { %v2296_v26 = vmul.f32 1.442695, %v2295_v0  ;;  %v2299_v54 = vmul.f32 1.442695, %v2298_v20  ;;  %v2302_v16 = vmul.f32 1.442695, %v2301_v18  ;;  %v2477_v0 = vadd.f32 %v2476_v21, %v2475_v46 }
 0xbe0   :  { %5443 = vpow2.f32 %v2296_v26  ;;  %v2401_v26 = vadd.f32 %v2400_v52, %v2399_v51  ;;  %v2478_v7 = vmul.f32 0.0625, %v2477_v0 }
 0xbe1   :  { %5445 = vpow2.f32 %v2299_v54 }
 0xbe2   :  { %5447 = vpow2.f32 %v4544_v17  ;;  %v2402_v48 = vmul.f32 0.0625, %v2401_v26 }
 0xbe3   :  { %5449 = vpow2.f32 %v2302_v16  ;;  %v4569_v16 = vmul.f32 -1.442695, %v6700_v14 }
 0xbe4   :  { %5451 = vpow2.f32 %v4550_v49  ;;  %v2555_v34 = vmax.f32 %v2402_v48, %v2478_v7 }
 0xbe5   :  { %5453 = vpow2.f32 %v4549_v44 }
 0xbe6   :  { %5455 = vpow2.f32 %v4556_v58 }
 0xbe7   :  { %5457 = vpow2.f32 %v4555_v5 }
 0xbe8   :  { %5459 = vpow2.f32 %v4545_v15 }
 0xbea   :  { %v7034_v57 = vpop.eup %5443 }
 0xbeb   :  { %v7036_v63 = vpop.eup %5445 }
 0xbec   :  { %v2304_v50 = vadd.f32 %v7036_v63, %v7034_v57  ;;  %v5448_v56 = vpop.eup %5447 }
 0xbed   :  { %v7046_v62 = vpop.eup %5449  ;;  %v2109_v39 = vadd.f32 1.0, %v5448_v56 }
 0xbee   :  { %v2305_v32 = vadd.f32 %v7046_v62, %v2304_v50 }
 0xbf0   :  { %5461 = vrcp.f32 %v2305_v32 }
 0xbf1   :  { %5463 = vrcp.f32 %v2109_v39 }
 0xbf2   :  { %5465 = vpow2.f32 %v4563_v43 }
 0xbf3   :  { %5467 = vpow2.f32 %v4562_v6 }
 0xbf4   :  { %5469 = vpow2.f32 %v4569_v16 }
 0xbf5   :  { %5471 = vpow2.f32 %v4568_v30 }
 0xc47   :  { %v2543_v25 = vpop.xlane.xlu1 %2542  ;;  %v2546_v12 = vpop.xlane.xlu0 %2545 }
 0xc48   :  { %v2547_v33 = vadd.f32 %v2546_v12, %v2543_v25  ;;  %v4575_v25 = vmul.f32 -1.442695, %v7014_v41  ;;  %v4574_v12 = vmul.f32 -1.442695, %v6938_v4 }
 0xc4a   :  { %v2548_v35 = vrot.slane %v2547_v33, 4  ;;  %5473 = vpow2.f32 %v4575_v25 }
 0xc4b   :  { %v2599_v37 = vpop.permute.xlu0 %2598  ;;  %5475 = vpow2.f32 %v4574_v12 }
 0xc4c   :  { %v2549_v19 = vadd.f32 %v2548_v35, %v2547_v33  ;;  %v2601_v13 = vmul.f32 %v2599_v37, %v6469_v42  ;;  %v2602_v54 = vmul.f32 %v2599_v37, %v6472_v53  ;;  %v5452_v53 = vpop.eup %5451 }
 0xc4d   :  { %v5454_v49 = vpop.eup %5453  ;;  %v2176_v24 = vadd.f32 1.0, %v5452_v53 }
 0xc4e   :  { %v2550_v20 = vrot.slane %v2549_v19, 2  ;;  %2605 = vrot.lane.b32.xlu1 %v2601_v13, %s5706_s15  ;;  %v5456_v21 = vpop.eup %5455  ;;  %v2175_v27 = vadd.f32 1.0, %v5454_v49 }
 0xc4f   :  { %v5458_v35 = vpop.eup %5457  ;;  %5477 = vrcp.f32 %v2176_v24 }
 0xc50   :  { %v2551_v42 = vadd.f32 %v2550_v20, %v2549_v19  ;;  %v5460_v52 = vpop.eup %5459  ;;  %v2252_v19 = vadd.f32 1.0, %v5456_v21  ;;  %v2251_v13 = vadd.f32 1.0, %v5458_v35  ;;  %v7503_v21 = vld [vmem:[#allocation18_spill] sm:$0xff] }
 0xc51   :  { %v5462_v4 = vpop.eup %5461  ;;  %v2110_v58 = vadd.f32 1.0, %v5460_v52 }
 0xc52   :  { %v2552_v18 = vrot.slane %v2551_v42, 1  ;;  %2607 = vrot.lane.b32.xlu1 %v2602_v54, %s5706_s15  ;;  %v5464_v50 = vpop.eup %5463  ;;  %v2308_v24 = vmul.f32 %v5462_v4, %v7034_v57  ;;  %v5611_v57 = vld [vmem:[%s7437_s22] ss:$0 sm:$0xff]  ;;  %s7075_s22 = sld [smem:[#allocation2 + $0x2]] }
 0xc53   :  { %v5466_v5 = vpop.eup %5465  ;;  %v2115_v35 = vmul.f32 %v5464_v50, %v7503_v21 }
 0xc54   :  { %v2553_v17 = vadd.f32 %v2552_v18, %v2551_v42  ;;  %v5468_v0 = vpop.eup %5467  ;;  %v2362_v15 = vadd.f32 1.0, %v5466_v5 }
 0xc55   :  { %v5470_v20 = vpop.eup %5469  ;;  %v2361_v42 = vadd.f32 1.0, %v5468_v0  ;;  %v7507_v0 = vld [vmem:[#allocation17_spill] sm:$0xff] }
 0xc56   :  { %v2554_v46 = vmul.f32 0.0625, %v2553_v17  ;;  %v5472_v56 = vpop.eup %5471  ;;  %v2438_v32 = vadd.f32 1.0, %v5470_v20  ;;  %v619_v50 = vadd.f32 %v5611_v57, %v7507_v0 }
 0xc57   :  { %v5474_v26 = vpop.eup %5473 }
 0xc58   :  { %v2556_v60 = vmax.f32 %v2555_v34, %v2554_v46  ;;  %v5476_v54 = vpop.eup %5475  ;;  %v2514_v43 = vadd.f32 1.0, %v5474_v26  ;;  %v2309_v26 = vmul.f32 %v2308_v24, %v2115_v35  ;;  %vm627_vm15 = vcmp.gt.f32.partialorder %v619_v50, 0.0 }
 0xc59   :  { %v5478_v39 = vpop.eup %5477  ;;  %v2083_v35 = vstv %s7072_s6 }
 0xc5a   :  { %v2557_v51 = vsub.f32 %v2402_v48, %v2556_v60  ;;  %v2560_v33 = vsub.f32 %v2478_v7, %v2556_v60  ;;  %v2563_v14 = vsub.f32 %v2554_v46, %v2556_v60  ;;  %v2437_v7 = vadd.f32 1.0, %v5472_v56  ;;  %v7501_v60 = vld [vmem:[#allocation20_spill] sm:$0xff] }
 0xc5b   :  { %v2513_v48 = vadd.f32 1.0, %v5476_v54  ;;  %v2182_v25 = vmul.f32 %v5478_v39, %v6245_v22 }
 0xc5c   :  { %v2558_v44 = vmul.f32 1.442695, %v2557_v51  ;;  %v2561_v37 = vmul.f32 1.442695, %v2560_v33  ;;  %v2564_v41 = vmul.f32 1.442695, %v2563_v14  ;;  %v2311_v51 = vmul.f32 %v5462_v4, %v7036_v63 }
 0xc5d   :  { %v7502_v33 = vld [vmem:[#allocation21_spill] sm:$0xff] }
 0xc5e   :  { %5479 = vpow2.f32 %v2558_v44  ;;  %v2313_v22 = vmul.f32 %v2311_v51, %v2182_v25 }
 0xc5f   :  { %5481 = vpow2.f32 %v2561_v37  ;;  %v7505_v37 = vld [vmem:[#allocation19_spill] sm:$0xff] }
 0xc60   :  { %5483 = vrcp.f32 %v2175_v27  ;;  %v7504_v27 = vld [vmem:[#allocation22_spill] sm:$0xff] }
 0xc61   :  { %5485 = vpow2.f32 %v2564_v41  ;;  %v2316_v41 = vmul.f32 %v5462_v4, %v7046_v62 }
 0xc62   :  { %5487 = vrcp.f32 %v2252_v19 }
 0xc63   :  { %5489 = vrcp.f32 %v2251_v13  ;;  %v7506_v13 = vld [vmem:[#allocation16_spill] sm:$0xff] }
 0xc64   :  { %5491 = vrcp.f32 %v2110_v58  ;;  %v624_v63 = vadd.f32 %v5611_v57, %v7506_v13 }
 0xc65   :  { %5493 = vrcp.f32 %v2362_v15 }
 0xc66   :  { %5495 = vrcp.f32 %v2361_v42  ;;  %vm628_vm7 = vcmp.gt.f32.partialorder %v624_v63, 0.0 }
 0xc67   :  { %5497 = vrcp.f32 %v2438_v32  ;;  %v630_v32 = vmul.f32 0.2, %v624_v63 }
 0xc68   :  { %v5480_v18 = vpop.eup %5479  ;;  %5499 = vrcp.f32 %v2437_v7 }
 0xc69   :  { %v5482_v6 = vpop.eup %5481  ;;  %5501 = vrcp.f32 %v2514_v43  ;;  %v629_v43 = vmul.f32 0.2, %v619_v50  ;;  %v632_v13 = vsel %vm628_vm7, %v624_v63, %v630_v32  ;;  %v4645_v32 = vld [vmem:[%s7373_s21] ss:$0 sm:$0xff] }
 0xc6a   :  { %v5484_v17 = vpop.eup %5483  ;;  %v2566_v16 = vadd.f32 %v5482_v6, %v5480_v18  ;;  %5503 = vrcp.f32 %v2513_v48 }
 0xc6b   :  { %v5486_v53 = vpop.eup %5485  ;;  %v2181_v49 = vmul.f32 %v5484_v17, %v7501_v60  ;;  %v2322_v17 = vstv %s7062_s5 }
 0xc6c   :  { %v5488_v30 = vpop.eup %5487  ;;  %v2567_v34 = vadd.f32 %v5486_v53, %v2566_v16 }
 0xc6d   :  { %v5490_v46 = vpop.eup %5489  ;;  %v2258_v14 = vmul.f32 %v5488_v30, %v7502_v33  ;;  %v2312_v58 = vmul.f32 %v2311_v51, %v2181_v49  ;;  %v7508_v30 = vld [vmem:[#allocation24_spill] sm:$0xff] }
 0xc6e   :  { %v5492_v12 = vpop.eup %5491  ;;  %5505 = vrcp.f32 %v2567_v34  ;;  %v2257_v44 = vmul.f32 %v5490_v46, %v7504_v27  ;;  %v7509_v46 = vld [vmem:[#allocation23_spill] sm:$0xff]  ;;  %v7512_v27 = vld [vmem:[#allocation28_spill] sm:$0xff] }
 0xc6f   :  { %v2116_v52 = vmul.f32 %v5492_v12, %v7505_v37  ;;  %v5494_v19 = vpop.eup %5493  ;;  %v2318_v56 = vmul.f32 %v2316_v41, %v2258_v14  ;;  %v2314_v39 = vadd.f32 %v2312_v58, %v2309_v26  ;;  %v7510_v12 = vld [vmem:[#allocation26_spill] sm:$0xff]  ;;  %v7513_v37 = vld [vmem:[#allocation27_spill] sm:$0xff]  ;;  %v631_v58 = vsel %vm627_vm15, %v619_v50, %v629_v43 }
 0xc70   :  { %v5496_v5 = vpop.eup %5495  ;;  %v2317_v42 = vmul.f32 %v2316_v41, %v2257_v44  ;;  %v2368_v34 = vmul.f32 %v5494_v19, %v7508_v30  ;;  %v2084_v26 = vmul.f32 %v2083_v35, %v631_v58  ;;  %v3714_v50 = vadd.f32 %v6936_v31, %v6959_v40 }
 0xc71   :  { %v2310_v20 = vmul.f32 %v2308_v24, %v2116_v52  ;;  %v5498_v15 = vpop.eup %5497  ;;  %v2367_v25 = vmul.f32 %v5496_v5, %v7509_v46  ;;  %v7511_v24 = vld [vmem:[#allocation25_spill] sm:$0xff] }
 0xc72   :  { %v5500_v62 = vpop.eup %5499  ;;  %v2444_v60 = vmul.f32 %v5498_v15, %v7510_v12  ;;  %v2319_v49 = vadd.f32 %v2317_v42, %v2314_v39  ;;  %v2085_v15 = vmul.f32 %v2083_v35, %v632_v13  ;;  %5507 = vtanh.f32 %v3714_v50  ;;  %v4672_v35 = vld [vmem:[%s7372_s20 + $0x5] ss:$0 sm:$0xff] }
 0xc73   :  { %v2315_v4 = vadd.f32 %v2313_v22, %v2310_v20  ;;  %v5502_v54 = vpop.eup %5501  ;;  %v2443_v51 = vmul.f32 %v5500_v62, %v7511_v24  ;;  %v4651_v24 = vld [vmem:[%s7373_s21 + $0x1] ss:$0 sm:$0xff]  ;;  %v3739_v13 = vadd.f32 %v6959_v40, %v6952_v55 }
 0xc74   :  { %v5504_v7 = vpop.eup %5503  ;;  %v2520_v44 = vmul.f32 %v5502_v54, %v7512_v27  ;;  %v2323_v20 = vmul.f32 %v2322_v17, %v2319_v49  ;;  %v4676_v49 = vld [vmem:[%s7373_s21 + $0x5] ss:$0 sm:$0xff]  ;;  %v4670_v27 = vld [vmem:[%s7373_s21 + $0x4] ss:$0 sm:$0xff] }
 0xc75   :  { %v2320_v48 = vadd.f32 %v2318_v56, %v2315_v4  ;;  %v2519_v52 = vmul.f32 %v5504_v7, %v7513_v37  ;;  %v2584_v56 = vstv %s7075_s22  ;;  %v3724_v37 = vadd.f32 %v6944_v8, %v6959_v40 }
 0xc76   :  { %v2325_v4 = vadd.f32 %v2323_v20, %v2084_v26 }
 0xc77   :  { %v2324_v5 = vmul.f32 %v2322_v17, %v2320_v48  ;;  %v3916_v17 = vmul.f32 %v6988_v38, %v4645_v32  ;;  %v4664_v38 = vld [vmem:[%s7373_s21 + $0x3] ss:$0 sm:$0xff]  ;;  %5509 = vtanh.f32 %v3724_v37  ;;  %v7514_v37 = vld [vmem:[#allocation29_spill] sm:$0xff] }
 0xc78   :  { %v5506_v16 = vpop.eup %5505 }
 0xc79   :  { %v2570_v33 = vmul.f32 %v5506_v16, %v5480_v18  ;;  %v2573_v14 = vmul.f32 %v5506_v16, %v5482_v6  ;;  %v2578_v21 = vmul.f32 %v5506_v16, %v5486_v53  ;;  %v2326_v54 = vadd.f32 %v2324_v5, %v2085_v15 }
 0xc7b   :  { %v2571_v22 = vmul.f32 %v2570_v33, %v2367_v25  ;;  %v2572_v41 = vmul.f32 %v2570_v33, %v2368_v34  ;;  %v2574_v57 = vmul.f32 %v2573_v14, %v2443_v51  ;;  %v2575_v19 = vmul.f32 %v2573_v14, %v2444_v60  ;;  %v4647_v60 = vld [vmem:[%s7372_s20 + $0x1] ss:$0 sm:$0xff]  ;;  %v4660_v51 = vld [vmem:[%s7372_s20 + $0x3] ss:$0 sm:$0xff]  ;;  %v4653_v33 = vld [vmem:[%s7372_s20 + $0x2] ss:$0 sm:$0xff] }
 0xc7c   :  { %v2579_v0 = vmul.f32 %v2578_v21, %v2519_v52  ;;  %v2580_v53 = vmul.f32 %v2578_v21, %v2520_v44  ;;  %v7099_v30 = vpop.eup %5507  ;;  %v3918_v25 = vsel %vm825_vm6, %v3916_v17, 0.0  ;;  %v4666_v14 = vld [vmem:[%s7372_s20 + $0x4] ss:$0 sm:$0xff]  ;;  %v4657_v21 = vld [vmem:[%s7373_s21 + $0x2] ss:$0 sm:$0xff]  ;;  %v3719_v52 = vadd.f32 %v6959_v40, %v6946_v23  ;;  %s5707_s21 = smov [#allocation7]  }
 0xc7d   :  { %v2576_v18 = vadd.f32 %v2574_v57, %v2571_v22  ;;  %v2577_v6 = vadd.f32 %v2575_v19, %v2572_v41  ;;  %v3917_v31 = vmul.f32 %v7099_v30, %v4645_v32  ;;  %v4679_v44 = vld [vmem:[%s7372_s20 + $0x6] ss:$0 sm:$0xff]  ;;  %v3734_v22 = vadd.f32 %v6948_v61, %v6959_v40  ;;  %s4583_s20 = sld [smem:[#allocation2 + $0x3]] }
 0xc7e   :  { %5511 = vtanh.f32 %v3719_v52  ;;  %v3729_v41 = vadd.f32 %v6959_v40, %v6950_v9  ;;  %v3749_v9 = vadd.f32 %v6959_v40, %v6954_v47 }
 0xc7f   :  { %v2581_v42 = vadd.f32 %v2579_v0, %v2576_v18  ;;  %v2582_v62 = vadd.f32 %v2580_v53, %v2577_v6  ;;  %v3921_v12 = vsel %vm825_vm6, %v3917_v31, 0.0  ;;  %5513 = vtanh.f32 %v3734_v22 }
 0xc81   :  { %v2585_v39 = vmul.f32 %v2584_v56, %v2581_v42  ;;  %v2586_v7 = vmul.f32 %v2584_v56, %v2582_v62  ;;  %v5510_v5 = vpop.eup %5509 }
 0xc82   :  { %v3933_v61 = vadd.f32 %v5510_v5, %v6974_v45 }
 0xc83   :  { %v7088_v16 = vadd.f32 %v2585_v39, %v2325_v4  ;;  %v7090_v63 = vadd.f32 %v2586_v7, %v2326_v54 }
 0xc88   :  { %v5512_v0 = vpop.eup %5511 }
 0xc89   :  { %v3932_v20 = vadd.f32 %v5512_v0, %v6976_v11  ;;  %v5514_v15 = vpop.eup %5513 }
 0xc8a   :  { %v4009_v40 = vadd.f32 %v5514_v15, %v6974_v45 }
 0xcc0   :  { %v2606_v43 = vpop.permute.xlu1 %2605 }
 0xcc1   :  { %v2611_v48 = vsel %vm825_vm6, %v2606_v43, 0.0 }
 0xcc2   :  { %2612 = vadd.xlane.f32.xlu1 %v2611_v48 }
 0xcc4   :  { %v2608_v34 = vpop.permute.xlu1 %2607 }
 0xcc5   :  { %v2614_v46 = vsel %vm825_vm6, %v2608_v34, 0.0 }
 0xcc6   :  { %3919 = vadd.xlane.f32.xlu1 %v3918_v25  ;;  %2615 = vadd.xlane.f32.xlu0 %v2614_v46 }
 0xcca   :  { %3922 = vadd.xlane.f32.xlu0 %v3921_v12 }
 0xcd7   :  { %3941 = vrot.lane.b32.xlu1 %v4647_v60, %s5697_s8 }
 0xcdb   :  { %4167 = vrot.lane.b32.xlu1 %v4664_v38, %s5699_s29 }
 0xcdf   :  { %4319 = vrot.lane.b32.xlu1 %v4676_v49, %s5703_s14 }
 0xce0   :  { %3981 = vrot.lane.b32.xlu0 %v4651_v24, %s5697_s8 }
 0xce3   :  { %4127 = vrot.lane.b32.xlu1 %v4660_v51, %s5699_s29 }
 0xce4   :  { %4017 = vrot.lane.b32.xlu0 %v4653_v33, %s5698_s0 }
 0xce7   :  { %4203 = vrot.lane.b32.xlu1 %v4666_v14, %s5702_s11 }
 0xce8   :  { %4057 = vrot.lane.b32.xlu0 %v4657_v21, %s5698_s0 }
 0xceb   :  { %4279 = vrot.lane.b32.xlu1 %v4672_v35, %s5703_s14 }
 0xcec   :  { %4243 = vrot.lane.b32.xlu0 %v4670_v27, %s5702_s11 }
 0xcef   :  { %4389 = vrot.lane.b32.xlu1 %v4679_v44, %s5705_s1  ;;  %v2632_v44 = vstv %s4583_s20 }
 0xd4f   :  { %v2613_v57 = vpop.xlane.xlu1 %2612 }
 0xd50   :  { %v4581_v19 = vmul.f32 -1.442695, %v2613_v57 }
 0xd52   :  { %5515 = vpow2.f32 %v4581_v19 }
 0xd53   :  { %5517 = vtanh.f32 %v3729_v41  ;;  %v2616_v8 = vpop.xlane.xlu0 %2615  ;;  %v3920_v58 = vpop.xlane.xlu1 %3919 }
 0xd54   :  { %v4582_v23 = vmul.f32 -1.442695, %v2616_v8 }
 0xd56   :  { %5519 = vpow2.f32 %v4582_v23 }
 0xd57   :  { %5521 = vtanh.f32 %v3739_v13  ;;  %v3923_v18 = vpop.xlane.xlu0 %3922  ;;  %v3942_v6 = vpop.permute.xlu1 %3941  ;;  %v7515_v13 = vld [vmem:[#allocation30_spill] sm:$0xff] }
 0xd58   :  { %v7163_v53 = vadd.f32 %v3923_v18, %v3920_v58  ;;  %v7165_v56 = vmul.f32 %v3942_v6, %v3932_v20  ;;  %v7167_v55 = vmul.f32 %v3942_v6, %v3933_v61  ;;  %5523 = vtanh.f32 %v3749_v9 }
 0xd5b   :  { %v3982_v26 = vpop.permute.xlu0 %3981  ;;  %v4168_v42 = vpop.permute.xlu1 %4167 }
 0xd5c   :  { %v5516_v62 = vpop.eup %5515  ;;  %v3985_v4 = vmul.f32 %v5510_v5, %v3982_v26  ;;  %v3984_v43 = vmul.f32 %v5512_v0, %v3982_v26 }
 0xd5d   :  { %v5518_v54 = vpop.eup %5517  ;;  %v2623_v39 = vadd.f32 1.0, %v5516_v62 }
 0xd5e   :  { %3990 = vrot.lane.b32.xlu1 %v3985_v4, %s5700_s13  ;;  %v4008_v47 = vadd.f32 %v5518_v54, %v6976_v11 }
 0xd5f   :  { %5525 = vrcp.f32 %v2623_v39  ;;  %v4018_v7 = vpop.permute.xlu0 %4017  ;;  %v4320_v50 = vpop.permute.xlu1 %4319 }
 0xd60   :  { %v5520_v32 = vpop.eup %5519  ;;  %v7172_v48 = vmul.f32 %v4018_v7, %v4008_v47  ;;  %v4021_v17 = vmul.f32 %v4018_v7, %v4009_v40  ;;  %v4322_v34 = vmul.f32 %v6986_v59, %v4320_v50  ;;  %v4323_v18 = vmul.f32 %v6972_v3, %v4320_v50 }
 0xd61   :  { %v5522_v46 = vpop.eup %5521  ;;  %v2624_v25 = vadd.f32 1.0, %v5520_v32 }
 0xd62   :  { %3988 = vrot.lane.b32.xlu1 %v3984_v43, %s5700_s13  ;;  %v4118_v31 = vadd.f32 %v5522_v46, %v6976_v11  ;;  %v5524_v51 = vpop.eup %5523 }
 0xd63   :  { %5527 = vrcp.f32 %v2624_v25  ;;  %v4058_v12 = vpop.permute.xlu0 %4057  ;;  %v4128_v60 = vpop.permute.xlu1 %4127  ;;  %v4194_v59 = vadd.f32 %v5524_v51, %v6976_v11 }
 0xd64   :  { %v4060_v38 = vmul.f32 %v5518_v54, %v4058_v12  ;;  %v4061_v49 = vmul.f32 %v5514_v15, %v4058_v12  ;;  %v7177_v24 = vmul.f32 %v4128_v60, %v4118_v31  ;;  %v4131_v33 = vmul.f32 %v4128_v60, %v6980_v1 }
 0xd65   :  { %v3925_v54 = vrot.slane %v7163_v53, 4 }
 0xd66   :  { %4066 = vrot.lane.b32.xlu1 %v4061_v49, %s5694_s23  ;;  %4064 = vrot.lane.b32.xlu0 %v4060_v38, %s5694_s23 }
 0xd67   :  { %v4204_v14 = vpop.permute.xlu1 %4203  ;;  %v4244_v20 = vpop.permute.xlu0 %4243  ;;  %v3926_v39 = vadd.f32 %v3925_v54, %v7163_v53 }
 0xd68   :  { %v7183_v21 = vmul.f32 %v4204_v14, %v4194_v59  ;;  %v4207_v35 = vmul.f32 %v4204_v14, %v6984_v29  ;;  %v4246_v61 = vmul.f32 %v5524_v51, %v4244_v20  ;;  %v4247_v9 = vmul.f32 %v6970_v10, %v4244_v20  ;;  %v7518_v10 = vld [vmem:[#allocation46_spill] sm:$0xff]  ;;  %v7521_v14 = vld [vmem:[#allocation48_spill] sm:$0xff] }
 0xd69   :  { %v5526_v27 = vpop.eup %5525  ;;  %v3927_v40 = vrot.slane %v3926_v39, 2 }
 0xd6a   :  { %v2629_v52 = vmul.f32 %v5526_v27, %v7514_v37 }
 0xd6b   :  { %v4280_v22 = vpop.permute.xlu1 %4279 }
 0xd6c   :  { %v4282_v41 = vmul.f32 %v4280_v22, %v6992_v28  ;;  %v4283_v1 = vmul.f32 %v4280_v22, %v6996_v2  ;;  %v2633_v57 = vmul.f32 %v2632_v44, %v2629_v52 }
 0xd6d   :  { %v5528_v19 = vpop.eup %5527 }
 0xd6e   :  { %v2630_v8 = vmul.f32 %v5528_v19, %v7515_v13  ;;  %v2635_v11 = vadd.f32 %v2633_v57, %v7088_v16  ;;  %v4171_v16 = vmul.f32 %v6968_v36, %v4168_v42 }
 0xd6f   :  { %v4390_v5 = vpop.permute.xlu1 %4389 }
 0xd70   :  { %v2634_v58 = vmul.f32 %v2632_v44, %v2630_v8  ;;  %2637 = vst.msk [vmem:[#allocation7] sm:$0xff] %vm7516_vm2, %v2635_v11  ;;  %v4393_v3 = vmul.f32 %v4390_v5, %v7518_v10 }
 0xd72   :  { %v2636_v29 = vadd.f32 %v2634_v58, %v7090_v63  ;;  %v4170_v63 = vmul.f32 %v5522_v46, %v4168_v42  ;;  %v7519_v42 = vld [vmem:[#allocation47_spill] sm:$0xff] }
 0xd74   :  { %2638 = vst.msk [vmem:[#allocation7 + $0x8] sm:$0xff] %vm7517_vm3, %v2636_v29 }
 0xdd0   :  { %v3991_v23 = vpop.permute.xlu1 %3990 }
 0xdd1   :  { %v3997_v0 = vsel %vm825_vm6, %v3991_v23, 0.0 }
 0xdd2   :  { %3998 = vadd.xlane.f32.xlu0 %v3997_v0 }
 0xdd4   :  { %v3989_v28 = vpop.permute.xlu1 %3988 }
 0xdd5   :  { %v3994_v2 = vsel %vm825_vm6, %v3989_v28, 0.0 }
 0xdd6   :  { %3995 = vadd.xlane.f32.xlu1 %v3994_v2 }
 0xdd8   :  { %v4067_v6 = vpop.permute.xlu1 %4066  ;;  %v4065_v36 = vpop.permute.xlu0 %4064 }
 0xdd9   :  { %v4073_v15 = vsel %vm825_vm6, %v4067_v6, 0.0  ;;  %v4070_v26 = vsel %vm825_vm6, %v4065_v36, 0.0 }
 0xde7   :  { %4250 = vrot.lane.b32.xlu1 %v4246_v61, %s5695_s9 }
 0xde8   :  { %4176 = vrot.lane.b32.xlu0 %v4171_v16, %s5701_s10 }
 0xdec   :  { %4174 = vrot.lane.b32.xlu0 %v4170_v63, %s5701_s10 }
 0xdf0   :  { %4252 = vrot.lane.b32.xlu0 %v4247_v9, %s5695_s9 }
 0xdf4   :  { %4328 = vrot.lane.b32.xlu0 %v4323_v18, %s5704_s26 }
 0xe0b   :  { %4074 = vadd.xlane.f32.xlu1 %v4073_v15 }
 0xe13   :  { %4071 = vadd.xlane.f32.xlu0 %v4070_v26 }
 0xe1c   :  { %3950 = vrot.lane.b32.xlu1 %v7167_v55, %s5700_s13  ;;  %v3879_v55 = vadd.f32 %v7099_v30, %v6974_v45  ;;  %v3928_v30 = vadd.f32 %v3927_v40, %v3926_v39 }
 0xe1e   :  { %v3888_v62 = vmul.f32 %v7519_v42, %v3879_v55 }
 0xe20   :  { %4026 = vrot.lane.b32.xlu1 %v4021_v17, %s5694_s23  ;;  %v3892_v4 = vsel %vm825_vm6, %v3888_v62, 0.0  ;;  %v3929_v17 = vrot.slane %v3928_v30, 1 }
 0xe22   :  { %v3930_v12 = vadd.f32 %v3929_v17, %v3928_v30 }
 0xe24   :  { %4136 = vrot.lane.b32.xlu1 %v4131_v33, %s5701_s10  ;;  %v3931_v51 = vmul.f32 0.0625, %v3930_v12 }
 0xe28   :  { %4212 = vrot.lane.b32.xlu1 %v4207_v35, %s5695_s9 }
 0xe29   :  { %4326 = vrot.lane.b32.xlu0 %v4322_v34, %s5704_s26  ;;  %v7520_v34 = vld [vmem:[#allocation45_spill] sm:$0xff] }
 0xe2a   :  { %v4392_v46 = vmul.f32 %v4390_v5, %v7520_v34 }
 0xe2c   :  { %4024 = vrot.lane.b32.xlu1 %v7172_v48, %s5694_s23  ;;  %s4435_s23 = sshll.u32 %s5707_s21, 4  ;;  %s4436_s23 = int_to_ptr.vmem [resolvable:$true] %s4435_s23 }
 0xe2d   :  { %p5642_p11 = scmp.lt.s32.totalorder %s4436_s23, %s4436_s23 }
 0xe30   :  { %4288 = vrot.lane.b32.xlu1 %v4283_v1, %s5704_s26 }
 0xe34   :  { %4398 = vrot.lane.b32.xlu1 %v4393_v3, %s5706_s15 }
 0xe48   :  { %3893 = vadd.xlane.f32.xlu0 %v3892_v4 }
 0xe5e   :  { %3948 = vrot.lane.b32.xlu0 %v7165_v56, %s5700_s13 }
 0xe5f   :  { %v3999_v47 = vpop.xlane.xlu0 %3998 }
 0xe62   :  { %4134 = vrot.lane.b32.xlu0 %v7177_v24, %s5701_s10 }
 0xe63   :  { %v4177_v7 = vpop.permute.xlu0 %4176  ;;  %v3996_v50 = vpop.xlane.xlu1 %3995 }
 0xe64   :  { %v4000_v45 = vadd.f32 %v3999_v47, %v3996_v50  ;;  %v4183_v35 = vsel %vm825_vm6, %v4177_v7, 0.0 }
 0xe66   :  { %v4001_v32 = vrot.slane %v4000_v45, 4  ;;  %4210 = vrot.lane.b32.xlu0 %v7183_v21, %s5695_s9  ;;  %v3889_v21 = vsel %vm825_vm6, %v7521_v14, 0.0  ;;  %s5637_s9 = scalar_lea.vmem %s4436_s23, 256 }
 0xe67   :  { %v4175_v43 = vpop.permute.xlu0 %4174  ;;  %v4251_v44 = vpop.permute.xlu1 %4250  ;;  %p5638_p10 = scmp.ne.s32.totalorder %s4436_s23, %s5637_s9  ;;  %p5643_p12 = scmp.lt.s32.totalorder %s5637_s9, %s5637_s9 }
 0xe68   :  { %v4002_v48 = vadd.f32 %v4001_v32, %v4000_v45  ;;  %v4180_v27 = vsel %vm825_vm6, %v4175_v43, 0.0  ;;  %v4256_v37 = vsel %vm825_vm6, %v4251_v44, 0.0 }
 0xe69   :  { %p5644_p13 = por %p5643_p12, %p5642_p11 }
 0xe6a   :  { %v4003_v53 = vrot.slane %v4002_v48, 2  ;;  %4286 = vrot.lane.b32.xlu0 %v4282_v41, %s5704_s26 }
 0xe6b   :  { %v4253_v56 = vpop.permute.xlu0 %4252  ;;  %p5645_p0 = pnand %p5644_p13, %p5638_p10 }
 0xe6c   :  { %v4004_v25 = vadd.f32 %v4003_v53, %v4002_v48  ;;  %v4259_v31 = vsel %vm825_vm6, %v4253_v56, 0.0 }
 0xe6d   :  { %4260 = vadd.xlane.f32.xlu1 %v4259_v31 }
 0xe6e   :  { %v4005_v60 = vrot.slane %v4004_v25, 1  ;;  %4396 = vrot.lane.b32.xlu0 %v4392_v46, %s5706_s15 }
 0xe6f   :  { %v4329_v38 = vpop.permute.xlu0 %4328 }
 0xe70   :  { %v4006_v49 = vadd.f32 %v4005_v60, %v4004_v25  ;;  %v4335_v24 = vsel %vm825_vm6, %v4329_v38, 0.0 }
 0xe71   :  { %4336 = vadd.xlane.f32.xlu1 %v4335_v24 }
 0xe72   :  { %v4007_v33 = vmul.f32 0.0625, %v4006_v49 }
 0xe74   :  { %v4084_v59 = vmax.f32 %v3931_v51, %v4007_v33 }
 0xe8d   :  { %3890 = vadd.xlane.f32.xlu0 %v3889_v21 }
 0xe91   :  { %4184 = vadd.xlane.f32.xlu0 %v4183_v35 }
 0xe95   :  { %4181 = vadd.xlane.f32.xlu0 %v4180_v27 }
 0xe98   :  { %v4075_v52 = vpop.xlane.xlu1 %4074 }
 0xe99   :  { %4257 = vadd.xlane.f32.xlu0 %v4256_v37 }
 0xe9c   :  { %v3951_v22 = vpop.permute.xlu1 %3950 }
 0xe9d   :  { %v3957_v28 = vsel %vm825_vm6, %v3951_v22, 0.0 }
 0xea0   :  { %v4072_v41 = vpop.xlane.xlu0 %4071  ;;  %v4027_v1 = vpop.permute.xlu1 %4026 }
 0xea1   :  { %v4076_v57 = vadd.f32 %v4075_v52, %v4072_v41  ;;  %v4033_v19 = vsel %vm825_vm6, %v4027_v1, 0.0 }
 0xea2   :  { %4034 = vadd.xlane.f32.xlu1 %v4033_v19 }
 0xea3   :  { %v4077_v13 = vrot.slane %v4076_v57, 4 }
 0xea4   :  { %v4327_v8 = vpop.permute.xlu0 %4326  ;;  %v4137_v11 = vpop.permute.xlu1 %4136 }
 0xea5   :  { %v4078_v58 = vadd.f32 %v4077_v13, %v4076_v57  ;;  %v4332_v29 = vsel %vm825_vm6, %v4327_v8, 0.0  ;;  %v4143_v5 = vsel %vm825_vm6, %v4137_v11, 0.0 }
 0xea6   :  { %4333 = vadd.xlane.f32.xlu0 %v4332_v29  ;;  %4144 = vadd.xlane.f32.xlu1 %v4143_v5 }
 0xea7   :  { %v4079_v23 = vrot.slane %v4078_v58, 2 }
 0xea8   :  { %v4213_v0 = vpop.permute.xlu1 %4212 }
 0xea9   :  { %v4080_v2 = vadd.f32 %v4079_v23, %v4078_v58  ;;  %v4219_v20 = vsel %vm825_vm6, %v4213_v0, 0.0 }
 0xeaa   :  { %3958 = vadd.xlane.f32.xlu0 %v3957_v28  ;;  %4220 = vadd.xlane.f32.xlu1 %v4219_v20 }
 0xeab   :  { %v4081_v61 = vrot.slane %v4080_v2, 1 }
 0xeac   :  { %v4025_v16 = vpop.permute.xlu1 %4024 }
 0xead   :  { %v4082_v63 = vadd.f32 %v4081_v61, %v4080_v2  ;;  %v4030_v9 = vsel %vm825_vm6, %v4025_v16, 0.0 }
 0xeae   :  { %4031 = vadd.xlane.f32.xlu0 %v4030_v9 }
 0xeaf   :  { %v4083_v18 = vmul.f32 0.0625, %v4082_v63 }
 0xeb0   :  { %v4289_v32 = vpop.permute.xlu1 %4288 }
 0xeb1   :  { %v4085_v6 = vmax.f32 %v4084_v59, %v4083_v18  ;;  %v4295_v53 = vsel %vm825_vm6, %v4289_v32, 0.0  ;;  %v7522_v59 = vld [vmem:[#allocation32_spill] sm:$0xff] }
 0xeb3   :  { %v4086_v15 = vsub.f32 %v3931_v51, %v4085_v6  ;;  %v4089_v36 = vsub.f32 %v4007_v33, %v4085_v6  ;;  %v4092_v26 = vsub.f32 %v4083_v18, %v4085_v6 }
 0xeb4   :  { %v4399_v34 = vpop.permute.xlu1 %4398 }
 0xeb5   :  { %v4087_v10 = vmul.f32 1.442695, %v4086_v15  ;;  %v4090_v3 = vmul.f32 1.442695, %v4089_v36  ;;  %v4093_v55 = vmul.f32 1.442695, %v4092_v26 }
 0xeb6   :  { %v4405_v31 = vsel %vm825_vm6, %v4399_v34, 0.0 }
 0xeb7   :  { %5529 = vpow2.f32 %v4087_v10 }
 0xeb8   :  { %5531 = vpow2.f32 %v4090_v3 }
 0xeb9   :  { %5533 = vpow2.f32 %v4093_v55 }
 0xec1   :  { %v5530_v42 = vpop.eup %5529 }
 0xec2   :  { %v5532_v62 = vpop.eup %5531 }
 0xec3   :  { %v4095_v4 = vadd.f32 %v5532_v62, %v5530_v42  ;;  %v5534_v54 = vpop.eup %5533 }
 0xec5   :  { %v4096_v39 = vadd.f32 %v5534_v54, %v4095_v4 }
 0xec7   :  { %5535 = vrcp.f32 %v4096_v39 }
 0xed1   :  { %v5536_v47 = vpop.eup %5535 }
 0xed2   :  { %v7245_v40 = vmul.f32 %v5536_v47, %v5530_v42  ;;  %v7247_v7 = vmul.f32 %v5536_v47, %v5534_v54  ;;  %v7249_v50 = vmul.f32 %v5536_v47, %v5532_v62 }
 0xed5   :  { %v3894_v45 = vpop.xlane.xlu0 %3893 }
 0xed6   :  { %v4644_v30 = vmul.f32 -1.442695, %v3894_v45 }
 0xed8   :  { %5537 = vpow2.f32 %v4644_v30 }
 0xed9   :  { %v3949_v43 = vpop.permute.xlu0 %3948 }
 0xeda   :  { %v3954_v48 = vsel %vm825_vm6, %v3949_v43, 0.0 }
 0xedb   :  { %3955 = vadd.xlane.f32.xlu1 %v3954_v48 }
 0xedd   :  { %v4135_v17 = vpop.permute.xlu0 %4134 }
 0xede   :  { %v4140_v56 = vsel %vm825_vm6, %v4135_v17, 0.0 }
 0xedf   :  { %4141 = vadd.xlane.f32.xlu0 %v4140_v56  ;;  %4296 = vadd.xlane.f32.xlu1 %v4295_v53 }
 0xee1   :  { %v4211_v46 = vpop.permute.xlu0 %4210 }
 0xee2   :  { %v5538_v25 = vpop.eup %5537  ;;  %v4216_v12 = vsel %vm825_vm6, %v4211_v46, 0.0 }
 0xee3   :  { %v3902_v60 = vadd.f32 1.0, %v5538_v25  ;;  %4217 = vadd.xlane.f32.xlu0 %v4216_v12  ;;  %4406 = vadd.xlane.f32.xlu1 %v4405_v31 }
 0xee5   :  { %5539 = vrcp.f32 %v3902_v60  ;;  %v4287_v38 = vpop.permute.xlu0 %4286 }
 0xee6   :  { %v4292_v49 = vsel %vm825_vm6, %v4287_v38, 0.0 }
 0xee7   :  { %4293 = vadd.xlane.f32.xlu0 %v4292_v49 }
 0xee9   :  { %v4397_v24 = vpop.permute.xlu0 %4396 }
 0xeea   :  { %v4402_v51 = vsel %vm825_vm6, %v4397_v24, 0.0 }
 0xeeb   :  { %4403 = vadd.xlane.f32.xlu0 %v4402_v51 }
 0xeef   :  { %v5540_v33 = vpop.eup %5539 }
 0xef0   :  { %v3908_v14 = vmul.f32 %v5540_v33, %v7522_v59 }
 0xef2   :  { %v7260_v21 = vmul.f32 %v7245_v40, %v3908_v14 }
 0xef3   :  { %5648 = shalt.err (!%p5645_p0)
}
 0xef4   :  { %s5649_s10 = scalar_lea.hbm %s7376_s24, 256 }
 0xef5   :  { %p5650_p1 = scmp.ne.s32.totalorder %s7376_s24, %s5649_s10  ;;  %p5653_p2 = scmp.lt.u32.totalorder %s5649_s10, %s7376_s24 }
 0xef7   :  { %p5655_p3 = pnand %p5653_p2, %p5650_p1 }
 0xef9   :  { %5658 = shalt.err (!%p5655_p3)
}
 0xefa   :  { %s5708_s15 = smov 128   ;;  %v4261_v44 = vpop.xlane.xlu1 %4260  ;;  %v7282_v47 = vld [vmem:[%s7438_s28] ss:$0 sm:$0xff]  ;;  %s7286_s6 = sld [smem:[#allocation5]]  ;;  %v7524_v53 = vld [vmem:[#allocation36_spill] sm:$0xff]  ;;  %v7525_v34 = vld [vmem:[#allocation35_spill] sm:$0xff] }
 0xefb   :  { %4441 = dma.vmem_to_hbm [thread:$0]  %s4436_s23, 256, %s7376_s24, [#allocation3], %s5708_s15, %s5708_s15, %s5697_s8   ;;  %v7523_v45 = vld [vmem:[#allocation14_spill] sm:$0xff]  ;;  %vm7538_vm5 = vmmov %vm7469_vm0 }
 0xefc   :  { %v786_v30 = vadd.f32 %v7282_v47, %v7523_v45  ;;  %s7288_s22 = sld [smem:[#allocation5 + $0x1]]  ;;  %s7312_s28 = sld [smem:[#allocation5 + $0x2]]  ;;  %vm7539_vm8 = vmmov %vm7469_vm0 }
 0xefd   :  { %s7318_s17 = sld [smem:[#allocation5 + $0x3]]  ;;  %s5709_s3 = smov [#allocation8]  }
 0xefe   :  { %v4337_v52 = vpop.xlane.xlu1 %4336  ;;  %v792_v25 = vmul.f32 0.2, %v786_v30  ;;  %vm790_vm6 = vcmp.gt.f32.partialorder %v786_v30, 0.0  ;;  %s4447_s27 = sshll.u32 %s5709_s3, 4  ;;  %s4448_s27 = int_to_ptr.vmem [resolvable:$true] %s4447_s27 }
 0xeff   :  { %s5659_s16 = scalar_lea.vmem %s4448_s27, 256  ;;  %p5664_p5 = scmp.lt.s32.totalorder %s4448_s27, %s4448_s27 }
 0xf00   :  { %v794_v24 = vsel %vm790_vm6, %v786_v30, %v792_v25  ;;  %v3875_v51 = vstv %s7286_s6  ;;  %p5660_p4 = scmp.ne.s32.totalorder %s4448_s27, %s5659_s16  ;;  %p5665_p6 = scmp.lt.s32.totalorder %s5659_s16, %s5659_s16 }
 0xf02   :  { %v4113_v59 = vstv %s7288_s22  ;;  %p5666_p7 = por %p5665_p6, %p5664_p5 }
 0xf04   :  { %p5667_p8 = pnand %p5666_p7, %p5660_p4 }
 0xf1a   :  { %v7277_v35 = vpop.xlane.xlu0 %3890 }
 0xf1e   :  { %v4185_v27 = vpop.xlane.xlu0 %4184 }
 0xf22   :  { %v4182_v37 = vpop.xlane.xlu0 %4181 }
 0xf23   :  { %v4186_v19 = vadd.f32 %v4185_v27, %v4182_v37  ;;  %v3877_v37 = vmul.f32 %v3875_v51, %v794_v24 }
 0xf25   :  { %v4187_v58 = vrot.slane %v4186_v19, 4 }
 0xf26   :  { %v4258_v22 = vpop.xlane.xlu0 %4257 }
 0xf27   :  { %v4262_v57 = vadd.f32 %v4261_v44, %v4258_v22  ;;  %v4188_v28 = vadd.f32 %v4187_v58, %v4186_v19  ;;  %v4643_v44 = vmul.f32 -1.442695, %v7277_v35 }
 0xf29   :  { %v4263_v11 = vrot.slane %v4262_v57, 4  ;;  %v4189_v16 = vrot.slane %v4188_v28, 2 }
 0xf2b   :  { %v4264_v0 = vadd.f32 %v4263_v11, %v4262_v57  ;;  %v4190_v6 = vadd.f32 %v4189_v16, %v4188_v28 }
 0xf2d   :  { %v4265_v20 = vrot.slane %v4264_v0, 2  ;;  %v4191_v3 = vrot.slane %v4190_v6, 1 }
 0xf2f   :  { %v4035_v41 = vpop.xlane.xlu1 %4034  ;;  %v4266_v9 = vadd.f32 %v4265_v20, %v4264_v0  ;;  %v4192_v62 = vadd.f32 %v4191_v3, %v4190_v6 }
 0xf30   :  { %v4655_v1 = vmul.f32 -1.442695, %v4035_v41 }
 0xf31   :  { %v4267_v26 = vrot.slane %v4266_v9, 1  ;;  %v4193_v32 = vmul.f32 0.0625, %v4192_v62 }
 0xf32   :  { %5541 = vpow2.f32 %v4655_v1 }
 0xf33   :  { %v4334_v13 = vpop.xlane.xlu0 %4333  ;;  %v4268_v42 = vadd.f32 %v4267_v26, %v4266_v9  ;;  %v4145_v12 = vpop.xlane.xlu1 %4144 }
 0xf34   :  { %v4338_v8 = vadd.f32 %v4337_v52, %v4334_v13  ;;  %v4662_v52 = vmul.f32 -1.442695, %v4145_v12 }
 0xf35   :  { %v4269_v54 = vmul.f32 0.0625, %v4268_v42 }
 0xf36   :  { %v4339_v29 = vrot.slane %v4338_v8, 4 }
 0xf37   :  { %v3959_v5 = vpop.xlane.xlu0 %3958  ;;  %v4346_v17 = vmax.f32 %v4193_v32, %v4269_v54  ;;  %v4221_v22 = vpop.xlane.xlu1 %4220 }
 0xf38   :  { %v4649_v23 = vmul.f32 -1.442695, %v3959_v5  ;;  %v4340_v2 = vadd.f32 %v4339_v29, %v4338_v8 }
 0xf3a   :  { %5543 = vpow2.f32 %v4649_v23  ;;  %v4341_v63 = vrot.slane %v4340_v2, 2 }
 0xf3b   :  { %v4032_v8 = vpop.xlane.xlu0 %4031 }
 0xf3c   :  { %v5542_v61 = vpop.eup %5541  ;;  %v4342_v15 = vadd.f32 %v4341_v63, %v4340_v2  ;;  %v4654_v11 = vmul.f32 -1.442695, %v4032_v8  ;;  %v7529_v8 = vld [vmem:[#allocation33_spill] sm:$0xff] }
 0xf3d   :  { %v4043_v18 = vadd.f32 1.0, %v5542_v61 }
 0xf3e   :  { %v4343_v55 = vrot.slane %v4342_v15, 1 }
 0xf3f   :  { %5545 = vrcp.f32 %v4043_v18 }
 0xf40   :  { %v4344_v4 = vadd.f32 %v4343_v55, %v4342_v15 }
 0xf42   :  { %v4345_v43 = vmul.f32 0.0625, %v4344_v4 }
 0xf44   :  { %v5544_v36 = vpop.eup %5543  ;;  %v4347_v31 = vmax.f32 %v4346_v17, %v4345_v43 }
 0xf45   :  { %v3967_v10 = vadd.f32 1.0, %v5544_v36 }
 0xf46   :  { %v4348_v33 = vsub.f32 %v4193_v32, %v4347_v31  ;;  %v4351_v14 = vsub.f32 %v4269_v54, %v4347_v31  ;;  %v4354_v13 = vsub.f32 %v4345_v43, %v4347_v31 }
 0xf47   :  { %5547 = vrcp.f32 %v3967_v10 }
 0xf48   :  { %v4349_v1 = vmul.f32 1.442695, %v4348_v33  ;;  %v4352_v57 = vmul.f32 1.442695, %v4351_v14  ;;  %5549 = vpow2.f32 %v4643_v44  ;;  %v4355_v35 = vmul.f32 1.442695, %v4354_v13 }
 0xf49   :  { %v5546_v39 = vpop.eup %5545  ;;  %5551 = vpow2.f32 %v4662_v52  ;;  %v7527_v44 = vld [vmem:[#allocation31_spill] sm:$0xff] }
 0xf4a   :  { %v4049_v56 = vmul.f32 %v5546_v39, %v7524_v53  ;;  %5553 = vpow2.f32 %v4349_v1 }
 0xf4b   :  { %5555 = vpow2.f32 %v4352_v57 }
 0xf4c   :  { %v4109_v38 = vmul.f32 %v7247_v7, %v4049_v56 }
 0xf51   :  { %v5548_v48 = vpop.eup %5547 }
 0xf52   :  { %v3973_v46 = vmul.f32 %v5548_v48, %v7525_v34  ;;  %v5550_v58 = vpop.eup %5549 }
 0xf53   :  { %v5552_v29 = vpop.eup %5551  ;;  %v3901_v2 = vadd.f32 1.0, %v5550_v58  ;;  %v7531_v58 = vld [vmem:[#allocation41_spill] sm:$0xff] }
 0xf54   :  { %v4104_v60 = vmul.f32 %v7249_v50, %v3973_v46  ;;  %v5554_v23 = vpop.eup %5553  ;;  %v4153_v9 = vadd.f32 1.0, %v5552_v29 }
 0xf55   :  { %v5556_v28 = vpop.eup %5555 }
 0xf56   :  { %v4106_v49 = vadd.f32 %v4104_v60, %v7260_v21  ;;  %v4668_v21 = vmul.f32 -1.442695, %v4221_v22  ;;  %v4357_v63 = vadd.f32 %v5556_v28, %v5554_v23 }
 0xf58   :  { %v4111_v27 = vadd.f32 %v4109_v38, %v4106_v49  ;;  %5557 = vpow2.f32 %v4668_v21  ;;  %v7526_v49 = vld [vmem:[#allocation15_spill] sm:$0xff]  ;;  %v7528_v21 = vld [vmem:[#allocation34_spill] sm:$0xff] }
 0xf59   :  { %5559 = vpow2.f32 %v4654_v11  ;;  %v781_v24 = vadd.f32 %v7282_v47, %v7526_v49  ;;  %v7530_v47 = vld [vmem:[#allocation38_spill] sm:$0xff] }
 0xf5a   :  { %v4115_v41 = vmul.f32 %v4113_v59, %v4111_v27  ;;  %5561 = vpow2.f32 %v4355_v35 }
 0xf5b   :  { %v791_v57 = vmul.f32 0.2, %v781_v24  ;;  %vm789_vm4 = vcmp.gt.f32.partialorder %v781_v24, 0.0 }
 0xf5c   :  { %v7302_v19 = vadd.f32 %v4115_v41, %v3877_v37 }
 0xf62   :  { %v5558_v20 = vpop.eup %5557 }
 0xf63   :  { %v4229_v15 = vadd.f32 1.0, %v5558_v20  ;;  %v5560_v36 = vpop.eup %5559 }
 0xf64   :  { %v7304_v26 = vpop.eup %5561  ;;  %v4042_v4 = vadd.f32 1.0, %v5560_v36 }
 0xf65   :  { %v4358_v55 = vadd.f32 %v7304_v26, %v4357_v63 }
 0xf68   :  { %v3956_v5 = vpop.xlane.xlu1 %3955 }
 0xf69   :  { %v4648_v0 = vmul.f32 -1.442695, %v3956_v5 }
 0xf6b   :  { %5563 = vpow2.f32 %v4648_v0 }
 0xf6c   :  { %v4142_v61 = vpop.xlane.xlu0 %4141  ;;  %v4297_v16 = vpop.xlane.xlu1 %4296  ;;  %5565 = vrcp.f32 %v3901_v2 }
 0xf6d   :  { %v4661_v18 = vmul.f32 -1.442695, %v4142_v61  ;;  %v4674_v6 = vmul.f32 -1.442695, %v4297_v16  ;;  %v793_v16 = vsel %vm789_vm4, %v781_v24, %v791_v57  ;;  %v7537_v24 = vld [vmem:[#allocation42_spill] sm:$0xff] }
 0xf6f   :  { %5567 = vpow2.f32 %v4661_v18 }
 0xf70   :  { %5569 = vpow2.f32 %v4674_v6  ;;  %v4218_v10 = vpop.xlane.xlu0 %4217  ;;  %v4407_v3 = vpop.xlane.xlu1 %4406  ;;  %v7532_v6 = vld [vmem:[#allocation43_spill] sm:$0xff] }
 0xf71   :  { %5571 = vrcp.f32 %v4153_v9  ;;  %v4667_v42 = vmul.f32 -1.442695, %v4218_v10  ;;  %v4681_v62 = vmul.f32 -1.442695, %v4407_v3  ;;  %v3876_v10 = vmul.f32 %v3875_v51, %v793_v16  ;;  %v7536_v51 = vld [vmem:[#allocation40_spill] sm:$0xff] }
 0xf72   :  { %5573 = vrcp.f32 %v4229_v15 }
 0xf73   :  { %5575 = vpow2.f32 %v4667_v42 }
 0xf74   :  { %5577 = vpow2.f32 %v4681_v62  ;;  %v4294_v54 = vpop.xlane.xlu0 %4293  ;;  %v7533_v62 = vld [vmem:[#allocation37_spill] sm:$0xff] }
 0xf75   :  { %v5564_v39 = vpop.eup %5563  ;;  %5579 = vrcp.f32 %v4358_v55  ;;  %v4673_v45 = vmul.f32 -1.442695, %v4294_v54  ;;  %v7534_v54 = vld [vmem:[#allocation39_spill] sm:$0xff] }
 0xf76   :  { %5581 = vrcp.f32 %v4042_v4  ;;  %v3966_v30 = vadd.f32 1.0, %v5564_v39  ;;  %v5566_v32 = vpop.eup %5565 }
 0xf77   :  { %5583 = vpow2.f32 %v4673_v45  ;;  %v3907_v37 = vmul.f32 %v5566_v32, %v7527_v44  ;;  %v4375_v45 = vstv %s7312_s28  ;;  %v7535_v32 = vld [vmem:[#allocation44_spill] sm:$0xff] }
 0xf78   :  { %5585 = vrcp.f32 %v3966_v30  ;;  %v4404_v43 = vpop.xlane.xlu0 %4403 }
 0xf79   :  { %v5568_v48 = vpop.eup %5567  ;;  %v4680_v17 = vmul.f32 -1.442695, %v4404_v43  ;;  %v4100_v0 = vmul.f32 %v7245_v40, %v3907_v37 }
 0xf7a   :  { %v5570_v53 = vpop.eup %5569  ;;  %v4152_v56 = vadd.f32 1.0, %v5568_v48 }
 0xf7b   :  { %v5572_v34 = vpop.eup %5571  ;;  %v4305_v46 = vadd.f32 1.0, %v5570_v53  ;;  %5587 = vpow2.f32 %v4680_v17 }
 0xf7c   :  { %v5574_v25 = vpop.eup %5573  ;;  %v4159_v35 = vmul.f32 %v5572_v34, %v7530_v47 }
 0xf7d   :  { %v5576_v31 = vpop.eup %5575  ;;  %5589 = vrcp.f32 %v4305_v46  ;;  %v4235_v29 = vmul.f32 %v5574_v25, %v7531_v58 }
 0xf7e   :  { %v5578_v12 = vpop.eup %5577  ;;  %5591 = vrcp.f32 %v4152_v56  ;;  %v4228_v60 = vadd.f32 1.0, %v5576_v31 }
 0xf7f   :  { %v5580_v38 = vpop.eup %5579  ;;  %v4415_v33 = vadd.f32 1.0, %v5578_v12 }
 0xf80   :  { %v5582_v14 = vpop.eup %5581  ;;  %5593 = vrcp.f32 %v4228_v60  ;;  %v4361_v22 = vmul.f32 %v5580_v38, %v5554_v23  ;;  %v4364_v41 = vmul.f32 %v5580_v38, %v5556_v28  ;;  %v4369_v40 = vmul.f32 %v5580_v38, %v7304_v26 }
 0xf81   :  { %v5584_v27 = vpop.eup %5583  ;;  %5595 = vrcp.f32 %v4415_v33  ;;  %v4048_v13 = vmul.f32 %v5582_v14, %v7528_v21  ;;  %v4423_v26 = vstv %s7318_s17 }
 0xf82   :  { %v5586_v52 = vpop.eup %5585  ;;  %v4304_v1 = vadd.f32 1.0, %v5584_v27  ;;  %v4363_v28 = vmul.f32 %v4361_v22, %v4159_v35  ;;  %v4366_v2 = vmul.f32 %v4364_v41, %v4235_v29 }
 0xf83   :  { %v3972_v11 = vmul.f32 %v5586_v52, %v7529_v8  ;;  %v4108_v63 = vmul.f32 %v7247_v7, %v4048_v13 }
 0xf84   :  { %5597 = vrcp.f32 %v4304_v1  ;;  %v4368_v3 = vadd.f32 %v4366_v2, %v4363_v28 }
 0xf85   :  { %v5588_v5 = vpop.eup %5587  ;;  %v4103_v23 = vmul.f32 %v7249_v50, %v3972_v11 }
 0xf86   :  { %v4414_v20 = vadd.f32 1.0, %v5588_v5 }
 0xf87   :  { %v5590_v61 = vpop.eup %5589  ;;  %v4105_v9 = vadd.f32 %v4103_v23, %v4100_v0 }
 0xf88   :  { %v5592_v18 = vpop.eup %5591  ;;  %v4311_v15 = vmul.f32 %v5590_v61, %v7532_v6  ;;  %5599 = vrcp.f32 %v4414_v20 }
 0xf89   :  { %v4110_v50 = vadd.f32 %v4108_v63, %v4105_v9  ;;  %v4158_v4 = vmul.f32 %v5592_v18, %v7533_v62 }
 0xf8a   :  { %v5594_v36 = vpop.eup %5593  ;;  %v4371_v55 = vmul.f32 %v4369_v40, %v4311_v15 }
 0xf8b   :  { %v5596_v42 = vpop.eup %5595  ;;  %v4234_v39 = vmul.f32 %v5594_v36, %v7534_v54  ;;  %v4114_v7 = vmul.f32 %v4113_v59, %v4110_v50  ;;  %v4362_v34 = vmul.f32 %v4361_v22, %v4158_v4 }
 0xf8c   :  { %v4373_v30 = vadd.f32 %v4371_v55, %v4368_v3  ;;  %v4421_v43 = vmul.f32 %v5596_v42, %v7535_v32 }
 0xf8d   :  { %v4365_v48 = vmul.f32 %v4364_v41, %v4234_v39  ;;  %v4116_v17 = vadd.f32 %v4114_v7, %v3876_v10 }
 0xf8e   :  { %v5598_v53 = vpop.eup %5597  ;;  %v4377_v56 = vmul.f32 %v4375_v45, %v4373_v30  ;;  %v4425_v31 = vmul.f32 %v4423_v26, %v4421_v43 }
 0xf8f   :  { %v4310_v46 = vmul.f32 %v5598_v53, %v7536_v51  ;;  %v4367_v12 = vadd.f32 %v4365_v48, %v4362_v34 }
 0xf90   :  { %v4379_v25 = vadd.f32 %v4377_v56, %v7302_v19 }
 0xf91   :  { %v4370_v60 = vmul.f32 %v4369_v40, %v4310_v46 }
 0xf92   :  { %v5600_v38 = vpop.eup %5599  ;;  %v4427_v49 = vadd.f32 %v4425_v31, %v4379_v25 }
 0xf93   :  { %v4372_v59 = vadd.f32 %v4370_v60, %v4367_v12  ;;  %v4420_v33 = vmul.f32 %v5600_v38, %v7537_v24 }
 0xf94   :  { %4429 = vst.msk [vmem:[#allocation8 + $0x8] sm:$0xff] %vm7538_vm5, %v4427_v49 }
 0xf95   :  { %v4376_v14 = vmul.f32 %v4375_v45, %v4372_v59  ;;  %v4424_v44 = vmul.f32 %v4423_v26, %v4420_v33 }
 0xf97   :  { %v4378_v27 = vadd.f32 %v4376_v14, %v4116_v17 }
 0xf99   :  { %v4426_v37 = vadd.f32 %v4424_v44, %v4378_v27 }
 0xf9b   :  { %4428 = vst.msk [vmem:[#allocation8] sm:$0xff] %vm7539_vm8, %v4426_v37 }
 0xf9c   :  { %5670 = shalt.err (!%p5667_p8)
}
 0xf9d   :  { %s5671_s7 = scalar_lea.hbm %s7377_s25, 256 }
 0xf9e   :  { %p5672_p9 = scmp.ne.s32.totalorder %s7377_s25, %s5671_s7  ;;  %p5675_p10 = scmp.lt.u32.totalorder %s5671_s7, %s7377_s25 }
 0xfa0   :  { %p5677_p11 = pnand %p5675_p10, %p5672_p9 }
 0xfa2   :  { %5680 = shalt.err (!%p5677_p11)
}
 0xfa3   :  { %4453 = dma.vmem_to_hbm [thread:$0]  %s4448_s27, 256, %s7377_s25, [#allocation9], %s5708_s15, %s5708_s15, %s5697_s8  }
 0xfa4   :  { %5685 = dma.done.wait [#allocation3], 256  }
 0xfa5   :  { %5686 = vsyncadd [#allocation3], 4294967040 }
 0xfa6   :  { %5687 = dma.done.wait [#allocation9], 256  }
 0xfa7   :  { %5688 = vsyncadd [#allocation9], 4294967040 }
 0xfa8   :  { %4460 = vsyncpa [#allocation3], 1 }
 0xfa9   :  { %4461 = vsyncpa [#allocation9], 1 }
 0xfaa   :  { %4462 = vsyncpa [#allocation4], 1 }
 0xfab   :  { %4463 = vsyncpa [#allocation6], 1 }

</bundles_post_ra>
